<compile_context>
chip_gen: v7x
topology: tpu7x:2x2x1
jax: 0.10.0
libtpu: 0.0.40
codegen_flags: <defaults>
</compile_context>

<pallas_src>
import functools

import jax
import jax.numpy as jnp
from jax.experimental import pallas as pl
from jax.experimental.pallas import tpu as pltpu


# --------------------------- fused encoder kernel ------------------------------
def _encoder_kernel(x_ref, wqkv_ref, bqkv_ref, wo_ref, bo_ref, g1_ref, e1_ref,
                    w1_ref, b1_ref, w2_ref, b2_ref, g2_ref, e2_ref, o_ref,
                    *, num_head, seq, dim, dim_head, seq_h, scale):
    f32 = jnp.float32
    bf16 = jnp.bfloat16
    H, dh, sg = num_head, dim_head, seq_h

    x = x_ref[...].astype(f32)                                    # (S, D)

    # ---- packed Q/K/V projection: one wide (S, D) @ (D, 3D) bf16 MXU matmul.
    qkv = jnp.dot(x.astype(bf16), wqkv_ref[...],
                  preferred_element_type=f32) + bqkv_ref[...]     # (S, 3D) f32
    q2d = qkv[:, :dim] * scale        # fold softmax scale into Q (S*dh multiply)
    k2d = qkv[:, dim:2 * dim]
    v2d = qkv[:, 2 * dim:]

    # Output-projection weight (already (D_in, D_out)); sliced per column block
    # so the head-merge of the reference .view folds straight into this matmul.
    wo = wo_ref[...]                                              # (D, D) f32
    wo_blk = [wo[c * dh:(c + 1) * dh, :].astype(bf16) for c in range(H)]

    # 0/1 row-placement selectors: head h owns output rows [h*sg, (h+1)*sg).
    rows = jax.lax.broadcasted_iota(jnp.int32, (seq, sg), 0)
    cols = jax.lax.broadcasted_iota(jnp.int32, (seq, sg), 1)

    # proj accumulates merged_context @ Wo for all heads.
    proj = jnp.zeros((seq, dim), f32)
    for h in range(H):
        r0 = h * sg
        qh = q2d[r0:r0 + sg, :]                                   # (sg, D)
        kh = k2d[r0:r0 + sg, :]
        vh = v2d[r0:r0 + sg, :]
        kh_blk = [kh[:, c * dh:(c + 1) * dh].astype(bf16) for c in range(H)]
        vh_blk = [vh[:, c * dh:(c + 1) * dh].astype(bf16) for c in range(H)]

        proj_h = jnp.zeros((sg, dim), f32)
        for c in range(H):
            a = qh[:, c * dh:(c + 1) * dh].astype(bf16)           # (sg, dh)
            # Block-wise softmax over the H key column-blocks (keys/values are
            # consumed in a permuted but consistent order, which softmax and
            # the attention-weighted sum are invariant to).  Never builds SxS.
            s_blk = [jax.lax.dot_general(a, kb, (((1,), (1,)), ((), ())),
                                         preferred_element_type=f32)
                     for kb in kh_blk]                            # H x (sg, sg)
            m = s_blk[0].max(axis=-1, keepdims=True)
            for sb in s_blk[1:]:
                m = jnp.maximum(m, sb.max(axis=-1, keepdims=True))
            e_blk = [jnp.exp(sb - m) for sb in s_blk]
            denom = e_blk[0].sum(axis=-1, keepdims=True)
            for eb in e_blk[1:]:
                denom = denom + eb.sum(axis=-1, keepdims=True)
            num = jnp.zeros((sg, dh), f32)
            for eb, vb in zip(e_blk, vh_blk):
                num = num + jnp.dot(eb.astype(bf16), vb,
                                    preferred_element_type=f32)
            ctx = num * pl.reciprocal(denom, approx=True)         # (sg, dh) f32
            # head merge fused into output projection:
            #   merged[r0:r0+sg, c*dh:(c+1)*dh] = ctx
            #   => proj_h += ctx @ Wo[c*dh:(c+1)*dh, :]
            proj_h = proj_h + jnp.dot(ctx.astype(bf16), wo_blk[c],
                                      preferred_element_type=f32)
        # Place head-h rows at [r0, r0+sg) with an exact 0/1 selector matmul
        # (avoids unaligned sub-stores / lane relayouts).
        sel = (rows == cols + r0).astype(f32)                     # (S, sg)
        proj = proj + jnp.dot(sel, proj_h, preferred_element_type=f32)

    def layer_norm(v, g_ref, b_ref, eps=1e-5):                    # f32 stats
        mu = jnp.mean(v, axis=-1, keepdims=True)
        var = jnp.mean((v - mu) ** 2, axis=-1, keepdims=True)
        return (v - mu) * jax.lax.rsqrt(var + eps) * g_ref[...] + b_ref[...]

    # ---- attention tail: out-proj bias + residual + LN1
    h1 = layer_norm(proj + bo_ref[...] + x, g1_ref, e1_ref)       # (S, D) f32
    # ---- position-wise FFN + residual + LN2
    f = jnp.dot(h1.astype(bf16), w1_ref[...],
                preferred_element_type=f32) + b1_ref[...]
    f = jnp.maximum(f, 0.0)
    y = jnp.dot(f.astype(bf16), w2_ref[...],
                preferred_element_type=f32) + b2_ref[...] + h1
    o_ref[...] = layer_norm(y, g2_ref, e2_ref).astype(o_ref.dtype)


# ------------------------------- wrapper ---------------------------------------
@functools.partial(jax.jit, static_argnums=(2,))
def encoder_forward(x, params, num_head):
    B, S, D = x.shape
    assert D % num_head == 0
    dim_head = D // num_head
    # TODO(synk): S % num_head != 0 needs a (slower) wrapper-reshape fallback;
    # the fused per-head row-block decomposition below assumes it divides.
    assert S % num_head == 0
    seq_h = S // num_head
    hidden = params['w1'].shape[0]
    scale = float(dim_head) ** -0.5
    bf16 = jnp.bfloat16

    # Pre-transpose Linear weights to (in, out); pack Q/K/V into one matmul;
    # cast the big matmul weights to bf16 once (halves weight HBM/VMEM
    # traffic).  Wo stays f32 because it is sliced per head-column in-kernel.
    wqkv = jnp.concatenate(
        [params['wq'].T, params['wk'].T, params['wv'].T], axis=1).astype(bf16)
    bqkv = jnp.concatenate([params['bq'], params['bk'], params['bv']], axis=1)
    wo = params['wo'].T.astype(jnp.float32)
    w1 = params['w1'].T.astype(bf16)
    w2 = params['w2'].T.astype(bf16)

    kernel = functools.partial(
        _encoder_kernel, num_head=num_head, seq=S, dim=D,
        dim_head=dim_head, seq_h=seq_h, scale=scale)

    def resident(shape):  # weights: same block every grid step -> stay in VMEM
        return pl.BlockSpec(shape, lambda b: (0,) * len(shape))

    return pl.pallas_call(
        kernel,
        out_shape=jax.ShapeDtypeStruct((B, S, D), x.dtype),
        grid=(B,),
        in_specs=[
            pl.BlockSpec((None, S, D), lambda b: (b, 0, 0)),   # x (one batch/step)
            resident((D, 3 * D)), resident((1, 3 * D)),        # packed QKV
            resident((D, D)), resident((1, D)),                # out proj
            resident((1, D)), resident((1, D)),                # LN1 gamma/beta
            resident((D, hidden)), resident((1, hidden)),      # FFN fc1
            resident((hidden, D)), resident((1, D)),           # FFN fc2
            resident((1, D)), resident((1, D)),                # LN2 gamma/beta
        ],
        out_specs=pl.BlockSpec((None, S, D), lambda b: (b, 0, 0)),
        compiler_params=pltpu.CompilerParams(
            dimension_semantics=("parallel",),          # megacore / v7x 2-TC
            vmem_limit_bytes=48 * 1024 * 1024),         # < 64 MiB v7x budget
    )(x, wqkv, bqkv, wo, params['bo'], params['ln1_g'], params['ln1_b'],
      w1, params['b1'], w2, params['b2'], params['ln2_g'], params['ln2_b'])


# --------------------------- pure-JAX reference ---------------------------------
def _encoder_reference(x, params, num_head):
    """f32 mirror of the PyTorch Encoder.forward (dropout p=0)."""
    B, S, D = x.shape
    dh = D // num_head

    def lin(v, w, b):
        return jnp.matmul(v, w.T) + b

    def ln(v, g, b, eps=1e-5):
        mu = jnp.mean(v, axis=-1, keepdims=True)
        var = jnp.mean((v - mu) ** 2, axis=-1, keepdims=True)
        return (v - mu) / jnp.sqrt(var + eps) * g + b

    q = lin(x, params['wq'], params['bq']).reshape(B * num_head, -1, dh)
    k = lin(x, params['wk'], params['bk']).reshape(B * num_head, -1, dh)
    v = lin(x, params['wv'], params['bv']).reshape(B * num_head, -1, dh)
    att = jax.nn.softmax(jnp.einsum('gqd,gkd->gqk', q, k) * dh ** -0.5, axis=-1)
    ctx = jnp.einsum('gqk,gkd->gqd', att, v).reshape(B, -1, D)
    h1 = ln(lin(ctx, params['wo'], params['bo']) + x,
            params['ln1_g'], params['ln1_b'])
    f = jax.nn.relu(lin(h1, params['w1'], params['b1']))
    y = lin(f, params['w2'], params['b2']) + h1
    return ln(y, params['ln2_g'], params['ln2_b'])


def init_params(key, dim_model, num_head, hidden):
    # deterministic PyTorch-style uniform(-1/sqrt(fan_in), 1/sqrt(fan_in)) init
    def linear_init(k, out_f, in_f):
        k1, k2 = jax.random.split(k)
        bound = 1.0 / (in_f ** 0.5)
        w = jax.random.uniform(k1, (out_f, in_f), jnp.float32, -bound, bound)
        b = jax.random.uniform(k2, (1, out_f), jnp.float32, -bound, bound)
        return w, b

    keys = jax.random.split(key, 6)
    wq, bq = linear_init(keys[0], dim_model, dim_model)
    wk, bk = linear_init(keys[1], dim_model, dim_model)
    wv, bv = linear_init(keys[2], dim_model, dim_model)
    wo, bo = linear_init(keys[3], dim_model, dim_model)
    w1, b1 = linear_init(keys[4], hidden, dim_model)
    w2, b2 = linear_init(keys[5], dim_model, hidden)
    return dict(
        wq=wq, bq=bq, wk=wk, bk=bk, wv=wv, bv=bv, wo=wo, bo=bo,
        w1=w1, b1=b1, w2=w2, b2=b2,
        ln1_g=jnp.ones((1, dim_model), jnp.float32),
        ln1_b=jnp.zeros((1, dim_model), jnp.float32),
        ln2_g=jnp.ones((1, dim_model), jnp.float32),
        ln2_b=jnp.zeros((1, dim_model), jnp.float32),
    )


if __name__ == "__main__":
    B, S = 2, 8
    dim_model, num_head, hidden = 32, 4, 64

    key = jax.random.PRNGKey(0)
    kx, kp = jax.random.split(key)
    x = jax.random.normal(kx, (B, S, dim_model), jnp.float32)
    params = init_params(kp, dim_model, num_head, hidden)

    out = jax.block_until_ready(encoder_forward(x, params, num_head))
    assert out.shape == (B, S, dim_model)

    # sanity check against the pure-JAX f32 reference (bf16 MXU tolerance)
    ref = _encoder_reference(x, params, num_head)
    max_err = float(jnp.max(jnp.abs(out - ref)))
    assert bool(jnp.allclose(out, ref, atol=1e-1, rtol=1e-1)), max_err
    print("KERNEL_OK")
</pallas_src>

<mosaic_0001>
module attributes {stable_mosaic.version = 11 : i64} {
  func.func @_encoder_kernel(%arg0: i32, %arg1: memref<1x8x32xf32, #tpu.memory_space<vmem>>, %arg2: memref<32x96xbf16, #tpu.memory_space<vmem>>, %arg3: memref<1x96xf32, #tpu.memory_space<vmem>>, %arg4: memref<32x32xf32, #tpu.memory_space<vmem>>, %arg5: memref<1x32xf32, #tpu.memory_space<vmem>>, %arg6: memref<1x32xf32, #tpu.memory_space<vmem>>, %arg7: memref<1x32xf32, #tpu.memory_space<vmem>>, %arg8: memref<32x64xbf16, #tpu.memory_space<vmem>>, %arg9: memref<1x64xf32, #tpu.memory_space<vmem>>, %arg10: memref<64x32xbf16, #tpu.memory_space<vmem>>, %arg11: memref<1x32xf32, #tpu.memory_space<vmem>>, %arg12: memref<1x32xf32, #tpu.memory_space<vmem>>, %arg13: memref<1x32xf32, #tpu.memory_space<vmem>>, %arg14: memref<1x8x32xf32, #tpu.memory_space<vmem>>) attributes {dimension_semantics = [#tpu.dimension_semantics<parallel>], iteration_bounds = array<i64: 2>, scalar_prefetch = 0 : i64, scratch_operands = 0 : i64, tpu.core_type = #tpu.core_type<tc>, window_params = [{transform_indices = @transform_0, window_bounds = array<i64: 1, 8, 32>}, {pipeline_mode = #tpu.pipeline_mode<synchronous>, transform_indices = @transform_1, window_bounds = array<i64: 32, 96>}, {pipeline_mode = #tpu.pipeline_mode<synchronous>, transform_indices = @transform_2, window_bounds = array<i64: 1, 96>}, {pipeline_mode = #tpu.pipeline_mode<synchronous>, transform_indices = @transform_3, window_bounds = array<i64: 32, 32>}, {pipeline_mode = #tpu.pipeline_mode<synchronous>, transform_indices = @transform_4, window_bounds = array<i64: 1, 32>}, {pipeline_mode = #tpu.pipeline_mode<synchronous>, transform_indices = @transform_5, window_bounds = array<i64: 1, 32>}, {pipeline_mode = #tpu.pipeline_mode<synchronous>, transform_indices = @transform_6, window_bounds = array<i64: 1, 32>}, {pipeline_mode = #tpu.pipeline_mode<synchronous>, transform_indices = @transform_7, window_bounds = array<i64: 32, 64>}, {pipeline_mode = #tpu.pipeline_mode<synchronous>, transform_indices = @transform_8, window_bounds = array<i64: 1, 64>}, {pipeline_mode = #tpu.pipeline_mode<synchronous>, transform_indices = @transform_9, window_bounds = array<i64: 64, 32>}, {pipeline_mode = #tpu.pipeline_mode<synchronous>, transform_indices = @transform_10, window_bounds = array<i64: 1, 32>}, {pipeline_mode = #tpu.pipeline_mode<synchronous>, transform_indices = @transform_11, window_bounds = array<i64: 1, 32>}, {pipeline_mode = #tpu.pipeline_mode<synchronous>, transform_indices = @transform_12, window_bounds = array<i64: 1, 32>}, {transform_indices = @transform_13, window_bounds = array<i64: 1, 8, 32>}]} {
    %c0 = arith.constant 0 : index
    %c0_0 = arith.constant 0 : index
    %c0_1 = arith.constant 0 : index
    %0 = vector.load %arg1[%c0, %c0_0, %c0_1] : memref<1x8x32xf32, #tpu.memory_space<vmem>>, vector<1x8x32xf32>
    %1 = vector.shape_cast %0 : vector<1x8x32xf32> to vector<8x32xf32>
    %2 = arith.truncf %1 : vector<8x32xf32> to vector<8x32xbf16>
    %c0_2 = arith.constant 0 : index
    %c0_3 = arith.constant 0 : index
    %3 = vector.load %arg2[%c0_2, %c0_3] : memref<32x96xbf16, #tpu.memory_space<vmem>>, vector<32x96xbf16>
    %cst = arith.constant dense<0.000000e+00> : vector<8x96xf32>
    %4 = tpu.matmul %2, %3, %cst {dimension_numbers = #tpu.dot_dimension_numbers<[1], [0], [0], [1], [0, 0, 1, 1], [], []>} : vector<8x32xbf16>, vector<32x96xbf16>, vector<8x96xf32> -> vector<8x96xf32>
    %c0_4 = arith.constant 0 : index
    %c0_5 = arith.constant 0 : index
    %5 = vector.load %arg3[%c0_4, %c0_5] : memref<1x96xf32, #tpu.memory_space<vmem>>, vector<1x96xf32>
    %6 = vector.broadcast %5 : vector<1x96xf32> to vector<8x96xf32>
    %7 = arith.addf %4, %6 : vector<8x96xf32>
    %8 = vector.extract_strided_slice %7 {offsets = [0, 0], sizes = [8, 32], strides = [1, 1]} : vector<8x96xf32> to vector<8x32xf32>
    %cst_6 = arith.constant 0.353553385 : f32
    %9 = vector.broadcast %cst_6 : f32 to vector<8x32xf32>
    %10 = arith.mulf %8, %9 : vector<8x32xf32>
    %11 = vector.extract_strided_slice %7 {offsets = [0, 32], sizes = [8, 32], strides = [1, 1]} : vector<8x96xf32> to vector<8x32xf32>
    %12 = vector.extract_strided_slice %7 {offsets = [0, 64], sizes = [8, 32], strides = [1, 1]} : vector<8x96xf32> to vector<8x32xf32>
    %c0_7 = arith.constant 0 : index
    %c0_8 = arith.constant 0 : index
    %13 = vector.load %arg4[%c0_7, %c0_8] : memref<32x32xf32, #tpu.memory_space<vmem>>, vector<32x32xf32>
    %14 = vector.extract_strided_slice %13 {offsets = [0, 0], sizes = [8, 32], strides = [1, 1]} : vector<32x32xf32> to vector<8x32xf32>
    %15 = arith.truncf %14 : vector<8x32xf32> to vector<8x32xbf16>
    %16 = vector.extract_strided_slice %13 {offsets = [8, 0], sizes = [8, 32], strides = [1, 1]} : vector<32x32xf32> to vector<8x32xf32>
    %17 = arith.truncf %16 : vector<8x32xf32> to vector<8x32xbf16>
    %18 = vector.extract_strided_slice %13 {offsets = [16, 0], sizes = [8, 32], strides = [1, 1]} : vector<32x32xf32> to vector<8x32xf32>
    %19 = arith.truncf %18 : vector<8x32xf32> to vector<8x32xbf16>
    %20 = vector.extract_strided_slice %13 {offsets = [24, 0], sizes = [8, 32], strides = [1, 1]} : vector<32x32xf32> to vector<8x32xf32>
    %21 = arith.truncf %20 : vector<8x32xf32> to vector<8x32xbf16>
    %22 = tpu.iota {dimensions = array<i32: 0>} : vector<8x2xi32>
    %23 = tpu.iota {dimensions = array<i32: 1>} : vector<8x2xi32>
    %cst_9 = arith.constant 0.000000e+00 : f32
    %24 = vector.broadcast %cst_9 : f32 to vector<8x32xf32>
    %25 = vector.extract_strided_slice %10 {offsets = [0, 0], sizes = [2, 32], strides = [1, 1]} : vector<8x32xf32> to vector<2x32xf32>
    %26 = vector.extract_strided_slice %11 {offsets = [0, 0], sizes = [2, 32], strides = [1, 1]} : vector<8x32xf32> to vector<2x32xf32>
    %27 = vector.extract_strided_slice %12 {offsets = [0, 0], sizes = [2, 32], strides = [1, 1]} : vector<8x32xf32> to vector<2x32xf32>
    %28 = vector.extract_strided_slice %26 {offsets = [0, 0], sizes = [2, 8], strides = [1, 1]} : vector<2x32xf32> to vector<2x8xf32>
    %29 = arith.truncf %28 : vector<2x8xf32> to vector<2x8xbf16>
    %30 = vector.extract_strided_slice %26 {offsets = [0, 8], sizes = [2, 8], strides = [1, 1]} : vector<2x32xf32> to vector<2x8xf32>
    %31 = arith.truncf %30 : vector<2x8xf32> to vector<2x8xbf16>
    %32 = vector.extract_strided_slice %26 {offsets = [0, 16], sizes = [2, 8], strides = [1, 1]} : vector<2x32xf32> to vector<2x8xf32>
    %33 = arith.truncf %32 : vector<2x8xf32> to vector<2x8xbf16>
    %34 = vector.extract_strided_slice %26 {offsets = [0, 24], sizes = [2, 8], strides = [1, 1]} : vector<2x32xf32> to vector<2x8xf32>
    %35 = arith.truncf %34 : vector<2x8xf32> to vector<2x8xbf16>
    %36 = vector.extract_strided_slice %27 {offsets = [0, 0], sizes = [2, 8], strides = [1, 1]} : vector<2x32xf32> to vector<2x8xf32>
    %37 = arith.truncf %36 : vector<2x8xf32> to vector<2x8xbf16>
    %38 = vector.extract_strided_slice %27 {offsets = [0, 8], sizes = [2, 8], strides = [1, 1]} : vector<2x32xf32> to vector<2x8xf32>
    %39 = arith.truncf %38 : vector<2x8xf32> to vector<2x8xbf16>
    %40 = vector.extract_strided_slice %27 {offsets = [0, 16], sizes = [2, 8], strides = [1, 1]} : vector<2x32xf32> to vector<2x8xf32>
    %41 = arith.truncf %40 : vector<2x8xf32> to vector<2x8xbf16>
    %42 = vector.extract_strided_slice %27 {offsets = [0, 24], sizes = [2, 8], strides = [1, 1]} : vector<2x32xf32> to vector<2x8xf32>
    %43 = arith.truncf %42 : vector<2x8xf32> to vector<2x8xbf16>
    %cst_10 = arith.constant 0.000000e+00 : f32
    %44 = vector.broadcast %cst_10 : f32 to vector<2x32xf32>
    %45 = vector.extract_strided_slice %25 {offsets = [0, 0], sizes = [2, 8], strides = [1, 1]} : vector<2x32xf32> to vector<2x8xf32>
    %46 = arith.truncf %45 : vector<2x8xf32> to vector<2x8xbf16>
    %cst_11 = arith.constant dense<0.000000e+00> : vector<2x2xf32>
    %47 = tpu.matmul %46, %29, %cst_11 {dimension_numbers = #tpu.dot_dimension_numbers<[1], [1], [0], [0], [0, 0, 1, 0], [], []>} : vector<2x8xbf16>, vector<2x8xbf16>, vector<2x2xf32> -> vector<2x2xf32>
    %cst_12 = arith.constant dense<0.000000e+00> : vector<2x2xf32>
    %48 = tpu.matmul %46, %31, %cst_12 {dimension_numbers = #tpu.dot_dimension_numbers<[1], [1], [0], [0], [0, 0, 1, 0], [], []>} : vector<2x8xbf16>, vector<2x8xbf16>, vector<2x2xf32> -> vector<2x2xf32>
    %cst_13 = arith.constant dense<0.000000e+00> : vector<2x2xf32>
    %49 = tpu.matmul %46, %33, %cst_13 {dimension_numbers = #tpu.dot_dimension_numbers<[1], [1], [0], [0], [0, 0, 1, 0], [], []>} : vector<2x8xbf16>, vector<2x8xbf16>, vector<2x2xf32> -> vector<2x2xf32>
    %cst_14 = arith.constant dense<0.000000e+00> : vector<2x2xf32>
    %50 = tpu.matmul %46, %35, %cst_14 {dimension_numbers = #tpu.dot_dimension_numbers<[1], [1], [0], [0], [0, 0, 1, 0], [], []>} : vector<2x8xbf16>, vector<2x8xbf16>, vector<2x2xf32> -> vector<2x2xf32>
    %cst_15 = arith.constant dense<0xFF800000> : vector<2xf32>
    %51 = vector.multi_reduction <maximumf>, %47, %cst_15 [1] : vector<2x2xf32> to vector<2xf32>
    %52 = vector.shape_cast %51 : vector<2xf32> to vector<2x1xf32>
    %cst_16 = arith.constant dense<0xFF800000> : vector<2xf32>
    %53 = vector.multi_reduction <maximumf>, %48, %cst_16 [1] : vector<2x2xf32> to vector<2xf32>
    %54 = vector.shape_cast %53 : vector<2xf32> to vector<2x1xf32>
    %55 = arith.maximumf %52, %54 : vector<2x1xf32>
    %cst_17 = arith.constant dense<0xFF800000> : vector<2xf32>
    %56 = vector.multi_reduction <maximumf>, %49, %cst_17 [1] : vector<2x2xf32> to vector<2xf32>
    %57 = vector.shape_cast %56 : vector<2xf32> to vector<2x1xf32>
    %58 = arith.maximumf %55, %57 : vector<2x1xf32>
    %cst_18 = arith.constant dense<0xFF800000> : vector<2xf32>
    %59 = vector.multi_reduction <maximumf>, %50, %cst_18 [1] : vector<2x2xf32> to vector<2xf32>
    %60 = vector.shape_cast %59 : vector<2xf32> to vector<2x1xf32>
    %61 = arith.maximumf %58, %60 : vector<2x1xf32>
    %62 = vector.broadcast %61 : vector<2x1xf32> to vector<2x2xf32>
    %63 = arith.subf %47, %62 : vector<2x2xf32>
    %64 = math.exp %63 : vector<2x2xf32>
    %65 = vector.broadcast %61 : vector<2x1xf32> to vector<2x2xf32>
    %66 = arith.subf %48, %65 : vector<2x2xf32>
    %67 = math.exp %66 : vector<2x2xf32>
    %68 = vector.broadcast %61 : vector<2x1xf32> to vector<2x2xf32>
    %69 = arith.subf %49, %68 : vector<2x2xf32>
    %70 = math.exp %69 : vector<2x2xf32>
    %71 = vector.broadcast %61 : vector<2x1xf32> to vector<2x2xf32>
    %72 = arith.subf %50, %71 : vector<2x2xf32>
    %73 = math.exp %72 : vector<2x2xf32>
    %cst_19 = arith.constant dense<0.000000e+00> : vector<2xf32>
    %74 = vector.multi_reduction <add>, %64, %cst_19 [1] : vector<2x2xf32> to vector<2xf32>
    %75 = vector.shape_cast %74 : vector<2xf32> to vector<2x1xf32>
    %cst_20 = arith.constant dense<0.000000e+00> : vector<2xf32>
    %76 = vector.multi_reduction <add>, %67, %cst_20 [1] : vector<2x2xf32> to vector<2xf32>
    %77 = vector.shape_cast %76 : vector<2xf32> to vector<2x1xf32>
    %78 = arith.addf %75, %77 : vector<2x1xf32>
    %cst_21 = arith.constant dense<0.000000e+00> : vector<2xf32>
    %79 = vector.multi_reduction <add>, %70, %cst_21 [1] : vector<2x2xf32> to vector<2xf32>
    %80 = vector.shape_cast %79 : vector<2xf32> to vector<2x1xf32>
    %81 = arith.addf %78, %80 : vector<2x1xf32>
    %cst_22 = arith.constant dense<0.000000e+00> : vector<2xf32>
    %82 = vector.multi_reduction <add>, %73, %cst_22 [1] : vector<2x2xf32> to vector<2xf32>
    %83 = vector.shape_cast %82 : vector<2xf32> to vector<2x1xf32>
    %84 = arith.addf %81, %83 : vector<2x1xf32>
    %cst_23 = arith.constant 0.000000e+00 : f32
    %85 = vector.broadcast %cst_23 : f32 to vector<2x8xf32>
    %86 = arith.truncf %64 : vector<2x2xf32> to vector<2x2xbf16>
    %cst_24 = arith.constant dense<0.000000e+00> : vector<2x8xf32>
    %87 = tpu.matmul %86, %37, %cst_24 {dimension_numbers = #tpu.dot_dimension_numbers<[1], [0], [0], [1], [0, 0, 1, 1], [], []>} : vector<2x2xbf16>, vector<2x8xbf16>, vector<2x8xf32> -> vector<2x8xf32>
    %88 = arith.addf %85, %87 : vector<2x8xf32>
    %89 = arith.truncf %67 : vector<2x2xf32> to vector<2x2xbf16>
    %cst_25 = arith.constant dense<0.000000e+00> : vector<2x8xf32>
    %90 = tpu.matmul %89, %39, %cst_25 {dimension_numbers = #tpu.dot_dimension_numbers<[1], [0], [0], [1], [0, 0, 1, 1], [], []>} : vector<2x2xbf16>, vector<2x8xbf16>, vector<2x8xf32> -> vector<2x8xf32>
    %91 = arith.addf %88, %90 : vector<2x8xf32>
    %92 = arith.truncf %70 : vector<2x2xf32> to vector<2x2xbf16>
    %cst_26 = arith.constant dense<0.000000e+00> : vector<2x8xf32>
    %93 = tpu.matmul %92, %41, %cst_26 {dimension_numbers = #tpu.dot_dimension_numbers<[1], [0], [0], [1], [0, 0, 1, 1], [], []>} : vector<2x2xbf16>, vector<2x8xbf16>, vector<2x8xf32> -> vector<2x8xf32>
    %94 = arith.addf %91, %93 : vector<2x8xf32>
    %95 = arith.truncf %73 : vector<2x2xf32> to vector<2x2xbf16>
    %cst_27 = arith.constant dense<0.000000e+00> : vector<2x8xf32>
    %96 = tpu.matmul %95, %43, %cst_27 {dimension_numbers = #tpu.dot_dimension_numbers<[1], [0], [0], [1], [0, 0, 1, 1], [], []>} : vector<2x2xbf16>, vector<2x8xbf16>, vector<2x8xf32> -> vector<2x8xf32>
    %97 = arith.addf %94, %96 : vector<2x8xf32>
    %98 = tpu.reciprocal %84 {approx = true} : vector<2x1xf32> -> vector<2x1xf32>
    %99 = vector.broadcast %98 : vector<2x1xf32> to vector<2x8xf32>
    %100 = arith.mulf %97, %99 : vector<2x8xf32>
    %101 = arith.truncf %100 : vector<2x8xf32> to vector<2x8xbf16>
    %cst_28 = arith.constant dense<0.000000e+00> : vector<2x32xf32>
    %102 = tpu.matmul %101, %15, %cst_28 {dimension_numbers = #tpu.dot_dimension_numbers<[1], [0], [0], [1], [0, 0, 1, 1], [], []>} : vector<2x8xbf16>, vector<8x32xbf16>, vector<2x32xf32> -> vector<2x32xf32>
    %103 = arith.addf %44, %102 : vector<2x32xf32>
    %104 = vector.extract_strided_slice %25 {offsets = [0, 8], sizes = [2, 8], strides = [1, 1]} : vector<2x32xf32> to vector<2x8xf32>
    %105 = arith.truncf %104 : vector<2x8xf32> to vector<2x8xbf16>
    %cst_29 = arith.constant dense<0.000000e+00> : vector<2x2xf32>
    %106 = tpu.matmul %105, %29, %cst_29 {dimension_numbers = #tpu.dot_dimension_numbers<[1], [1], [0], [0], [0, 0, 1, 0], [], []>} : vector<2x8xbf16>, vector<2x8xbf16>, vector<2x2xf32> -> vector<2x2xf32>
    %cst_30 = arith.constant dense<0.000000e+00> : vector<2x2xf32>
    %107 = tpu.matmul %105, %31, %cst_30 {dimension_numbers = #tpu.dot_dimension_numbers<[1], [1], [0], [0], [0, 0, 1, 0], [], []>} : vector<2x8xbf16>, vector<2x8xbf16>, vector<2x2xf32> -> vector<2x2xf32>
    %cst_31 = arith.constant dense<0.000000e+00> : vector<2x2xf32>
    %108 = tpu.matmul %105, %33, %cst_31 {dimension_numbers = #tpu.dot_dimension_numbers<[1], [1], [0], [0], [0, 0, 1, 0], [], []>} : vector<2x8xbf16>, vector<2x8xbf16>, vector<2x2xf32> -> vector<2x2xf32>
    %cst_32 = arith.constant dense<0.000000e+00> : vector<2x2xf32>
    %109 = tpu.matmul %105, %35, %cst_32 {dimension_numbers = #tpu.dot_dimension_numbers<[1], [1], [0], [0], [0, 0, 1, 0], [], []>} : vector<2x8xbf16>, vector<2x8xbf16>, vector<2x2xf32> -> vector<2x2xf32>
    %cst_33 = arith.constant dense<0xFF800000> : vector<2xf32>
    %110 = vector.multi_reduction <maximumf>, %106, %cst_33 [1] : vector<2x2xf32> to vector<2xf32>
    %111 = vector.shape_cast %110 : vector<2xf32> to vector<2x1xf32>
    %cst_34 = arith.constant dense<0xFF800000> : vector<2xf32>
    %112 = vector.multi_reduction <maximumf>, %107, %cst_34 [1] : vector<2x2xf32> to vector<2xf32>
    %113 = vector.shape_cast %112 : vector<2xf32> to vector<2x1xf32>
    %114 = arith.maximumf %111, %113 : vector<2x1xf32>
    %cst_35 = arith.constant dense<0xFF800000> : vector<2xf32>
    %115 = vector.multi_reduction <maximumf>, %108, %cst_35 [1] : vector<2x2xf32> to vector<2xf32>
    %116 = vector.shape_cast %115 : vector<2xf32> to vector<2x1xf32>
    %117 = arith.maximumf %114, %116 : vector<2x1xf32>
    %cst_36 = arith.constant dense<0xFF800000> : vector<2xf32>
    %118 = vector.multi_reduction <maximumf>, %109, %cst_36 [1] : vector<2x2xf32> to vector<2xf32>
    %119 = vector.shape_cast %118 : vector<2xf32> to vector<2x1xf32>
    %120 = arith.maximumf %117, %119 : vector<2x1xf32>
    %121 = vector.broadcast %120 : vector<2x1xf32> to vector<2x2xf32>
    %122 = arith.subf %106, %121 : vector<2x2xf32>
    %123 = math.exp %122 : vector<2x2xf32>
    %124 = vector.broadcast %120 : vector<2x1xf32> to vector<2x2xf32>
    %125 = arith.subf %107, %124 : vector<2x2xf32>
    %126 = math.exp %125 : vector<2x2xf32>
    %127 = vector.broadcast %120 : vector<2x1xf32> to vector<2x2xf32>
    %128 = arith.subf %108, %127 : vector<2x2xf32>
    %129 = math.exp %128 : vector<2x2xf32>
    %130 = vector.broadcast %120 : vector<2x1xf32> to vector<2x2xf32>
    %131 = arith.subf %109, %130 : vector<2x2xf32>
    %132 = math.exp %131 : vector<2x2xf32>
    %cst_37 = arith.constant dense<0.000000e+00> : vector<2xf32>
    %133 = vector.multi_reduction <add>, %123, %cst_37 [1] : vector<2x2xf32> to vector<2xf32>
    %134 = vector.shape_cast %133 : vector<2xf32> to vector<2x1xf32>
    %cst_38 = arith.constant dense<0.000000e+00> : vector<2xf32>
    %135 = vector.multi_reduction <add>, %126, %cst_38 [1] : vector<2x2xf32> to vector<2xf32>
    %136 = vector.shape_cast %135 : vector<2xf32> to vector<2x1xf32>
    %137 = arith.addf %134, %136 : vector<2x1xf32>
    %cst_39 = arith.constant dense<0.000000e+00> : vector<2xf32>
    %138 = vector.multi_reduction <add>, %129, %cst_39 [1] : vector<2x2xf32> to vector<2xf32>
    %139 = vector.shape_cast %138 : vector<2xf32> to vector<2x1xf32>
    %140 = arith.addf %137, %139 : vector<2x1xf32>
    %cst_40 = arith.constant dense<0.000000e+00> : vector<2xf32>
    %141 = vector.multi_reduction <add>, %132, %cst_40 [1] : vector<2x2xf32> to vector<2xf32>
    %142 = vector.shape_cast %141 : vector<2xf32> to vector<2x1xf32>
    %143 = arith.addf %140, %142 : vector<2x1xf32>
    %cst_41 = arith.constant 0.000000e+00 : f32
    %144 = vector.broadcast %cst_41 : f32 to vector<2x8xf32>
    %145 = arith.truncf %123 : vector<2x2xf32> to vector<2x2xbf16>
    %cst_42 = arith.constant dense<0.000000e+00> : vector<2x8xf32>
    %146 = tpu.matmul %145, %37, %cst_42 {dimension_numbers = #tpu.dot_dimension_numbers<[1], [0], [0], [1], [0, 0, 1, 1], [], []>} : vector<2x2xbf16>, vector<2x8xbf16>, vector<2x8xf32> -> vector<2x8xf32>
    %147 = arith.addf %144, %146 : vector<2x8xf32>
    %148 = arith.truncf %126 : vector<2x2xf32> to vector<2x2xbf16>
    %cst_43 = arith.constant dense<0.000000e+00> : vector<2x8xf32>
    %149 = tpu.matmul %148, %39, %cst_43 {dimension_numbers = #tpu.dot_dimension_numbers<[1], [0], [0], [1], [0, 0, 1, 1], [], []>} : vector<2x2xbf16>, vector<2x8xbf16>, vector<2x8xf32> -> vector<2x8xf32>
    %150 = arith.addf %147, %149 : vector<2x8xf32>
    %151 = arith.truncf %129 : vector<2x2xf32> to vector<2x2xbf16>
    %cst_44 = arith.constant dense<0.000000e+00> : vector<2x8xf32>
    %152 = tpu.matmul %151, %41, %cst_44 {dimension_numbers = #tpu.dot_dimension_numbers<[1], [0], [0], [1], [0, 0, 1, 1], [], []>} : vector<2x2xbf16>, vector<2x8xbf16>, vector<2x8xf32> -> vector<2x8xf32>
    %153 = arith.addf %150, %152 : vector<2x8xf32>
    %154 = arith.truncf %132 : vector<2x2xf32> to vector<2x2xbf16>
    %cst_45 = arith.constant dense<0.000000e+00> : vector<2x8xf32>
    %155 = tpu.matmul %154, %43, %cst_45 {dimension_numbers = #tpu.dot_dimension_numbers<[1], [0], [0], [1], [0, 0, 1, 1], [], []>} : vector<2x2xbf16>, vector<2x8xbf16>, vector<2x8xf32> -> vector<2x8xf32>
    %156 = arith.addf %153, %155 : vector<2x8xf32>
    %157 = tpu.reciprocal %143 {approx = true} : vector<2x1xf32> -> vector<2x1xf32>
    %158 = vector.broadcast %157 : vector<2x1xf32> to vector<2x8xf32>
    %159 = arith.mulf %156, %158 : vector<2x8xf32>
    %160 = arith.truncf %159 : vector<2x8xf32> to vector<2x8xbf16>
    %cst_46 = arith.constant dense<0.000000e+00> : vector<2x32xf32>
    %161 = tpu.matmul %160, %17, %cst_46 {dimension_numbers = #tpu.dot_dimension_numbers<[1], [0], [0], [1], [0, 0, 1, 1], [], []>} : vector<2x8xbf16>, vector<8x32xbf16>, vector<2x32xf32> -> vector<2x32xf32>
    %162 = arith.addf %103, %161 : vector<2x32xf32>
    %163 = vector.extract_strided_slice %25 {offsets = [0, 16], sizes = [2, 8], strides = [1, 1]} : vector<2x32xf32> to vector<2x8xf32>
    %164 = arith.truncf %163 : vector<2x8xf32> to vector<2x8xbf16>
    %cst_47 = arith.constant dense<0.000000e+00> : vector<2x2xf32>
    %165 = tpu.matmul %164, %29, %cst_47 {dimension_numbers = #tpu.dot_dimension_numbers<[1], [1], [0], [0], [0, 0, 1, 0], [], []>} : vector<2x8xbf16>, vector<2x8xbf16>, vector<2x2xf32> -> vector<2x2xf32>
    %cst_48 = arith.constant dense<0.000000e+00> : vector<2x2xf32>
    %166 = tpu.matmul %164, %31, %cst_48 {dimension_numbers = #tpu.dot_dimension_numbers<[1], [1], [0], [0], [0, 0, 1, 0], [], []>} : vector<2x8xbf16>, vector<2x8xbf16>, vector<2x2xf32> -> vector<2x2xf32>
    %cst_49 = arith.constant dense<0.000000e+00> : vector<2x2xf32>
    %167 = tpu.matmul %164, %33, %cst_49 {dimension_numbers = #tpu.dot_dimension_numbers<[1], [1], [0], [0], [0, 0, 1, 0], [], []>} : vector<2x8xbf16>, vector<2x8xbf16>, vector<2x2xf32> -> vector<2x2xf32>
    %cst_50 = arith.constant dense<0.000000e+00> : vector<2x2xf32>
    %168 = tpu.matmul %164, %35, %cst_50 {dimension_numbers = #tpu.dot_dimension_numbers<[1], [1], [0], [0], [0, 0, 1, 0], [], []>} : vector<2x8xbf16>, vector<2x8xbf16>, vector<2x2xf32> -> vector<2x2xf32>
    %cst_51 = arith.constant dense<0xFF800000> : vector<2xf32>
    %169 = vector.multi_reduction <maximumf>, %165, %cst_51 [1] : vector<2x2xf32> to vector<2xf32>
    %170 = vector.shape_cast %169 : vector<2xf32> to vector<2x1xf32>
    %cst_52 = arith.constant dense<0xFF800000> : vector<2xf32>
    %171 = vector.multi_reduction <maximumf>, %166, %cst_52 [1] : vector<2x2xf32> to vector<2xf32>
    %172 = vector.shape_cast %171 : vector<2xf32> to vector<2x1xf32>
    %173 = arith.maximumf %170, %172 : vector<2x1xf32>
    %cst_53 = arith.constant dense<0xFF800000> : vector<2xf32>
    %174 = vector.multi_reduction <maximumf>, %167, %cst_53 [1] : vector<2x2xf32> to vector<2xf32>
    %175 = vector.shape_cast %174 : vector<2xf32> to vector<2x1xf32>
    %176 = arith.maximumf %173, %175 : vector<2x1xf32>
    %cst_54 = arith.constant dense<0xFF800000> : vector<2xf32>
    %177 = vector.multi_reduction <maximumf>, %168, %cst_54 [1] : vector<2x2xf32> to vector<2xf32>
    %178 = vector.shape_cast %177 : vector<2xf32> to vector<2x1xf32>
    %179 = arith.maximumf %176, %178 : vector<2x1xf32>
    %180 = vector.broadcast %179 : vector<2x1xf32> to vector<2x2xf32>
    %181 = arith.subf %165, %180 : vector<2x2xf32>
    %182 = math.exp %181 : vector<2x2xf32>
    %183 = vector.broadcast %179 : vector<2x1xf32> to vector<2x2xf32>
    %184 = arith.subf %166, %183 : vector<2x2xf32>
    %185 = math.exp %184 : vector<2x2xf32>
    %186 = vector.broadcast %179 : vector<2x1xf32> to vector<2x2xf32>
    %187 = arith.subf %167, %186 : vector<2x2xf32>
    %188 = math.exp %187 : vector<2x2xf32>
    %189 = vector.broadcast %179 : vector<2x1xf32> to vector<2x2xf32>
    %190 = arith.subf %168, %189 : vector<2x2xf32>
    %191 = math.exp %190 : vector<2x2xf32>
    %cst_55 = arith.constant dense<0.000000e+00> : vector<2xf32>
    %192 = vector.multi_reduction <add>, %182, %cst_55 [1] : vector<2x2xf32> to vector<2xf32>
    %193 = vector.shape_cast %192 : vector<2xf32> to vector<2x1xf32>
    %cst_56 = arith.constant dense<0.000000e+00> : vector<2xf32>
    %194 = vector.multi_reduction <add>, %185, %cst_56 [1] : vector<2x2xf32> to vector<2xf32>
    %195 = vector.shape_cast %194 : vector<2xf32> to vector<2x1xf32>
    %196 = arith.addf %193, %195 : vector<2x1xf32>
    %cst_57 = arith.constant dense<0.000000e+00> : vector<2xf32>
    %197 = vector.multi_reduction <add>, %188, %cst_57 [1] : vector<2x2xf32> to vector<2xf32>
    %198 = vector.shape_cast %197 : vector<2xf32> to vector<2x1xf32>
    %199 = arith.addf %196, %198 : vector<2x1xf32>
    %cst_58 = arith.constant dense<0.000000e+00> : vector<2xf32>
    %200 = vector.multi_reduction <add>, %191, %cst_58 [1] : vector<2x2xf32> to vector<2xf32>
    %201 = vector.shape_cast %200 : vector<2xf32> to vector<2x1xf32>
    %202 = arith.addf %199, %201 : vector<2x1xf32>
    %cst_59 = arith.constant 0.000000e+00 : f32
    %203 = vector.broadcast %cst_59 : f32 to vector<2x8xf32>
    %204 = arith.truncf %182 : vector<2x2xf32> to vector<2x2xbf16>
    %cst_60 = arith.constant dense<0.000000e+00> : vector<2x8xf32>
    %205 = tpu.matmul %204, %37, %cst_60 {dimension_numbers = #tpu.dot_dimension_numbers<[1], [0], [0], [1], [0, 0, 1, 1], [], []>} : vector<2x2xbf16>, vector<2x8xbf16>, vector<2x8xf32> -> vector<2x8xf32>
    %206 = arith.addf %203, %205 : vector<2x8xf32>
    %207 = arith.truncf %185 : vector<2x2xf32> to vector<2x2xbf16>
    %cst_61 = arith.constant dense<0.000000e+00> : vector<2x8xf32>
    %208 = tpu.matmul %207, %39, %cst_61 {dimension_numbers = #tpu.dot_dimension_numbers<[1], [0], [0], [1], [0, 0, 1, 1], [], []>} : vector<2x2xbf16>, vector<2x8xbf16>, vector<2x8xf32> -> vector<2x8xf32>
    %209 = arith.addf %206, %208 : vector<2x8xf32>
    %210 = arith.truncf %188 : vector<2x2xf32> to vector<2x2xbf16>
    %cst_62 = arith.constant dense<0.000000e+00> : vector<2x8xf32>
    %211 = tpu.matmul %210, %41, %cst_62 {dimension_numbers = #tpu.dot_dimension_numbers<[1], [0], [0], [1], [0, 0, 1, 1], [], []>} : vector<2x2xbf16>, vector<2x8xbf16>, vector<2x8xf32> -> vector<2x8xf32>
    %212 = arith.addf %209, %211 : vector<2x8xf32>
    %213 = arith.truncf %191 : vector<2x2xf32> to vector<2x2xbf16>
    %cst_63 = arith.constant dense<0.000000e+00> : vector<2x8xf32>
    %214 = tpu.matmul %213, %43, %cst_63 {dimension_numbers = #tpu.dot_dimension_numbers<[1], [0], [0], [1], [0, 0, 1, 1], [], []>} : vector<2x2xbf16>, vector<2x8xbf16>, vector<2x8xf32> -> vector<2x8xf32>
    %215 = arith.addf %212, %214 : vector<2x8xf32>
    %216 = tpu.reciprocal %202 {approx = true} : vector<2x1xf32> -> vector<2x1xf32>
    %217 = vector.broadcast %216 : vector<2x1xf32> to vector<2x8xf32>
    %218 = arith.mulf %215, %217 : vector<2x8xf32>
    %219 = arith.truncf %218 : vector<2x8xf32> to vector<2x8xbf16>
    %cst_64 = arith.constant dense<0.000000e+00> : vector<2x32xf32>
    %220 = tpu.matmul %219, %19, %cst_64 {dimension_numbers = #tpu.dot_dimension_numbers<[1], [0], [0], [1], [0, 0, 1, 1], [], []>} : vector<2x8xbf16>, vector<8x32xbf16>, vector<2x32xf32> -> vector<2x32xf32>
    %221 = arith.addf %162, %220 : vector<2x32xf32>
    %222 = vector.extract_strided_slice %25 {offsets = [0, 24], sizes = [2, 8], strides = [1, 1]} : vector<2x32xf32> to vector<2x8xf32>
    %223 = arith.truncf %222 : vector<2x8xf32> to vector<2x8xbf16>
    %cst_65 = arith.constant dense<0.000000e+00> : vector<2x2xf32>
    %224 = tpu.matmul %223, %29, %cst_65 {dimension_numbers = #tpu.dot_dimension_numbers<[1], [1], [0], [0], [0, 0, 1, 0], [], []>} : vector<2x8xbf16>, vector<2x8xbf16>, vector<2x2xf32> -> vector<2x2xf32>
    %cst_66 = arith.constant dense<0.000000e+00> : vector<2x2xf32>
    %225 = tpu.matmul %223, %31, %cst_66 {dimension_numbers = #tpu.dot_dimension_numbers<[1], [1], [0], [0], [0, 0, 1, 0], [], []>} : vector<2x8xbf16>, vector<2x8xbf16>, vector<2x2xf32> -> vector<2x2xf32>
    %cst_67 = arith.constant dense<0.000000e+00> : vector<2x2xf32>
    %226 = tpu.matmul %223, %33, %cst_67 {dimension_numbers = #tpu.dot_dimension_numbers<[1], [1], [0], [0], [0, 0, 1, 0], [], []>} : vector<2x8xbf16>, vector<2x8xbf16>, vector<2x2xf32> -> vector<2x2xf32>
    %cst_68 = arith.constant dense<0.000000e+00> : vector<2x2xf32>
    %227 = tpu.matmul %223, %35, %cst_68 {dimension_numbers = #tpu.dot_dimension_numbers<[1], [1], [0], [0], [0, 0, 1, 0], [], []>} : vector<2x8xbf16>, vector<2x8xbf16>, vector<2x2xf32> -> vector<2x2xf32>
    %cst_69 = arith.constant dense<0xFF800000> : vector<2xf32>
    %228 = vector.multi_reduction <maximumf>, %224, %cst_69 [1] : vector<2x2xf32> to vector<2xf32>
    %229 = vector.shape_cast %228 : vector<2xf32> to vector<2x1xf32>
    %cst_70 = arith.constant dense<0xFF800000> : vector<2xf32>
    %230 = vector.multi_reduction <maximumf>, %225, %cst_70 [1] : vector<2x2xf32> to vector<2xf32>
    %231 = vector.shape_cast %230 : vector<2xf32> to vector<2x1xf32>
    %232 = arith.maximumf %229, %231 : vector<2x1xf32>
    %cst_71 = arith.constant dense<0xFF800000> : vector<2xf32>
    %233 = vector.multi_reduction <maximumf>, %226, %cst_71 [1] : vector<2x2xf32> to vector<2xf32>
    %234 = vector.shape_cast %233 : vector<2xf32> to vector<2x1xf32>
    %235 = arith.maximumf %232, %234 : vector<2x1xf32>
    %cst_72 = arith.constant dense<0xFF800000> : vector<2xf32>
    %236 = vector.multi_reduction <maximumf>, %227, %cst_72 [1] : vector<2x2xf32> to vector<2xf32>
    %237 = vector.shape_cast %236 : vector<2xf32> to vector<2x1xf32>
    %238 = arith.maximumf %235, %237 : vector<2x1xf32>
    %239 = vector.broadcast %238 : vector<2x1xf32> to vector<2x2xf32>
    %240 = arith.subf %224, %239 : vector<2x2xf32>
    %241 = math.exp %240 : vector<2x2xf32>
    %242 = vector.broadcast %238 : vector<2x1xf32> to vector<2x2xf32>
    %243 = arith.subf %225, %242 : vector<2x2xf32>
    %244 = math.exp %243 : vector<2x2xf32>
    %245 = vector.broadcast %238 : vector<2x1xf32> to vector<2x2xf32>
    %246 = arith.subf %226, %245 : vector<2x2xf32>
    %247 = math.exp %246 : vector<2x2xf32>
    %248 = vector.broadcast %238 : vector<2x1xf32> to vector<2x2xf32>
    %249 = arith.subf %227, %248 : vector<2x2xf32>
    %250 = math.exp %249 : vector<2x2xf32>
    %cst_73 = arith.constant dense<0.000000e+00> : vector<2xf32>
    %251 = vector.multi_reduction <add>, %241, %cst_73 [1] : vector<2x2xf32> to vector<2xf32>
    %252 = vector.shape_cast %251 : vector<2xf32> to vector<2x1xf32>
    %cst_74 = arith.constant dense<0.000000e+00> : vector<2xf32>
    %253 = vector.multi_reduction <add>, %244, %cst_74 [1] : vector<2x2xf32> to vector<2xf32>
    %254 = vector.shape_cast %253 : vector<2xf32> to vector<2x1xf32>
    %255 = arith.addf %252, %254 : vector<2x1xf32>
    %cst_75 = arith.constant dense<0.000000e+00> : vector<2xf32>
    %256 = vector.multi_reduction <add>, %247, %cst_75 [1] : vector<2x2xf32> to vector<2xf32>
    %257 = vector.shape_cast %256 : vector<2xf32> to vector<2x1xf32>
    %258 = arith.addf %255, %257 : vector<2x1xf32>
    %cst_76 = arith.constant dense<0.000000e+00> : vector<2xf32>
    %259 = vector.multi_reduction <add>, %250, %cst_76 [1] : vector<2x2xf32> to vector<2xf32>
    %260 = vector.shape_cast %259 : vector<2xf32> to vector<2x1xf32>
    %261 = arith.addf %258, %260 : vector<2x1xf32>
    %cst_77 = arith.constant 0.000000e+00 : f32
    %262 = vector.broadcast %cst_77 : f32 to vector<2x8xf32>
    %263 = arith.truncf %241 : vector<2x2xf32> to vector<2x2xbf16>
    %cst_78 = arith.constant dense<0.000000e+00> : vector<2x8xf32>
    %264 = tpu.matmul %263, %37, %cst_78 {dimension_numbers = #tpu.dot_dimension_numbers<[1], [0], [0], [1], [0, 0, 1, 1], [], []>} : vector<2x2xbf16>, vector<2x8xbf16>, vector<2x8xf32> -> vector<2x8xf32>
    %265 = arith.addf %262, %264 : vector<2x8xf32>
    %266 = arith.truncf %244 : vector<2x2xf32> to vector<2x2xbf16>
    %cst_79 = arith.constant dense<0.000000e+00> : vector<2x8xf32>
    %267 = tpu.matmul %266, %39, %cst_79 {dimension_numbers = #tpu.dot_dimension_numbers<[1], [0], [0], [1], [0, 0, 1, 1], [], []>} : vector<2x2xbf16>, vector<2x8xbf16>, vector<2x8xf32> -> vector<2x8xf32>
    %268 = arith.addf %265, %267 : vector<2x8xf32>
    %269 = arith.truncf %247 : vector<2x2xf32> to vector<2x2xbf16>
    %cst_80 = arith.constant dense<0.000000e+00> : vector<2x8xf32>
    %270 = tpu.matmul %269, %41, %cst_80 {dimension_numbers = #tpu.dot_dimension_numbers<[1], [0], [0], [1], [0, 0, 1, 1], [], []>} : vector<2x2xbf16>, vector<2x8xbf16>, vector<2x8xf32> -> vector<2x8xf32>
    %271 = arith.addf %268, %270 : vector<2x8xf32>
    %272 = arith.truncf %250 : vector<2x2xf32> to vector<2x2xbf16>
    %cst_81 = arith.constant dense<0.000000e+00> : vector<2x8xf32>
    %273 = tpu.matmul %272, %43, %cst_81 {dimension_numbers = #tpu.dot_dimension_numbers<[1], [0], [0], [1], [0, 0, 1, 1], [], []>} : vector<2x2xbf16>, vector<2x8xbf16>, vector<2x8xf32> -> vector<2x8xf32>
    %274 = arith.addf %271, %273 : vector<2x8xf32>
    %275 = tpu.reciprocal %261 {approx = true} : vector<2x1xf32> -> vector<2x1xf32>
    %276 = vector.broadcast %275 : vector<2x1xf32> to vector<2x8xf32>
    %277 = arith.mulf %274, %276 : vector<2x8xf32>
    %278 = arith.truncf %277 : vector<2x8xf32> to vector<2x8xbf16>
    %cst_82 = arith.constant dense<0.000000e+00> : vector<2x32xf32>
    %279 = tpu.matmul %278, %21, %cst_82 {dimension_numbers = #tpu.dot_dimension_numbers<[1], [0], [0], [1], [0, 0, 1, 1], [], []>} : vector<2x8xbf16>, vector<8x32xbf16>, vector<2x32xf32> -> vector<2x32xf32>
    %280 = arith.addf %221, %279 : vector<2x32xf32>
    %c0_i32 = arith.constant 0 : i32
    %281 = vector.broadcast %c0_i32 : i32 to vector<8x2xi32>
    %282 = arith.addi %23, %281 : vector<8x2xi32>
    %283 = arith.cmpi eq, %22, %282 : vector<8x2xi32>
    %284 = arith.extui %283 : vector<8x2xi1> to vector<8x2xi32>
    %285 = arith.sitofp %284 : vector<8x2xi32> to vector<8x2xf32>
    %cst_83 = arith.constant dense<0.000000e+00> : vector<8x32xf32>
    %286 = tpu.matmul %285, %280, %cst_83 {dimension_numbers = #tpu.dot_dimension_numbers<[1], [0], [0], [1], [0, 0, 1, 1], [], []>} : vector<8x2xf32>, vector<2x32xf32>, vector<8x32xf32> -> vector<8x32xf32>
    %287 = arith.addf %24, %286 : vector<8x32xf32>
    %288 = vector.extract_strided_slice %10 {offsets = [2, 0], sizes = [2, 32], strides = [1, 1]} : vector<8x32xf32> to vector<2x32xf32>
    %289 = vector.extract_strided_slice %11 {offsets = [2, 0], sizes = [2, 32], strides = [1, 1]} : vector<8x32xf32> to vector<2x32xf32>
    %290 = vector.extract_strided_slice %12 {offsets = [2, 0], sizes = [2, 32], strides = [1, 1]} : vector<8x32xf32> to vector<2x32xf32>
    %291 = vector.extract_strided_slice %289 {offsets = [0, 0], sizes = [2, 8], strides = [1, 1]} : vector<2x32xf32> to vector<2x8xf32>
    %292 = arith.truncf %291 : vector<2x8xf32> to vector<2x8xbf16>
    %293 = vector.extract_strided_slice %289 {offsets = [0, 8], sizes = [2, 8], strides = [1, 1]} : vector<2x32xf32> to vector<2x8xf32>
    %294 = arith.truncf %293 : vector<2x8xf32> to vector<2x8xbf16>
    %295 = vector.extract_strided_slice %289 {offsets = [0, 16], sizes = [2, 8], strides = [1, 1]} : vector<2x32xf32> to vector<2x8xf32>
    %296 = arith.truncf %295 : vector<2x8xf32> to vector<2x8xbf16>
    %297 = vector.extract_strided_slice %289 {offsets = [0, 24], sizes = [2, 8], strides = [1, 1]} : vector<2x32xf32> to vector<2x8xf32>
    %298 = arith.truncf %297 : vector<2x8xf32> to vector<2x8xbf16>
    %299 = vector.extract_strided_slice %290 {offsets = [0, 0], sizes = [2, 8], strides = [1, 1]} : vector<2x32xf32> to vector<2x8xf32>
    %300 = arith.truncf %299 : vector<2x8xf32> to vector<2x8xbf16>
    %301 = vector.extract_strided_slice %290 {offsets = [0, 8], sizes = [2, 8], strides = [1, 1]} : vector<2x32xf32> to vector<2x8xf32>
    %302 = arith.truncf %301 : vector<2x8xf32> to vector<2x8xbf16>
    %303 = vector.extract_strided_slice %290 {offsets = [0, 16], sizes = [2, 8], strides = [1, 1]} : vector<2x32xf32> to vector<2x8xf32>
    %304 = arith.truncf %303 : vector<2x8xf32> to vector<2x8xbf16>
    %305 = vector.extract_strided_slice %290 {offsets = [0, 24], sizes = [2, 8], strides = [1, 1]} : vector<2x32xf32> to vector<2x8xf32>
    %306 = arith.truncf %305 : vector<2x8xf32> to vector<2x8xbf16>
    %cst_84 = arith.constant 0.000000e+00 : f32
    %307 = vector.broadcast %cst_84 : f32 to vector<2x32xf32>
    %308 = vector.extract_strided_slice %288 {offsets = [0, 0], sizes = [2, 8], strides = [1, 1]} : vector<2x32xf32> to vector<2x8xf32>
    %309 = arith.truncf %308 : vector<2x8xf32> to vector<2x8xbf16>
    %cst_85 = arith.constant dense<0.000000e+00> : vector<2x2xf32>
    %310 = tpu.matmul %309, %292, %cst_85 {dimension_numbers = #tpu.dot_dimension_numbers<[1], [1], [0], [0], [0, 0, 1, 0], [], []>} : vector<2x8xbf16>, vector<2x8xbf16>, vector<2x2xf32> -> vector<2x2xf32>
    %cst_86 = arith.constant dense<0.000000e+00> : vector<2x2xf32>
    %311 = tpu.matmul %309, %294, %cst_86 {dimension_numbers = #tpu.dot_dimension_numbers<[1], [1], [0], [0], [0, 0, 1, 0], [], []>} : vector<2x8xbf16>, vector<2x8xbf16>, vector<2x2xf32> -> vector<2x2xf32>
    %cst_87 = arith.constant dense<0.000000e+00> : vector<2x2xf32>
    %312 = tpu.matmul %309, %296, %cst_87 {dimension_numbers = #tpu.dot_dimension_numbers<[1], [1], [0], [0], [0, 0, 1, 0], [], []>} : vector<2x8xbf16>, vector<2x8xbf16>, vector<2x2xf32> -> vector<2x2xf32>
    %cst_88 = arith.constant dense<0.000000e+00> : vector<2x2xf32>
    %313 = tpu.matmul %309, %298, %cst_88 {dimension_numbers = #tpu.dot_dimension_numbers<[1], [1], [0], [0], [0, 0, 1, 0], [], []>} : vector<2x8xbf16>, vector<2x8xbf16>, vector<2x2xf32> -> vector<2x2xf32>
    %cst_89 = arith.constant dense<0xFF800000> : vector<2xf32>
    %314 = vector.multi_reduction <maximumf>, %310, %cst_89 [1] : vector<2x2xf32> to vector<2xf32>
    %315 = vector.shape_cast %314 : vector<2xf32> to vector<2x1xf32>
    %cst_90 = arith.constant dense<0xFF800000> : vector<2xf32>
    %316 = vector.multi_reduction <maximumf>, %311, %cst_90 [1] : vector<2x2xf32> to vector<2xf32>
    %317 = vector.shape_cast %316 : vector<2xf32> to vector<2x1xf32>
    %318 = arith.maximumf %315, %317 : vector<2x1xf32>
    %cst_91 = arith.constant dense<0xFF800000> : vector<2xf32>
    %319 = vector.multi_reduction <maximumf>, %312, %cst_91 [1] : vector<2x2xf32> to vector<2xf32>
    %320 = vector.shape_cast %319 : vector<2xf32> to vector<2x1xf32>
    %321 = arith.maximumf %318, %320 : vector<2x1xf32>
    %cst_92 = arith.constant dense<0xFF800000> : vector<2xf32>
    %322 = vector.multi_reduction <maximumf>, %313, %cst_92 [1] : vector<2x2xf32> to vector<2xf32>
    %323 = vector.shape_cast %322 : vector<2xf32> to vector<2x1xf32>
    %324 = arith.maximumf %321, %323 : vector<2x1xf32>
    %325 = vector.broadcast %324 : vector<2x1xf32> to vector<2x2xf32>
    %326 = arith.subf %310, %325 : vector<2x2xf32>
    %327 = math.exp %326 : vector<2x2xf32>
    %328 = vector.broadcast %324 : vector<2x1xf32> to vector<2x2xf32>
    %329 = arith.subf %311, %328 : vector<2x2xf32>
    %330 = math.exp %329 : vector<2x2xf32>
    %331 = vector.broadcast %324 : vector<2x1xf32> to vector<2x2xf32>
    %332 = arith.subf %312, %331 : vector<2x2xf32>
    %333 = math.exp %332 : vector<2x2xf32>
    %334 = vector.broadcast %324 : vector<2x1xf32> to vector<2x2xf32>
    %335 = arith.subf %313, %334 : vector<2x2xf32>
    %336 = math.exp %335 : vector<2x2xf32>
    %cst_93 = arith.constant dense<0.000000e+00> : vector<2xf32>
    %337 = vector.multi_reduction <add>, %327, %cst_93 [1] : vector<2x2xf32> to vector<2xf32>
    %338 = vector.shape_cast %337 : vector<2xf32> to vector<2x1xf32>
    %cst_94 = arith.constant dense<0.000000e+00> : vector<2xf32>
    %339 = vector.multi_reduction <add>, %330, %cst_94 [1] : vector<2x2xf32> to vector<2xf32>
    %340 = vector.shape_cast %339 : vector<2xf32> to vector<2x1xf32>
    %341 = arith.addf %338, %340 : vector<2x1xf32>
    %cst_95 = arith.constant dense<0.000000e+00> : vector<2xf32>
    %342 = vector.multi_reduction <add>, %333, %cst_95 [1] : vector<2x2xf32> to vector<2xf32>
    %343 = vector.shape_cast %342 : vector<2xf32> to vector<2x1xf32>
    %344 = arith.addf %341, %343 : vector<2x1xf32>
    %cst_96 = arith.constant dense<0.000000e+00> : vector<2xf32>
    %345 = vector.multi_reduction <add>, %336, %cst_96 [1] : vector<2x2xf32> to vector<2xf32>
    %346 = vector.shape_cast %345 : vector<2xf32> to vector<2x1xf32>
    %347 = arith.addf %344, %346 : vector<2x1xf32>
    %cst_97 = arith.constant 0.000000e+00 : f32
    %348 = vector.broadcast %cst_97 : f32 to vector<2x8xf32>
    %349 = arith.truncf %327 : vector<2x2xf32> to vector<2x2xbf16>
    %cst_98 = arith.constant dense<0.000000e+00> : vector<2x8xf32>
    %350 = tpu.matmul %349, %300, %cst_98 {dimension_numbers = #tpu.dot_dimension_numbers<[1], [0], [0], [1], [0, 0, 1, 1], [], []>} : vector<2x2xbf16>, vector<2x8xbf16>, vector<2x8xf32> -> vector<2x8xf32>
    %351 = arith.addf %348, %350 : vector<2x8xf32>
    %352 = arith.truncf %330 : vector<2x2xf32> to vector<2x2xbf16>
    %cst_99 = arith.constant dense<0.000000e+00> : vector<2x8xf32>
    %353 = tpu.matmul %352, %302, %cst_99 {dimension_numbers = #tpu.dot_dimension_numbers<[1], [0], [0], [1], [0, 0, 1, 1], [], []>} : vector<2x2xbf16>, vector<2x8xbf16>, vector<2x8xf32> -> vector<2x8xf32>
    %354 = arith.addf %351, %353 : vector<2x8xf32>
    %355 = arith.truncf %333 : vector<2x2xf32> to vector<2x2xbf16>
    %cst_100 = arith.constant dense<0.000000e+00> : vector<2x8xf32>
    %356 = tpu.matmul %355, %304, %cst_100 {dimension_numbers = #tpu.dot_dimension_numbers<[1], [0], [0], [1], [0, 0, 1, 1], [], []>} : vector<2x2xbf16>, vector<2x8xbf16>, vector<2x8xf32> -> vector<2x8xf32>
    %357 = arith.addf %354, %356 : vector<2x8xf32>
    %358 = arith.truncf %336 : vector<2x2xf32> to vector<2x2xbf16>
    %cst_101 = arith.constant dense<0.000000e+00> : vector<2x8xf32>
    %359 = tpu.matmul %358, %306, %cst_101 {dimension_numbers = #tpu.dot_dimension_numbers<[1], [0], [0], [1], [0, 0, 1, 1], [], []>} : vector<2x2xbf16>, vector<2x8xbf16>, vector<2x8xf32> -> vector<2x8xf32>
    %360 = arith.addf %357, %359 : vector<2x8xf32>
    %361 = tpu.reciprocal %347 {approx = true} : vector<2x1xf32> -> vector<2x1xf32>
    %362 = vector.broadcast %361 : vector<2x1xf32> to vector<2x8xf32>
    %363 = arith.mulf %360, %362 : vector<2x8xf32>
    %364 = arith.truncf %363 : vector<2x8xf32> to vector<2x8xbf16>
    %cst_102 = arith.constant dense<0.000000e+00> : vector<2x32xf32>
    %365 = tpu.matmul %364, %15, %cst_102 {dimension_numbers = #tpu.dot_dimension_numbers<[1], [0], [0], [1], [0, 0, 1, 1], [], []>} : vector<2x8xbf16>, vector<8x32xbf16>, vector<2x32xf32> -> vector<2x32xf32>
    %366 = arith.addf %307, %365 : vector<2x32xf32>
    %367 = vector.extract_strided_slice %288 {offsets = [0, 8], sizes = [2, 8], strides = [1, 1]} : vector<2x32xf32> to vector<2x8xf32>
    %368 = arith.truncf %367 : vector<2x8xf32> to vector<2x8xbf16>
    %cst_103 = arith.constant dense<0.000000e+00> : vector<2x2xf32>
    %369 = tpu.matmul %368, %292, %cst_103 {dimension_numbers = #tpu.dot_dimension_numbers<[1], [1], [0], [0], [0, 0, 1, 0], [], []>} : vector<2x8xbf16>, vector<2x8xbf16>, vector<2x2xf32> -> vector<2x2xf32>
    %cst_104 = arith.constant dense<0.000000e+00> : vector<2x2xf32>
    %370 = tpu.matmul %368, %294, %cst_104 {dimension_numbers = #tpu.dot_dimension_numbers<[1], [1], [0], [0], [0, 0, 1, 0], [], []>} : vector<2x8xbf16>, vector<2x8xbf16>, vector<2x2xf32> -> vector<2x2xf32>
    %cst_105 = arith.constant dense<0.000000e+00> : vector<2x2xf32>
    %371 = tpu.matmul %368, %296, %cst_105 {dimension_numbers = #tpu.dot_dimension_numbers<[1], [1], [0], [0], [0, 0, 1, 0], [], []>} : vector<2x8xbf16>, vector<2x8xbf16>, vector<2x2xf32> -> vector<2x2xf32>
    %cst_106 = arith.constant dense<0.000000e+00> : vector<2x2xf32>
    %372 = tpu.matmul %368, %298, %cst_106 {dimension_numbers = #tpu.dot_dimension_numbers<[1], [1], [0], [0], [0, 0, 1, 0], [], []>} : vector<2x8xbf16>, vector<2x8xbf16>, vector<2x2xf32> -> vector<2x2xf32>
    %cst_107 = arith.constant dense<0xFF800000> : vector<2xf32>
    %373 = vector.multi_reduction <maximumf>, %369, %cst_107 [1] : vector<2x2xf32> to vector<2xf32>
    %374 = vector.shape_cast %373 : vector<2xf32> to vector<2x1xf32>
    %cst_108 = arith.constant dense<0xFF800000> : vector<2xf32>
    %375 = vector.multi_reduction <maximumf>, %370, %cst_108 [1] : vector<2x2xf32> to vector<2xf32>
    %376 = vector.shape_cast %375 : vector<2xf32> to vector<2x1xf32>
    %377 = arith.maximumf %374, %376 : vector<2x1xf32>
    %cst_109 = arith.constant dense<0xFF800000> : vector<2xf32>
    %378 = vector.multi_reduction <maximumf>, %371, %cst_109 [1] : vector<2x2xf32> to vector<2xf32>
    %379 = vector.shape_cast %378 : vector<2xf32> to vector<2x1xf32>
    %380 = arith.maximumf %377, %379 : vector<2x1xf32>
    %cst_110 = arith.constant dense<0xFF800000> : vector<2xf32>
    %381 = vector.multi_reduction <maximumf>, %372, %cst_110 [1] : vector<2x2xf32> to vector<2xf32>
    %382 = vector.shape_cast %381 : vector<2xf32> to vector<2x1xf32>
    %383 = arith.maximumf %380, %382 : vector<2x1xf32>
    %384 = vector.broadcast %383 : vector<2x1xf32> to vector<2x2xf32>
    %385 = arith.subf %369, %384 : vector<2x2xf32>
    %386 = math.exp %385 : vector<2x2xf32>
    %387 = vector.broadcast %383 : vector<2x1xf32> to vector<2x2xf32>
    %388 = arith.subf %370, %387 : vector<2x2xf32>
    %389 = math.exp %388 : vector<2x2xf32>
    %390 = vector.broadcast %383 : vector<2x1xf32> to vector<2x2xf32>
    %391 = arith.subf %371, %390 : vector<2x2xf32>
    %392 = math.exp %391 : vector<2x2xf32>
    %393 = vector.broadcast %383 : vector<2x1xf32> to vector<2x2xf32>
    %394 = arith.subf %372, %393 : vector<2x2xf32>
    %395 = math.exp %394 : vector<2x2xf32>
    %cst_111 = arith.constant dense<0.000000e+00> : vector<2xf32>
    %396 = vector.multi_reduction <add>, %386, %cst_111 [1] : vector<2x2xf32> to vector<2xf32>
    %397 = vector.shape_cast %396 : vector<2xf32> to vector<2x1xf32>
    %cst_112 = arith.constant dense<0.000000e+00> : vector<2xf32>
    %398 = vector.multi_reduction <add>, %389, %cst_112 [1] : vector<2x2xf32> to vector<2xf32>
    %399 = vector.shape_cast %398 : vector<2xf32> to vector<2x1xf32>
    %400 = arith.addf %397, %399 : vector<2x1xf32>
    %cst_113 = arith.constant dense<0.000000e+00> : vector<2xf32>
    %401 = vector.multi_reduction <add>, %392, %cst_113 [1] : vector<2x2xf32> to vector<2xf32>
    %402 = vector.shape_cast %401 : vector<2xf32> to vector<2x1xf32>
    %403 = arith.addf %400, %402 : vector<2x1xf32>
    %cst_114 = arith.constant dense<0.000000e+00> : vector<2xf32>
    %404 = vector.multi_reduction <add>, %395, %cst_114 [1] : vector<2x2xf32> to vector<2xf32>
    %405 = vector.shape_cast %404 : vector<2xf32> to vector<2x1xf32>
    %406 = arith.addf %403, %405 : vector<2x1xf32>
    %cst_115 = arith.constant 0.000000e+00 : f32
    %407 = vector.broadcast %cst_115 : f32 to vector<2x8xf32>
    %408 = arith.truncf %386 : vector<2x2xf32> to vector<2x2xbf16>
    %cst_116 = arith.constant dense<0.000000e+00> : vector<2x8xf32>
    %409 = tpu.matmul %408, %300, %cst_116 {dimension_numbers = #tpu.dot_dimension_numbers<[1], [0], [0], [1], [0, 0, 1, 1], [], []>} : vector<2x2xbf16>, vector<2x8xbf16>, vector<2x8xf32> -> vector<2x8xf32>
    %410 = arith.addf %407, %409 : vector<2x8xf32>
    %411 = arith.truncf %389 : vector<2x2xf32> to vector<2x2xbf16>
    %cst_117 = arith.constant dense<0.000000e+00> : vector<2x8xf32>
    %412 = tpu.matmul %411, %302, %cst_117 {dimension_numbers = #tpu.dot_dimension_numbers<[1], [0], [0], [1], [0, 0, 1, 1], [], []>} : vector<2x2xbf16>, vector<2x8xbf16>, vector<2x8xf32> -> vector<2x8xf32>
    %413 = arith.addf %410, %412 : vector<2x8xf32>
    %414 = arith.truncf %392 : vector<2x2xf32> to vector<2x2xbf16>
    %cst_118 = arith.constant dense<0.000000e+00> : vector<2x8xf32>
    %415 = tpu.matmul %414, %304, %cst_118 {dimension_numbers = #tpu.dot_dimension_numbers<[1], [0], [0], [1], [0, 0, 1, 1], [], []>} : vector<2x2xbf16>, vector<2x8xbf16>, vector<2x8xf32> -> vector<2x8xf32>
    %416 = arith.addf %413, %415 : vector<2x8xf32>
    %417 = arith.truncf %395 : vector<2x2xf32> to vector<2x2xbf16>
    %cst_119 = arith.constant dense<0.000000e+00> : vector<2x8xf32>
    %418 = tpu.matmul %417, %306, %cst_119 {dimension_numbers = #tpu.dot_dimension_numbers<[1], [0], [0], [1], [0, 0, 1, 1], [], []>} : vector<2x2xbf16>, vector<2x8xbf16>, vector<2x8xf32> -> vector<2x8xf32>
    %419 = arith.addf %416, %418 : vector<2x8xf32>
    %420 = tpu.reciprocal %406 {approx = true} : vector<2x1xf32> -> vector<2x1xf32>
    %421 = vector.broadcast %420 : vector<2x1xf32> to vector<2x8xf32>
    %422 = arith.mulf %419, %421 : vector<2x8xf32>
    %423 = arith.truncf %422 : vector<2x8xf32> to vector<2x8xbf16>
    %cst_120 = arith.constant dense<0.000000e+00> : vector<2x32xf32>
    %424 = tpu.matmul %423, %17, %cst_120 {dimension_numbers = #tpu.dot_dimension_numbers<[1], [0], [0], [1], [0, 0, 1, 1], [], []>} : vector<2x8xbf16>, vector<8x32xbf16>, vector<2x32xf32> -> vector<2x32xf32>
    %425 = arith.addf %366, %424 : vector<2x32xf32>
    %426 = vector.extract_strided_slice %288 {offsets = [0, 16], sizes = [2, 8], strides = [1, 1]} : vector<2x32xf32> to vector<2x8xf32>
    %427 = arith.truncf %426 : vector<2x8xf32> to vector<2x8xbf16>
    %cst_121 = arith.constant dense<0.000000e+00> : vector<2x2xf32>
    %428 = tpu.matmul %427, %292, %cst_121 {dimension_numbers = #tpu.dot_dimension_numbers<[1], [1], [0], [0], [0, 0, 1, 0], [], []>} : vector<2x8xbf16>, vector<2x8xbf16>, vector<2x2xf32> -> vector<2x2xf32>
    %cst_122 = arith.constant dense<0.000000e+00> : vector<2x2xf32>
    %429 = tpu.matmul %427, %294, %cst_122 {dimension_numbers = #tpu.dot_dimension_numbers<[1], [1], [0], [0], [0, 0, 1, 0], [], []>} : vector<2x8xbf16>, vector<2x8xbf16>, vector<2x2xf32> -> vector<2x2xf32>
    %cst_123 = arith.constant dense<0.000000e+00> : vector<2x2xf32>
    %430 = tpu.matmul %427, %296, %cst_123 {dimension_numbers = #tpu.dot_dimension_numbers<[1], [1], [0], [0], [0, 0, 1, 0], [], []>} : vector<2x8xbf16>, vector<2x8xbf16>, vector<2x2xf32> -> vector<2x2xf32>
    %cst_124 = arith.constant dense<0.000000e+00> : vector<2x2xf32>
    %431 = tpu.matmul %427, %298, %cst_124 {dimension_numbers = #tpu.dot_dimension_numbers<[1], [1], [0], [0], [0, 0, 1, 0], [], []>} : vector<2x8xbf16>, vector<2x8xbf16>, vector<2x2xf32> -> vector<2x2xf32>
    %cst_125 = arith.constant dense<0xFF800000> : vector<2xf32>
    %432 = vector.multi_reduction <maximumf>, %428, %cst_125 [1] : vector<2x2xf32> to vector<2xf32>
    %433 = vector.shape_cast %432 : vector<2xf32> to vector<2x1xf32>
    %cst_126 = arith.constant dense<0xFF800000> : vector<2xf32>
    %434 = vector.multi_reduction <maximumf>, %429, %cst_126 [1] : vector<2x2xf32> to vector<2xf32>
    %435 = vector.shape_cast %434 : vector<2xf32> to vector<2x1xf32>
    %436 = arith.maximumf %433, %435 : vector<2x1xf32>
    %cst_127 = arith.constant dense<0xFF800000> : vector<2xf32>
    %437 = vector.multi_reduction <maximumf>, %430, %cst_127 [1] : vector<2x2xf32> to vector<2xf32>
    %438 = vector.shape_cast %437 : vector<2xf32> to vector<2x1xf32>
    %439 = arith.maximumf %436, %438 : vector<2x1xf32>
    %cst_128 = arith.constant dense<0xFF800000> : vector<2xf32>
    %440 = vector.multi_reduction <maximumf>, %431, %cst_128 [1] : vector<2x2xf32> to vector<2xf32>
    %441 = vector.shape_cast %440 : vector<2xf32> to vector<2x1xf32>
    %442 = arith.maximumf %439, %441 : vector<2x1xf32>
    %443 = vector.broadcast %442 : vector<2x1xf32> to vector<2x2xf32>
    %444 = arith.subf %428, %443 : vector<2x2xf32>
    %445 = math.exp %444 : vector<2x2xf32>
    %446 = vector.broadcast %442 : vector<2x1xf32> to vector<2x2xf32>
    %447 = arith.subf %429, %446 : vector<2x2xf32>
    %448 = math.exp %447 : vector<2x2xf32>
    %449 = vector.broadcast %442 : vector<2x1xf32> to vector<2x2xf32>
    %450 = arith.subf %430, %449 : vector<2x2xf32>
    %451 = math.exp %450 : vector<2x2xf32>
    %452 = vector.broadcast %442 : vector<2x1xf32> to vector<2x2xf32>
    %453 = arith.subf %431, %452 : vector<2x2xf32>
    %454 = math.exp %453 : vector<2x2xf32>
    %cst_129 = arith.constant dense<0.000000e+00> : vector<2xf32>
    %455 = vector.multi_reduction <add>, %445, %cst_129 [1] : vector<2x2xf32> to vector<2xf32>
    %456 = vector.shape_cast %455 : vector<2xf32> to vector<2x1xf32>
    %cst_130 = arith.constant dense<0.000000e+00> : vector<2xf32>
    %457 = vector.multi_reduction <add>, %448, %cst_130 [1] : vector<2x2xf32> to vector<2xf32>
    %458 = vector.shape_cast %457 : vector<2xf32> to vector<2x1xf32>
    %459 = arith.addf %456, %458 : vector<2x1xf32>
    %cst_131 = arith.constant dense<0.000000e+00> : vector<2xf32>
    %460 = vector.multi_reduction <add>, %451, %cst_131 [1] : vector<2x2xf32> to vector<2xf32>
    %461 = vector.shape_cast %460 : vector<2xf32> to vector<2x1xf32>
    %462 = arith.addf %459, %461 : vector<2x1xf32>
    %cst_132 = arith.constant dense<0.000000e+00> : vector<2xf32>
    %463 = vector.multi_reduction <add>, %454, %cst_132 [1] : vector<2x2xf32> to vector<2xf32>
    %464 = vector.shape_cast %463 : vector<2xf32> to vector<2x1xf32>
    %465 = arith.addf %462, %464 : vector<2x1xf32>
    %cst_133 = arith.constant 0.000000e+00 : f32
    %466 = vector.broadcast %cst_133 : f32 to vector<2x8xf32>
    %467 = arith.truncf %445 : vector<2x2xf32> to vector<2x2xbf16>
    %cst_134 = arith.constant dense<0.000000e+00> : vector<2x8xf32>
    %468 = tpu.matmul %467, %300, %cst_134 {dimension_numbers = #tpu.dot_dimension_numbers<[1], [0], [0], [1], [0, 0, 1, 1], [], []>} : vector<2x2xbf16>, vector<2x8xbf16>, vector<2x8xf32> -> vector<2x8xf32>
    %469 = arith.addf %466, %468 : vector<2x8xf32>
    %470 = arith.truncf %448 : vector<2x2xf32> to vector<2x2xbf16>
    %cst_135 = arith.constant dense<0.000000e+00> : vector<2x8xf32>
    %471 = tpu.matmul %470, %302, %cst_135 {dimension_numbers = #tpu.dot_dimension_numbers<[1], [0], [0], [1], [0, 0, 1, 1], [], []>} : vector<2x2xbf16>, vector<2x8xbf16>, vector<2x8xf32> -> vector<2x8xf32>
    %472 = arith.addf %469, %471 : vector<2x8xf32>
    %473 = arith.truncf %451 : vector<2x2xf32> to vector<2x2xbf16>
    %cst_136 = arith.constant dense<0.000000e+00> : vector<2x8xf32>
    %474 = tpu.matmul %473, %304, %cst_136 {dimension_numbers = #tpu.dot_dimension_numbers<[1], [0], [0], [1], [0, 0, 1, 1], [], []>} : vector<2x2xbf16>, vector<2x8xbf16>, vector<2x8xf32> -> vector<2x8xf32>
    %475 = arith.addf %472, %474 : vector<2x8xf32>
    %476 = arith.truncf %454 : vector<2x2xf32> to vector<2x2xbf16>
    %cst_137 = arith.constant dense<0.000000e+00> : vector<2x8xf32>
    %477 = tpu.matmul %476, %306, %cst_137 {dimension_numbers = #tpu.dot_dimension_numbers<[1], [0], [0], [1], [0, 0, 1, 1], [], []>} : vector<2x2xbf16>, vector<2x8xbf16>, vector<2x8xf32> -> vector<2x8xf32>
    %478 = arith.addf %475, %477 : vector<2x8xf32>
    %479 = tpu.reciprocal %465 {approx = true} : vector<2x1xf32> -> vector<2x1xf32>
    %480 = vector.broadcast %479 : vector<2x1xf32> to vector<2x8xf32>
    %481 = arith.mulf %478, %480 : vector<2x8xf32>
    %482 = arith.truncf %481 : vector<2x8xf32> to vector<2x8xbf16>
    %cst_138 = arith.constant dense<0.000000e+00> : vector<2x32xf32>
    %483 = tpu.matmul %482, %19, %cst_138 {dimension_numbers = #tpu.dot_dimension_numbers<[1], [0], [0], [1], [0, 0, 1, 1], [], []>} : vector<2x8xbf16>, vector<8x32xbf16>, vector<2x32xf32> -> vector<2x32xf32>
    %484 = arith.addf %425, %483 : vector<2x32xf32>
    %485 = vector.extract_strided_slice %288 {offsets = [0, 24], sizes = [2, 8], strides = [1, 1]} : vector<2x32xf32> to vector<2x8xf32>
    %486 = arith.truncf %485 : vector<2x8xf32> to vector<2x8xbf16>
    %cst_139 = arith.constant dense<0.000000e+00> : vector<2x2xf32>
    %487 = tpu.matmul %486, %292, %cst_139 {dimension_numbers = #tpu.dot_dimension_numbers<[1], [1], [0], [0], [0, 0, 1, 0], [], []>} : vector<2x8xbf16>, vector<2x8xbf16>, vector<2x2xf32> -> vector<2x2xf32>
    %cst_140 = arith.constant dense<0.000000e+00> : vector<2x2xf32>
    %488 = tpu.matmul %486, %294, %cst_140 {dimension_numbers = #tpu.dot_dimension_numbers<[1], [1], [0], [0], [0, 0, 1, 0], [], []>} : vector<2x8xbf16>, vector<2x8xbf16>, vector<2x2xf32> -> vector<2x2xf32>
    %cst_141 = arith.constant dense<0.000000e+00> : vector<2x2xf32>
    %489 = tpu.matmul %486, %296, %cst_141 {dimension_numbers = #tpu.dot_dimension_numbers<[1], [1], [0], [0], [0, 0, 1, 0], [], []>} : vector<2x8xbf16>, vector<2x8xbf16>, vector<2x2xf32> -> vector<2x2xf32>
    %cst_142 = arith.constant dense<0.000000e+00> : vector<2x2xf32>
    %490 = tpu.matmul %486, %298, %cst_142 {dimension_numbers = #tpu.dot_dimension_numbers<[1], [1], [0], [0], [0, 0, 1, 0], [], []>} : vector<2x8xbf16>, vector<2x8xbf16>, vector<2x2xf32> -> vector<2x2xf32>
    %cst_143 = arith.constant dense<0xFF800000> : vector<2xf32>
    %491 = vector.multi_reduction <maximumf>, %487, %cst_143 [1] : vector<2x2xf32> to vector<2xf32>
    %492 = vector.shape_cast %491 : vector<2xf32> to vector<2x1xf32>
    %cst_144 = arith.constant dense<0xFF800000> : vector<2xf32>
    %493 = vector.multi_reduction <maximumf>, %488, %cst_144 [1] : vector<2x2xf32> to vector<2xf32>
    %494 = vector.shape_cast %493 : vector<2xf32> to vector<2x1xf32>
    %495 = arith.maximumf %492, %494 : vector<2x1xf32>
    %cst_145 = arith.constant dense<0xFF800000> : vector<2xf32>
    %496 = vector.multi_reduction <maximumf>, %489, %cst_145 [1] : vector<2x2xf32> to vector<2xf32>
    %497 = vector.shape_cast %496 : vector<2xf32> to vector<2x1xf32>
    %498 = arith.maximumf %495, %497 : vector<2x1xf32>
    %cst_146 = arith.constant dense<0xFF800000> : vector<2xf32>
    %499 = vector.multi_reduction <maximumf>, %490, %cst_146 [1] : vector<2x2xf32> to vector<2xf32>
    %500 = vector.shape_cast %499 : vector<2xf32> to vector<2x1xf32>
    %501 = arith.maximumf %498, %500 : vector<2x1xf32>
    %502 = vector.broadcast %501 : vector<2x1xf32> to vector<2x2xf32>
    %503 = arith.subf %487, %502 : vector<2x2xf32>
    %504 = math.exp %503 : vector<2x2xf32>
    %505 = vector.broadcast %501 : vector<2x1xf32> to vector<2x2xf32>
    %506 = arith.subf %488, %505 : vector<2x2xf32>
    %507 = math.exp %506 : vector<2x2xf32>
    %508 = vector.broadcast %501 : vector<2x1xf32> to vector<2x2xf32>
    %509 = arith.subf %489, %508 : vector<2x2xf32>
    %510 = math.exp %509 : vector<2x2xf32>
    %511 = vector.broadcast %501 : vector<2x1xf32> to vector<2x2xf32>
    %512 = arith.subf %490, %511 : vector<2x2xf32>
    %513 = math.exp %512 : vector<2x2xf32>
    %cst_147 = arith.constant dense<0.000000e+00> : vector<2xf32>
    %514 = vector.multi_reduction <add>, %504, %cst_147 [1] : vector<2x2xf32> to vector<2xf32>
    %515 = vector.shape_cast %514 : vector<2xf32> to vector<2x1xf32>
    %cst_148 = arith.constant dense<0.000000e+00> : vector<2xf32>
    %516 = vector.multi_reduction <add>, %507, %cst_148 [1] : vector<2x2xf32> to vector<2xf32>
    %517 = vector.shape_cast %516 : vector<2xf32> to vector<2x1xf32>
    %518 = arith.addf %515, %517 : vector<2x1xf32>
    %cst_149 = arith.constant dense<0.000000e+00> : vector<2xf32>
    %519 = vector.multi_reduction <add>, %510, %cst_149 [1] : vector<2x2xf32> to vector<2xf32>
    %520 = vector.shape_cast %519 : vector<2xf32> to vector<2x1xf32>
    %521 = arith.addf %518, %520 : vector<2x1xf32>
    %cst_150 = arith.constant dense<0.000000e+00> : vector<2xf32>
    %522 = vector.multi_reduction <add>, %513, %cst_150 [1] : vector<2x2xf32> to vector<2xf32>
    %523 = vector.shape_cast %522 : vector<2xf32> to vector<2x1xf32>
    %524 = arith.addf %521, %523 : vector<2x1xf32>
    %cst_151 = arith.constant 0.000000e+00 : f32
    %525 = vector.broadcast %cst_151 : f32 to vector<2x8xf32>
    %526 = arith.truncf %504 : vector<2x2xf32> to vector<2x2xbf16>
    %cst_152 = arith.constant dense<0.000000e+00> : vector<2x8xf32>
    %527 = tpu.matmul %526, %300, %cst_152 {dimension_numbers = #tpu.dot_dimension_numbers<[1], [0], [0], [1], [0, 0, 1, 1], [], []>} : vector<2x2xbf16>, vector<2x8xbf16>, vector<2x8xf32> -> vector<2x8xf32>
    %528 = arith.addf %525, %527 : vector<2x8xf32>
    %529 = arith.truncf %507 : vector<2x2xf32> to vector<2x2xbf16>
    %cst_153 = arith.constant dense<0.000000e+00> : vector<2x8xf32>
    %530 = tpu.matmul %529, %302, %cst_153 {dimension_numbers = #tpu.dot_dimension_numbers<[1], [0], [0], [1], [0, 0, 1, 1], [], []>} : vector<2x2xbf16>, vector<2x8xbf16>, vector<2x8xf32> -> vector<2x8xf32>
    %531 = arith.addf %528, %530 : vector<2x8xf32>
    %532 = arith.truncf %510 : vector<2x2xf32> to vector<2x2xbf16>
    %cst_154 = arith.constant dense<0.000000e+00> : vector<2x8xf32>
    %533 = tpu.matmul %532, %304, %cst_154 {dimension_numbers = #tpu.dot_dimension_numbers<[1], [0], [0], [1], [0, 0, 1, 1], [], []>} : vector<2x2xbf16>, vector<2x8xbf16>, vector<2x8xf32> -> vector<2x8xf32>
    %534 = arith.addf %531, %533 : vector<2x8xf32>
    %535 = arith.truncf %513 : vector<2x2xf32> to vector<2x2xbf16>
    %cst_155 = arith.constant dense<0.000000e+00> : vector<2x8xf32>
    %536 = tpu.matmul %535, %306, %cst_155 {dimension_numbers = #tpu.dot_dimension_numbers<[1], [0], [0], [1], [0, 0, 1, 1], [], []>} : vector<2x2xbf16>, vector<2x8xbf16>, vector<2x8xf32> -> vector<2x8xf32>
    %537 = arith.addf %534, %536 : vector<2x8xf32>
    %538 = tpu.reciprocal %524 {approx = true} : vector<2x1xf32> -> vector<2x1xf32>
    %539 = vector.broadcast %538 : vector<2x1xf32> to vector<2x8xf32>
    %540 = arith.mulf %537, %539 : vector<2x8xf32>
    %541 = arith.truncf %540 : vector<2x8xf32> to vector<2x8xbf16>
    %cst_156 = arith.constant dense<0.000000e+00> : vector<2x32xf32>
    %542 = tpu.matmul %541, %21, %cst_156 {dimension_numbers = #tpu.dot_dimension_numbers<[1], [0], [0], [1], [0, 0, 1, 1], [], []>} : vector<2x8xbf16>, vector<8x32xbf16>, vector<2x32xf32> -> vector<2x32xf32>
    %543 = arith.addf %484, %542 : vector<2x32xf32>
    %c2_i32 = arith.constant 2 : i32
    %544 = vector.broadcast %c2_i32 : i32 to vector<8x2xi32>
    %545 = arith.addi %23, %544 : vector<8x2xi32>
    %546 = arith.cmpi eq, %22, %545 : vector<8x2xi32>
    %547 = arith.extui %546 : vector<8x2xi1> to vector<8x2xi32>
    %548 = arith.sitofp %547 : vector<8x2xi32> to vector<8x2xf32>
    %cst_157 = arith.constant dense<0.000000e+00> : vector<8x32xf32>
    %549 = tpu.matmul %548, %543, %cst_157 {dimension_numbers = #tpu.dot_dimension_numbers<[1], [0], [0], [1], [0, 0, 1, 1], [], []>} : vector<8x2xf32>, vector<2x32xf32>, vector<8x32xf32> -> vector<8x32xf32>
    %550 = arith.addf %287, %549 : vector<8x32xf32>
    %551 = vector.extract_strided_slice %10 {offsets = [4, 0], sizes = [2, 32], strides = [1, 1]} : vector<8x32xf32> to vector<2x32xf32>
    %552 = vector.extract_strided_slice %11 {offsets = [4, 0], sizes = [2, 32], strides = [1, 1]} : vector<8x32xf32> to vector<2x32xf32>
    %553 = vector.extract_strided_slice %12 {offsets = [4, 0], sizes = [2, 32], strides = [1, 1]} : vector<8x32xf32> to vector<2x32xf32>
    %554 = vector.extract_strided_slice %552 {offsets = [0, 0], sizes = [2, 8], strides = [1, 1]} : vector<2x32xf32> to vector<2x8xf32>
    %555 = arith.truncf %554 : vector<2x8xf32> to vector<2x8xbf16>
    %556 = vector.extract_strided_slice %552 {offsets = [0, 8], sizes = [2, 8], strides = [1, 1]} : vector<2x32xf32> to vector<2x8xf32>
    %557 = arith.truncf %556 : vector<2x8xf32> to vector<2x8xbf16>
    %558 = vector.extract_strided_slice %552 {offsets = [0, 16], sizes = [2, 8], strides = [1, 1]} : vector<2x32xf32> to vector<2x8xf32>
    %559 = arith.truncf %558 : vector<2x8xf32> to vector<2x8xbf16>
    %560 = vector.extract_strided_slice %552 {offsets = [0, 24], sizes = [2, 8], strides = [1, 1]} : vector<2x32xf32> to vector<2x8xf32>
    %561 = arith.truncf %560 : vector<2x8xf32> to vector<2x8xbf16>
    %562 = vector.extract_strided_slice %553 {offsets = [0, 0], sizes = [2, 8], strides = [1, 1]} : vector<2x32xf32> to vector<2x8xf32>
    %563 = arith.truncf %562 : vector<2x8xf32> to vector<2x8xbf16>
    %564 = vector.extract_strided_slice %553 {offsets = [0, 8], sizes = [2, 8], strides = [1, 1]} : vector<2x32xf32> to vector<2x8xf32>
    %565 = arith.truncf %564 : vector<2x8xf32> to vector<2x8xbf16>
    %566 = vector.extract_strided_slice %553 {offsets = [0, 16], sizes = [2, 8], strides = [1, 1]} : vector<2x32xf32> to vector<2x8xf32>
    %567 = arith.truncf %566 : vector<2x8xf32> to vector<2x8xbf16>
    %568 = vector.extract_strided_slice %553 {offsets = [0, 24], sizes = [2, 8], strides = [1, 1]} : vector<2x32xf32> to vector<2x8xf32>
    %569 = arith.truncf %568 : vector<2x8xf32> to vector<2x8xbf16>
    %cst_158 = arith.constant 0.000000e+00 : f32
    %570 = vector.broadcast %cst_158 : f32 to vector<2x32xf32>
    %571 = vector.extract_strided_slice %551 {offsets = [0, 0], sizes = [2, 8], strides = [1, 1]} : vector<2x32xf32> to vector<2x8xf32>
    %572 = arith.truncf %571 : vector<2x8xf32> to vector<2x8xbf16>
    %cst_159 = arith.constant dense<0.000000e+00> : vector<2x2xf32>
    %573 = tpu.matmul %572, %555, %cst_159 {dimension_numbers = #tpu.dot_dimension_numbers<[1], [1], [0], [0], [0, 0, 1, 0], [], []>} : vector<2x8xbf16>, vector<2x8xbf16>, vector<2x2xf32> -> vector<2x2xf32>
    %cst_160 = arith.constant dense<0.000000e+00> : vector<2x2xf32>
    %574 = tpu.matmul %572, %557, %cst_160 {dimension_numbers = #tpu.dot_dimension_numbers<[1], [1], [0], [0], [0, 0, 1, 0], [], []>} : vector<2x8xbf16>, vector<2x8xbf16>, vector<2x2xf32> -> vector<2x2xf32>
    %cst_161 = arith.constant dense<0.000000e+00> : vector<2x2xf32>
    %575 = tpu.matmul %572, %559, %cst_161 {dimension_numbers = #tpu.dot_dimension_numbers<[1], [1], [0], [0], [0, 0, 1, 0], [], []>} : vector<2x8xbf16>, vector<2x8xbf16>, vector<2x2xf32> -> vector<2x2xf32>
    %cst_162 = arith.constant dense<0.000000e+00> : vector<2x2xf32>
    %576 = tpu.matmul %572, %561, %cst_162 {dimension_numbers = #tpu.dot_dimension_numbers<[1], [1], [0], [0], [0, 0, 1, 0], [], []>} : vector<2x8xbf16>, vector<2x8xbf16>, vector<2x2xf32> -> vector<2x2xf32>
    %cst_163 = arith.constant dense<0xFF800000> : vector<2xf32>
    %577 = vector.multi_reduction <maximumf>, %573, %cst_163 [1] : vector<2x2xf32> to vector<2xf32>
    %578 = vector.shape_cast %577 : vector<2xf32> to vector<2x1xf32>
    %cst_164 = arith.constant dense<0xFF800000> : vector<2xf32>
    %579 = vector.multi_reduction <maximumf>, %574, %cst_164 [1] : vector<2x2xf32> to vector<2xf32>
    %580 = vector.shape_cast %579 : vector<2xf32> to vector<2x1xf32>
    %581 = arith.maximumf %578, %580 : vector<2x1xf32>
    %cst_165 = arith.constant dense<0xFF800000> : vector<2xf32>
    %582 = vector.multi_reduction <maximumf>, %575, %cst_165 [1] : vector<2x2xf32> to vector<2xf32>
    %583 = vector.shape_cast %582 : vector<2xf32> to vector<2x1xf32>
    %584 = arith.maximumf %581, %583 : vector<2x1xf32>
    %cst_166 = arith.constant dense<0xFF800000> : vector<2xf32>
    %585 = vector.multi_reduction <maximumf>, %576, %cst_166 [1] : vector<2x2xf32> to vector<2xf32>
    %586 = vector.shape_cast %585 : vector<2xf32> to vector<2x1xf32>
    %587 = arith.maximumf %584, %586 : vector<2x1xf32>
    %588 = vector.broadcast %587 : vector<2x1xf32> to vector<2x2xf32>
    %589 = arith.subf %573, %588 : vector<2x2xf32>
    %590 = math.exp %589 : vector<2x2xf32>
    %591 = vector.broadcast %587 : vector<2x1xf32> to vector<2x2xf32>
    %592 = arith.subf %574, %591 : vector<2x2xf32>
    %593 = math.exp %592 : vector<2x2xf32>
    %594 = vector.broadcast %587 : vector<2x1xf32> to vector<2x2xf32>
    %595 = arith.subf %575, %594 : vector<2x2xf32>
    %596 = math.exp %595 : vector<2x2xf32>
    %597 = vector.broadcast %587 : vector<2x1xf32> to vector<2x2xf32>
    %598 = arith.subf %576, %597 : vector<2x2xf32>
    %599 = math.exp %598 : vector<2x2xf32>
    %cst_167 = arith.constant dense<0.000000e+00> : vector<2xf32>
    %600 = vector.multi_reduction <add>, %590, %cst_167 [1] : vector<2x2xf32> to vector<2xf32>
    %601 = vector.shape_cast %600 : vector<2xf32> to vector<2x1xf32>
    %cst_168 = arith.constant dense<0.000000e+00> : vector<2xf32>
    %602 = vector.multi_reduction <add>, %593, %cst_168 [1] : vector<2x2xf32> to vector<2xf32>
    %603 = vector.shape_cast %602 : vector<2xf32> to vector<2x1xf32>
    %604 = arith.addf %601, %603 : vector<2x1xf32>
    %cst_169 = arith.constant dense<0.000000e+00> : vector<2xf32>
    %605 = vector.multi_reduction <add>, %596, %cst_169 [1] : vector<2x2xf32> to vector<2xf32>
    %606 = vector.shape_cast %605 : vector<2xf32> to vector<2x1xf32>
    %607 = arith.addf %604, %606 : vector<2x1xf32>
    %cst_170 = arith.constant dense<0.000000e+00> : vector<2xf32>
    %608 = vector.multi_reduction <add>, %599, %cst_170 [1] : vector<2x2xf32> to vector<2xf32>
    %609 = vector.shape_cast %608 : vector<2xf32> to vector<2x1xf32>
    %610 = arith.addf %607, %609 : vector<2x1xf32>
    %cst_171 = arith.constant 0.000000e+00 : f32
    %611 = vector.broadcast %cst_171 : f32 to vector<2x8xf32>
    %612 = arith.truncf %590 : vector<2x2xf32> to vector<2x2xbf16>
    %cst_172 = arith.constant dense<0.000000e+00> : vector<2x8xf32>
    %613 = tpu.matmul %612, %563, %cst_172 {dimension_numbers = #tpu.dot_dimension_numbers<[1], [0], [0], [1], [0, 0, 1, 1], [], []>} : vector<2x2xbf16>, vector<2x8xbf16>, vector<2x8xf32> -> vector<2x8xf32>
    %614 = arith.addf %611, %613 : vector<2x8xf32>
    %615 = arith.truncf %593 : vector<2x2xf32> to vector<2x2xbf16>
    %cst_173 = arith.constant dense<0.000000e+00> : vector<2x8xf32>
    %616 = tpu.matmul %615, %565, %cst_173 {dimension_numbers = #tpu.dot_dimension_numbers<[1], [0], [0], [1], [0, 0, 1, 1], [], []>} : vector<2x2xbf16>, vector<2x8xbf16>, vector<2x8xf32> -> vector<2x8xf32>
    %617 = arith.addf %614, %616 : vector<2x8xf32>
    %618 = arith.truncf %596 : vector<2x2xf32> to vector<2x2xbf16>
    %cst_174 = arith.constant dense<0.000000e+00> : vector<2x8xf32>
    %619 = tpu.matmul %618, %567, %cst_174 {dimension_numbers = #tpu.dot_dimension_numbers<[1], [0], [0], [1], [0, 0, 1, 1], [], []>} : vector<2x2xbf16>, vector<2x8xbf16>, vector<2x8xf32> -> vector<2x8xf32>
    %620 = arith.addf %617, %619 : vector<2x8xf32>
    %621 = arith.truncf %599 : vector<2x2xf32> to vector<2x2xbf16>
    %cst_175 = arith.constant dense<0.000000e+00> : vector<2x8xf32>
    %622 = tpu.matmul %621, %569, %cst_175 {dimension_numbers = #tpu.dot_dimension_numbers<[1], [0], [0], [1], [0, 0, 1, 1], [], []>} : vector<2x2xbf16>, vector<2x8xbf16>, vector<2x8xf32> -> vector<2x8xf32>
    %623 = arith.addf %620, %622 : vector<2x8xf32>
    %624 = tpu.reciprocal %610 {approx = true} : vector<2x1xf32> -> vector<2x1xf32>
    %625 = vector.broadcast %624 : vector<2x1xf32> to vector<2x8xf32>
    %626 = arith.mulf %623, %625 : vector<2x8xf32>
    %627 = arith.truncf %626 : vector<2x8xf32> to vector<2x8xbf16>
    %cst_176 = arith.constant dense<0.000000e+00> : vector<2x32xf32>
    %628 = tpu.matmul %627, %15, %cst_176 {dimension_numbers = #tpu.dot_dimension_numbers<[1], [0], [0], [1], [0, 0, 1, 1], [], []>} : vector<2x8xbf16>, vector<8x32xbf16>, vector<2x32xf32> -> vector<2x32xf32>
    %629 = arith.addf %570, %628 : vector<2x32xf32>
    %630 = vector.extract_strided_slice %551 {offsets = [0, 8], sizes = [2, 8], strides = [1, 1]} : vector<2x32xf32> to vector<2x8xf32>
    %631 = arith.truncf %630 : vector<2x8xf32> to vector<2x8xbf16>
    %cst_177 = arith.constant dense<0.000000e+00> : vector<2x2xf32>
    %632 = tpu.matmul %631, %555, %cst_177 {dimension_numbers = #tpu.dot_dimension_numbers<[1], [1], [0], [0], [0, 0, 1, 0], [], []>} : vector<2x8xbf16>, vector<2x8xbf16>, vector<2x2xf32> -> vector<2x2xf32>
    %cst_178 = arith.constant dense<0.000000e+00> : vector<2x2xf32>
    %633 = tpu.matmul %631, %557, %cst_178 {dimension_numbers = #tpu.dot_dimension_numbers<[1], [1], [0], [0], [0, 0, 1, 0], [], []>} : vector<2x8xbf16>, vector<2x8xbf16>, vector<2x2xf32> -> vector<2x2xf32>
    %cst_179 = arith.constant dense<0.000000e+00> : vector<2x2xf32>
    %634 = tpu.matmul %631, %559, %cst_179 {dimension_numbers = #tpu.dot_dimension_numbers<[1], [1], [0], [0], [0, 0, 1, 0], [], []>} : vector<2x8xbf16>, vector<2x8xbf16>, vector<2x2xf32> -> vector<2x2xf32>
    %cst_180 = arith.constant dense<0.000000e+00> : vector<2x2xf32>
    %635 = tpu.matmul %631, %561, %cst_180 {dimension_numbers = #tpu.dot_dimension_numbers<[1], [1], [0], [0], [0, 0, 1, 0], [], []>} : vector<2x8xbf16>, vector<2x8xbf16>, vector<2x2xf32> -> vector<2x2xf32>
    %cst_181 = arith.constant dense<0xFF800000> : vector<2xf32>
    %636 = vector.multi_reduction <maximumf>, %632, %cst_181 [1] : vector<2x2xf32> to vector<2xf32>
    %637 = vector.shape_cast %636 : vector<2xf32> to vector<2x1xf32>
    %cst_182 = arith.constant dense<0xFF800000> : vector<2xf32>
    %638 = vector.multi_reduction <maximumf>, %633, %cst_182 [1] : vector<2x2xf32> to vector<2xf32>
    %639 = vector.shape_cast %638 : vector<2xf32> to vector<2x1xf32>
    %640 = arith.maximumf %637, %639 : vector<2x1xf32>
    %cst_183 = arith.constant dense<0xFF800000> : vector<2xf32>
    %641 = vector.multi_reduction <maximumf>, %634, %cst_183 [1] : vector<2x2xf32> to vector<2xf32>
    %642 = vector.shape_cast %641 : vector<2xf32> to vector<2x1xf32>
    %643 = arith.maximumf %640, %642 : vector<2x1xf32>
    %cst_184 = arith.constant dense<0xFF800000> : vector<2xf32>
    %644 = vector.multi_reduction <maximumf>, %635, %cst_184 [1] : vector<2x2xf32> to vector<2xf32>
    %645 = vector.shape_cast %644 : vector<2xf32> to vector<2x1xf32>
    %646 = arith.maximumf %643, %645 : vector<2x1xf32>
    %647 = vector.broadcast %646 : vector<2x1xf32> to vector<2x2xf32>
    %648 = arith.subf %632, %647 : vector<2x2xf32>
    %649 = math.exp %648 : vector<2x2xf32>
    %650 = vector.broadcast %646 : vector<2x1xf32> to vector<2x2xf32>
    %651 = arith.subf %633, %650 : vector<2x2xf32>
    %652 = math.exp %651 : vector<2x2xf32>
    %653 = vector.broadcast %646 : vector<2x1xf32> to vector<2x2xf32>
    %654 = arith.subf %634, %653 : vector<2x2xf32>
    %655 = math.exp %654 : vector<2x2xf32>
    %656 = vector.broadcast %646 : vector<2x1xf32> to vector<2x2xf32>
    %657 = arith.subf %635, %656 : vector<2x2xf32>
    %658 = math.exp %657 : vector<2x2xf32>
    %cst_185 = arith.constant dense<0.000000e+00> : vector<2xf32>
    %659 = vector.multi_reduction <add>, %649, %cst_185 [1] : vector<2x2xf32> to vector<2xf32>
    %660 = vector.shape_cast %659 : vector<2xf32> to vector<2x1xf32>
    %cst_186 = arith.constant dense<0.000000e+00> : vector<2xf32>
    %661 = vector.multi_reduction <add>, %652, %cst_186 [1] : vector<2x2xf32> to vector<2xf32>
    %662 = vector.shape_cast %661 : vector<2xf32> to vector<2x1xf32>
    %663 = arith.addf %660, %662 : vector<2x1xf32>
    %cst_187 = arith.constant dense<0.000000e+00> : vector<2xf32>
    %664 = vector.multi_reduction <add>, %655, %cst_187 [1] : vector<2x2xf32> to vector<2xf32>
    %665 = vector.shape_cast %664 : vector<2xf32> to vector<2x1xf32>
    %666 = arith.addf %663, %665 : vector<2x1xf32>
    %cst_188 = arith.constant dense<0.000000e+00> : vector<2xf32>
    %667 = vector.multi_reduction <add>, %658, %cst_188 [1] : vector<2x2xf32> to vector<2xf32>
    %668 = vector.shape_cast %667 : vector<2xf32> to vector<2x1xf32>
    %669 = arith.addf %666, %668 : vector<2x1xf32>
    %cst_189 = arith.constant 0.000000e+00 : f32
    %670 = vector.broadcast %cst_189 : f32 to vector<2x8xf32>
    %671 = arith.truncf %649 : vector<2x2xf32> to vector<2x2xbf16>
    %cst_190 = arith.constant dense<0.000000e+00> : vector<2x8xf32>
    %672 = tpu.matmul %671, %563, %cst_190 {dimension_numbers = #tpu.dot_dimension_numbers<[1], [0], [0], [1], [0, 0, 1, 1], [], []>} : vector<2x2xbf16>, vector<2x8xbf16>, vector<2x8xf32> -> vector<2x8xf32>
    %673 = arith.addf %670, %672 : vector<2x8xf32>
    %674 = arith.truncf %652 : vector<2x2xf32> to vector<2x2xbf16>
    %cst_191 = arith.constant dense<0.000000e+00> : vector<2x8xf32>
    %675 = tpu.matmul %674, %565, %cst_191 {dimension_numbers = #tpu.dot_dimension_numbers<[1], [0], [0], [1], [0, 0, 1, 1], [], []>} : vector<2x2xbf16>, vector<2x8xbf16>, vector<2x8xf32> -> vector<2x8xf32>
    %676 = arith.addf %673, %675 : vector<2x8xf32>
    %677 = arith.truncf %655 : vector<2x2xf32> to vector<2x2xbf16>
    %cst_192 = arith.constant dense<0.000000e+00> : vector<2x8xf32>
    %678 = tpu.matmul %677, %567, %cst_192 {dimension_numbers = #tpu.dot_dimension_numbers<[1], [0], [0], [1], [0, 0, 1, 1], [], []>} : vector<2x2xbf16>, vector<2x8xbf16>, vector<2x8xf32> -> vector<2x8xf32>
    %679 = arith.addf %676, %678 : vector<2x8xf32>
    %680 = arith.truncf %658 : vector<2x2xf32> to vector<2x2xbf16>
    %cst_193 = arith.constant dense<0.000000e+00> : vector<2x8xf32>
    %681 = tpu.matmul %680, %569, %cst_193 {dimension_numbers = #tpu.dot_dimension_numbers<[1], [0], [0], [1], [0, 0, 1, 1], [], []>} : vector<2x2xbf16>, vector<2x8xbf16>, vector<2x8xf32> -> vector<2x8xf32>
    %682 = arith.addf %679, %681 : vector<2x8xf32>
    %683 = tpu.reciprocal %669 {approx = true} : vector<2x1xf32> -> vector<2x1xf32>
    %684 = vector.broadcast %683 : vector<2x1xf32> to vector<2x8xf32>
    %685 = arith.mulf %682, %684 : vector<2x8xf32>
    %686 = arith.truncf %685 : vector<2x8xf32> to vector<2x8xbf16>
    %cst_194 = arith.constant dense<0.000000e+00> : vector<2x32xf32>
    %687 = tpu.matmul %686, %17, %cst_194 {dimension_numbers = #tpu.dot_dimension_numbers<[1], [0], [0], [1], [0, 0, 1, 1], [], []>} : vector<2x8xbf16>, vector<8x32xbf16>, vector<2x32xf32> -> vector<2x32xf32>
    %688 = arith.addf %629, %687 : vector<2x32xf32>
    %689 = vector.extract_strided_slice %551 {offsets = [0, 16], sizes = [2, 8], strides = [1, 1]} : vector<2x32xf32> to vector<2x8xf32>
    %690 = arith.truncf %689 : vector<2x8xf32> to vector<2x8xbf16>
    %cst_195 = arith.constant dense<0.000000e+00> : vector<2x2xf32>
    %691 = tpu.matmul %690, %555, %cst_195 {dimension_numbers = #tpu.dot_dimension_numbers<[1], [1], [0], [0], [0, 0, 1, 0], [], []>} : vector<2x8xbf16>, vector<2x8xbf16>, vector<2x2xf32> -> vector<2x2xf32>
    %cst_196 = arith.constant dense<0.000000e+00> : vector<2x2xf32>
    %692 = tpu.matmul %690, %557, %cst_196 {dimension_numbers = #tpu.dot_dimension_numbers<[1], [1], [0], [0], [0, 0, 1, 0], [], []>} : vector<2x8xbf16>, vector<2x8xbf16>, vector<2x2xf32> -> vector<2x2xf32>
    %cst_197 = arith.constant dense<0.000000e+00> : vector<2x2xf32>
    %693 = tpu.matmul %690, %559, %cst_197 {dimension_numbers = #tpu.dot_dimension_numbers<[1], [1], [0], [0], [0, 0, 1, 0], [], []>} : vector<2x8xbf16>, vector<2x8xbf16>, vector<2x2xf32> -> vector<2x2xf32>
    %cst_198 = arith.constant dense<0.000000e+00> : vector<2x2xf32>
    %694 = tpu.matmul %690, %561, %cst_198 {dimension_numbers = #tpu.dot_dimension_numbers<[1], [1], [0], [0], [0, 0, 1, 0], [], []>} : vector<2x8xbf16>, vector<2x8xbf16>, vector<2x2xf32> -> vector<2x2xf32>
    %cst_199 = arith.constant dense<0xFF800000> : vector<2xf32>
    %695 = vector.multi_reduction <maximumf>, %691, %cst_199 [1] : vector<2x2xf32> to vector<2xf32>
    %696 = vector.shape_cast %695 : vector<2xf32> to vector<2x1xf32>
    %cst_200 = arith.constant dense<0xFF800000> : vector<2xf32>
    %697 = vector.multi_reduction <maximumf>, %692, %cst_200 [1] : vector<2x2xf32> to vector<2xf32>
    %698 = vector.shape_cast %697 : vector<2xf32> to vector<2x1xf32>
    %699 = arith.maximumf %696, %698 : vector<2x1xf32>
    %cst_201 = arith.constant dense<0xFF800000> : vector<2xf32>
    %700 = vector.multi_reduction <maximumf>, %693, %cst_201 [1] : vector<2x2xf32> to vector<2xf32>
    %701 = vector.shape_cast %700 : vector<2xf32> to vector<2x1xf32>
    %702 = arith.maximumf %699, %701 : vector<2x1xf32>
    %cst_202 = arith.constant dense<0xFF800000> : vector<2xf32>
    %703 = vector.multi_reduction <maximumf>, %694, %cst_202 [1] : vector<2x2xf32> to vector<2xf32>
    %704 = vector.shape_cast %703 : vector<2xf32> to vector<2x1xf32>
    %705 = arith.maximumf %702, %704 : vector<2x1xf32>
    %706 = vector.broadcast %705 : vector<2x1xf32> to vector<2x2xf32>
    %707 = arith.subf %691, %706 : vector<2x2xf32>
    %708 = math.exp %707 : vector<2x2xf32>
    %709 = vector.broadcast %705 : vector<2x1xf32> to vector<2x2xf32>
    %710 = arith.subf %692, %709 : vector<2x2xf32>
    %711 = math.exp %710 : vector<2x2xf32>
    %712 = vector.broadcast %705 : vector<2x1xf32> to vector<2x2xf32>
    %713 = arith.subf %693, %712 : vector<2x2xf32>
    %714 = math.exp %713 : vector<2x2xf32>
    %715 = vector.broadcast %705 : vector<2x1xf32> to vector<2x2xf32>
    %716 = arith.subf %694, %715 : vector<2x2xf32>
    %717 = math.exp %716 : vector<2x2xf32>
    %cst_203 = arith.constant dense<0.000000e+00> : vector<2xf32>
    %718 = vector.multi_reduction <add>, %708, %cst_203 [1] : vector<2x2xf32> to vector<2xf32>
    %719 = vector.shape_cast %718 : vector<2xf32> to vector<2x1xf32>
    %cst_204 = arith.constant dense<0.000000e+00> : vector<2xf32>
    %720 = vector.multi_reduction <add>, %711, %cst_204 [1] : vector<2x2xf32> to vector<2xf32>
    %721 = vector.shape_cast %720 : vector<2xf32> to vector<2x1xf32>
    %722 = arith.addf %719, %721 : vector<2x1xf32>
    %cst_205 = arith.constant dense<0.000000e+00> : vector<2xf32>
    %723 = vector.multi_reduction <add>, %714, %cst_205 [1] : vector<2x2xf32> to vector<2xf32>
    %724 = vector.shape_cast %723 : vector<2xf32> to vector<2x1xf32>
    %725 = arith.addf %722, %724 : vector<2x1xf32>
    %cst_206 = arith.constant dense<0.000000e+00> : vector<2xf32>
    %726 = vector.multi_reduction <add>, %717, %cst_206 [1] : vector<2x2xf32> to vector<2xf32>
    %727 = vector.shape_cast %726 : vector<2xf32> to vector<2x1xf32>
    %728 = arith.addf %725, %727 : vector<2x1xf32>
    %cst_207 = arith.constant 0.000000e+00 : f32
    %729 = vector.broadcast %cst_207 : f32 to vector<2x8xf32>
    %730 = arith.truncf %708 : vector<2x2xf32> to vector<2x2xbf16>
    %cst_208 = arith.constant dense<0.000000e+00> : vector<2x8xf32>
    %731 = tpu.matmul %730, %563, %cst_208 {dimension_numbers = #tpu.dot_dimension_numbers<[1], [0], [0], [1], [0, 0, 1, 1], [], []>} : vector<2x2xbf16>, vector<2x8xbf16>, vector<2x8xf32> -> vector<2x8xf32>
    %732 = arith.addf %729, %731 : vector<2x8xf32>
    %733 = arith.truncf %711 : vector<2x2xf32> to vector<2x2xbf16>
    %cst_209 = arith.constant dense<0.000000e+00> : vector<2x8xf32>
    %734 = tpu.matmul %733, %565, %cst_209 {dimension_numbers = #tpu.dot_dimension_numbers<[1], [0], [0], [1], [0, 0, 1, 1], [], []>} : vector<2x2xbf16>, vector<2x8xbf16>, vector<2x8xf32> -> vector<2x8xf32>
    %735 = arith.addf %732, %734 : vector<2x8xf32>
    %736 = arith.truncf %714 : vector<2x2xf32> to vector<2x2xbf16>
    %cst_210 = arith.constant dense<0.000000e+00> : vector<2x8xf32>
    %737 = tpu.matmul %736, %567, %cst_210 {dimension_numbers = #tpu.dot_dimension_numbers<[1], [0], [0], [1], [0, 0, 1, 1], [], []>} : vector<2x2xbf16>, vector<2x8xbf16>, vector<2x8xf32> -> vector<2x8xf32>
    %738 = arith.addf %735, %737 : vector<2x8xf32>
    %739 = arith.truncf %717 : vector<2x2xf32> to vector<2x2xbf16>
    %cst_211 = arith.constant dense<0.000000e+00> : vector<2x8xf32>
    %740 = tpu.matmul %739, %569, %cst_211 {dimension_numbers = #tpu.dot_dimension_numbers<[1], [0], [0], [1], [0, 0, 1, 1], [], []>} : vector<2x2xbf16>, vector<2x8xbf16>, vector<2x8xf32> -> vector<2x8xf32>
    %741 = arith.addf %738, %740 : vector<2x8xf32>
    %742 = tpu.reciprocal %728 {approx = true} : vector<2x1xf32> -> vector<2x1xf32>
    %743 = vector.broadcast %742 : vector<2x1xf32> to vector<2x8xf32>
    %744 = arith.mulf %741, %743 : vector<2x8xf32>
    %745 = arith.truncf %744 : vector<2x8xf32> to vector<2x8xbf16>
    %cst_212 = arith.constant dense<0.000000e+00> : vector<2x32xf32>
    %746 = tpu.matmul %745, %19, %cst_212 {dimension_numbers = #tpu.dot_dimension_numbers<[1], [0], [0], [1], [0, 0, 1, 1], [], []>} : vector<2x8xbf16>, vector<8x32xbf16>, vector<2x32xf32> -> vector<2x32xf32>
    %747 = arith.addf %688, %746 : vector<2x32xf32>
    %748 = vector.extract_strided_slice %551 {offsets = [0, 24], sizes = [2, 8], strides = [1, 1]} : vector<2x32xf32> to vector<2x8xf32>
    %749 = arith.truncf %748 : vector<2x8xf32> to vector<2x8xbf16>
    %cst_213 = arith.constant dense<0.000000e+00> : vector<2x2xf32>
    %750 = tpu.matmul %749, %555, %cst_213 {dimension_numbers = #tpu.dot_dimension_numbers<[1], [1], [0], [0], [0, 0, 1, 0], [], []>} : vector<2x8xbf16>, vector<2x8xbf16>, vector<2x2xf32> -> vector<2x2xf32>
    %cst_214 = arith.constant dense<0.000000e+00> : vector<2x2xf32>
    %751 = tpu.matmul %749, %557, %cst_214 {dimension_numbers = #tpu.dot_dimension_numbers<[1], [1], [0], [0], [0, 0, 1, 0], [], []>} : vector<2x8xbf16>, vector<2x8xbf16>, vector<2x2xf32> -> vector<2x2xf32>
    %cst_215 = arith.constant dense<0.000000e+00> : vector<2x2xf32>
    %752 = tpu.matmul %749, %559, %cst_215 {dimension_numbers = #tpu.dot_dimension_numbers<[1], [1], [0], [0], [0, 0, 1, 0], [], []>} : vector<2x8xbf16>, vector<2x8xbf16>, vector<2x2xf32> -> vector<2x2xf32>
    %cst_216 = arith.constant dense<0.000000e+00> : vector<2x2xf32>
    %753 = tpu.matmul %749, %561, %cst_216 {dimension_numbers = #tpu.dot_dimension_numbers<[1], [1], [0], [0], [0, 0, 1, 0], [], []>} : vector<2x8xbf16>, vector<2x8xbf16>, vector<2x2xf32> -> vector<2x2xf32>
    %cst_217 = arith.constant dense<0xFF800000> : vector<2xf32>
    %754 = vector.multi_reduction <maximumf>, %750, %cst_217 [1] : vector<2x2xf32> to vector<2xf32>
    %755 = vector.shape_cast %754 : vector<2xf32> to vector<2x1xf32>
    %cst_218 = arith.constant dense<0xFF800000> : vector<2xf32>
    %756 = vector.multi_reduction <maximumf>, %751, %cst_218 [1] : vector<2x2xf32> to vector<2xf32>
    %757 = vector.shape_cast %756 : vector<2xf32> to vector<2x1xf32>
    %758 = arith.maximumf %755, %757 : vector<2x1xf32>
    %cst_219 = arith.constant dense<0xFF800000> : vector<2xf32>
    %759 = vector.multi_reduction <maximumf>, %752, %cst_219 [1] : vector<2x2xf32> to vector<2xf32>
    %760 = vector.shape_cast %759 : vector<2xf32> to vector<2x1xf32>
    %761 = arith.maximumf %758, %760 : vector<2x1xf32>
    %cst_220 = arith.constant dense<0xFF800000> : vector<2xf32>
    %762 = vector.multi_reduction <maximumf>, %753, %cst_220 [1] : vector<2x2xf32> to vector<2xf32>
    %763 = vector.shape_cast %762 : vector<2xf32> to vector<2x1xf32>
    %764 = arith.maximumf %761, %763 : vector<2x1xf32>
    %765 = vector.broadcast %764 : vector<2x1xf32> to vector<2x2xf32>
    %766 = arith.subf %750, %765 : vector<2x2xf32>
    %767 = math.exp %766 : vector<2x2xf32>
    %768 = vector.broadcast %764 : vector<2x1xf32> to vector<2x2xf32>
    %769 = arith.subf %751, %768 : vector<2x2xf32>
    %770 = math.exp %769 : vector<2x2xf32>
    %771 = vector.broadcast %764 : vector<2x1xf32> to vector<2x2xf32>
    %772 = arith.subf %752, %771 : vector<2x2xf32>
    %773 = math.exp %772 : vector<2x2xf32>
    %774 = vector.broadcast %764 : vector<2x1xf32> to vector<2x2xf32>
    %775 = arith.subf %753, %774 : vector<2x2xf32>
    %776 = math.exp %775 : vector<2x2xf32>
    %cst_221 = arith.constant dense<0.000000e+00> : vector<2xf32>
    %777 = vector.multi_reduction <add>, %767, %cst_221 [1] : vector<2x2xf32> to vector<2xf32>
    %778 = vector.shape_cast %777 : vector<2xf32> to vector<2x1xf32>
    %cst_222 = arith.constant dense<0.000000e+00> : vector<2xf32>
    %779 = vector.multi_reduction <add>, %770, %cst_222 [1] : vector<2x2xf32> to vector<2xf32>
    %780 = vector.shape_cast %779 : vector<2xf32> to vector<2x1xf32>
    %781 = arith.addf %778, %780 : vector<2x1xf32>
    %cst_223 = arith.constant dense<0.000000e+00> : vector<2xf32>
    %782 = vector.multi_reduction <add>, %773, %cst_223 [1] : vector<2x2xf32> to vector<2xf32>
    %783 = vector.shape_cast %782 : vector<2xf32> to vector<2x1xf32>
    %784 = arith.addf %781, %783 : vector<2x1xf32>
    %cst_224 = arith.constant dense<0.000000e+00> : vector<2xf32>
    %785 = vector.multi_reduction <add>, %776, %cst_224 [1] : vector<2x2xf32> to vector<2xf32>
    %786 = vector.shape_cast %785 : vector<2xf32> to vector<2x1xf32>
    %787 = arith.addf %784, %786 : vector<2x1xf32>
    %cst_225 = arith.constant 0.000000e+00 : f32
    %788 = vector.broadcast %cst_225 : f32 to vector<2x8xf32>
    %789 = arith.truncf %767 : vector<2x2xf32> to vector<2x2xbf16>
    %cst_226 = arith.constant dense<0.000000e+00> : vector<2x8xf32>
    %790 = tpu.matmul %789, %563, %cst_226 {dimension_numbers = #tpu.dot_dimension_numbers<[1], [0], [0], [1], [0, 0, 1, 1], [], []>} : vector<2x2xbf16>, vector<2x8xbf16>, vector<2x8xf32> -> vector<2x8xf32>
    %791 = arith.addf %788, %790 : vector<2x8xf32>
    %792 = arith.truncf %770 : vector<2x2xf32> to vector<2x2xbf16>
    %cst_227 = arith.constant dense<0.000000e+00> : vector<2x8xf32>
    %793 = tpu.matmul %792, %565, %cst_227 {dimension_numbers = #tpu.dot_dimension_numbers<[1], [0], [0], [1], [0, 0, 1, 1], [], []>} : vector<2x2xbf16>, vector<2x8xbf16>, vector<2x8xf32> -> vector<2x8xf32>
    %794 = arith.addf %791, %793 : vector<2x8xf32>
    %795 = arith.truncf %773 : vector<2x2xf32> to vector<2x2xbf16>
    %cst_228 = arith.constant dense<0.000000e+00> : vector<2x8xf32>
    %796 = tpu.matmul %795, %567, %cst_228 {dimension_numbers = #tpu.dot_dimension_numbers<[1], [0], [0], [1], [0, 0, 1, 1], [], []>} : vector<2x2xbf16>, vector<2x8xbf16>, vector<2x8xf32> -> vector<2x8xf32>
    %797 = arith.addf %794, %796 : vector<2x8xf32>
    %798 = arith.truncf %776 : vector<2x2xf32> to vector<2x2xbf16>
    %cst_229 = arith.constant dense<0.000000e+00> : vector<2x8xf32>
    %799 = tpu.matmul %798, %569, %cst_229 {dimension_numbers = #tpu.dot_dimension_numbers<[1], [0], [0], [1], [0, 0, 1, 1], [], []>} : vector<2x2xbf16>, vector<2x8xbf16>, vector<2x8xf32> -> vector<2x8xf32>
    %800 = arith.addf %797, %799 : vector<2x8xf32>
    %801 = tpu.reciprocal %787 {approx = true} : vector<2x1xf32> -> vector<2x1xf32>
    %802 = vector.broadcast %801 : vector<2x1xf32> to vector<2x8xf32>
    %803 = arith.mulf %800, %802 : vector<2x8xf32>
    %804 = arith.truncf %803 : vector<2x8xf32> to vector<2x8xbf16>
    %cst_230 = arith.constant dense<0.000000e+00> : vector<2x32xf32>
    %805 = tpu.matmul %804, %21, %cst_230 {dimension_numbers = #tpu.dot_dimension_numbers<[1], [0], [0], [1], [0, 0, 1, 1], [], []>} : vector<2x8xbf16>, vector<8x32xbf16>, vector<2x32xf32> -> vector<2x32xf32>
    %806 = arith.addf %747, %805 : vector<2x32xf32>
    %c4_i32 = arith.constant 4 : i32
    %807 = vector.broadcast %c4_i32 : i32 to vector<8x2xi32>
    %808 = arith.addi %23, %807 : vector<8x2xi32>
    %809 = arith.cmpi eq, %22, %808 : vector<8x2xi32>
    %810 = arith.extui %809 : vector<8x2xi1> to vector<8x2xi32>
    %811 = arith.sitofp %810 : vector<8x2xi32> to vector<8x2xf32>
    %cst_231 = arith.constant dense<0.000000e+00> : vector<8x32xf32>
    %812 = tpu.matmul %811, %806, %cst_231 {dimension_numbers = #tpu.dot_dimension_numbers<[1], [0], [0], [1], [0, 0, 1, 1], [], []>} : vector<8x2xf32>, vector<2x32xf32>, vector<8x32xf32> -> vector<8x32xf32>
    %813 = arith.addf %550, %812 : vector<8x32xf32>
    %814 = vector.extract_strided_slice %10 {offsets = [6, 0], sizes = [2, 32], strides = [1, 1]} : vector<8x32xf32> to vector<2x32xf32>
    %815 = vector.extract_strided_slice %11 {offsets = [6, 0], sizes = [2, 32], strides = [1, 1]} : vector<8x32xf32> to vector<2x32xf32>
    %816 = vector.extract_strided_slice %12 {offsets = [6, 0], sizes = [2, 32], strides = [1, 1]} : vector<8x32xf32> to vector<2x32xf32>
    %817 = vector.extract_strided_slice %815 {offsets = [0, 0], sizes = [2, 8], strides = [1, 1]} : vector<2x32xf32> to vector<2x8xf32>
    %818 = arith.truncf %817 : vector<2x8xf32> to vector<2x8xbf16>
    %819 = vector.extract_strided_slice %815 {offsets = [0, 8], sizes = [2, 8], strides = [1, 1]} : vector<2x32xf32> to vector<2x8xf32>
    %820 = arith.truncf %819 : vector<2x8xf32> to vector<2x8xbf16>
    %821 = vector.extract_strided_slice %815 {offsets = [0, 16], sizes = [2, 8], strides = [1, 1]} : vector<2x32xf32> to vector<2x8xf32>
    %822 = arith.truncf %821 : vector<2x8xf32> to vector<2x8xbf16>
    %823 = vector.extract_strided_slice %815 {offsets = [0, 24], sizes = [2, 8], strides = [1, 1]} : vector<2x32xf32> to vector<2x8xf32>
    %824 = arith.truncf %823 : vector<2x8xf32> to vector<2x8xbf16>
    %825 = vector.extract_strided_slice %816 {offsets = [0, 0], sizes = [2, 8], strides = [1, 1]} : vector<2x32xf32> to vector<2x8xf32>
    %826 = arith.truncf %825 : vector<2x8xf32> to vector<2x8xbf16>
    %827 = vector.extract_strided_slice %816 {offsets = [0, 8], sizes = [2, 8], strides = [1, 1]} : vector<2x32xf32> to vector<2x8xf32>
    %828 = arith.truncf %827 : vector<2x8xf32> to vector<2x8xbf16>
    %829 = vector.extract_strided_slice %816 {offsets = [0, 16], sizes = [2, 8], strides = [1, 1]} : vector<2x32xf32> to vector<2x8xf32>
    %830 = arith.truncf %829 : vector<2x8xf32> to vector<2x8xbf16>
    %831 = vector.extract_strided_slice %816 {offsets = [0, 24], sizes = [2, 8], strides = [1, 1]} : vector<2x32xf32> to vector<2x8xf32>
    %832 = arith.truncf %831 : vector<2x8xf32> to vector<2x8xbf16>
    %cst_232 = arith.constant 0.000000e+00 : f32
    %833 = vector.broadcast %cst_232 : f32 to vector<2x32xf32>
    %834 = vector.extract_strided_slice %814 {offsets = [0, 0], sizes = [2, 8], strides = [1, 1]} : vector<2x32xf32> to vector<2x8xf32>
    %835 = arith.truncf %834 : vector<2x8xf32> to vector<2x8xbf16>
    %cst_233 = arith.constant dense<0.000000e+00> : vector<2x2xf32>
    %836 = tpu.matmul %835, %818, %cst_233 {dimension_numbers = #tpu.dot_dimension_numbers<[1], [1], [0], [0], [0, 0, 1, 0], [], []>} : vector<2x8xbf16>, vector<2x8xbf16>, vector<2x2xf32> -> vector<2x2xf32>
    %cst_234 = arith.constant dense<0.000000e+00> : vector<2x2xf32>
    %837 = tpu.matmul %835, %820, %cst_234 {dimension_numbers = #tpu.dot_dimension_numbers<[1], [1], [0], [0], [0, 0, 1, 0], [], []>} : vector<2x8xbf16>, vector<2x8xbf16>, vector<2x2xf32> -> vector<2x2xf32>
    %cst_235 = arith.constant dense<0.000000e+00> : vector<2x2xf32>
    %838 = tpu.matmul %835, %822, %cst_235 {dimension_numbers = #tpu.dot_dimension_numbers<[1], [1], [0], [0], [0, 0, 1, 0], [], []>} : vector<2x8xbf16>, vector<2x8xbf16>, vector<2x2xf32> -> vector<2x2xf32>
    %cst_236 = arith.constant dense<0.000000e+00> : vector<2x2xf32>
    %839 = tpu.matmul %835, %824, %cst_236 {dimension_numbers = #tpu.dot_dimension_numbers<[1], [1], [0], [0], [0, 0, 1, 0], [], []>} : vector<2x8xbf16>, vector<2x8xbf16>, vector<2x2xf32> -> vector<2x2xf32>
    %cst_237 = arith.constant dense<0xFF800000> : vector<2xf32>
    %840 = vector.multi_reduction <maximumf>, %836, %cst_237 [1] : vector<2x2xf32> to vector<2xf32>
    %841 = vector.shape_cast %840 : vector<2xf32> to vector<2x1xf32>
    %cst_238 = arith.constant dense<0xFF800000> : vector<2xf32>
    %842 = vector.multi_reduction <maximumf>, %837, %cst_238 [1] : vector<2x2xf32> to vector<2xf32>
    %843 = vector.shape_cast %842 : vector<2xf32> to vector<2x1xf32>
    %844 = arith.maximumf %841, %843 : vector<2x1xf32>
    %cst_239 = arith.constant dense<0xFF800000> : vector<2xf32>
    %845 = vector.multi_reduction <maximumf>, %838, %cst_239 [1] : vector<2x2xf32> to vector<2xf32>
    %846 = vector.shape_cast %845 : vector<2xf32> to vector<2x1xf32>
    %847 = arith.maximumf %844, %846 : vector<2x1xf32>
    %cst_240 = arith.constant dense<0xFF800000> : vector<2xf32>
    %848 = vector.multi_reduction <maximumf>, %839, %cst_240 [1] : vector<2x2xf32> to vector<2xf32>
    %849 = vector.shape_cast %848 : vector<2xf32> to vector<2x1xf32>
    %850 = arith.maximumf %847, %849 : vector<2x1xf32>
    %851 = vector.broadcast %850 : vector<2x1xf32> to vector<2x2xf32>
    %852 = arith.subf %836, %851 : vector<2x2xf32>
    %853 = math.exp %852 : vector<2x2xf32>
    %854 = vector.broadcast %850 : vector<2x1xf32> to vector<2x2xf32>
    %855 = arith.subf %837, %854 : vector<2x2xf32>
    %856 = math.exp %855 : vector<2x2xf32>
    %857 = vector.broadcast %850 : vector<2x1xf32> to vector<2x2xf32>
    %858 = arith.subf %838, %857 : vector<2x2xf32>
    %859 = math.exp %858 : vector<2x2xf32>
    %860 = vector.broadcast %850 : vector<2x1xf32> to vector<2x2xf32>
    %861 = arith.subf %839, %860 : vector<2x2xf32>
    %862 = math.exp %861 : vector<2x2xf32>
    %cst_241 = arith.constant dense<0.000000e+00> : vector<2xf32>
    %863 = vector.multi_reduction <add>, %853, %cst_241 [1] : vector<2x2xf32> to vector<2xf32>
    %864 = vector.shape_cast %863 : vector<2xf32> to vector<2x1xf32>
    %cst_242 = arith.constant dense<0.000000e+00> : vector<2xf32>
    %865 = vector.multi_reduction <add>, %856, %cst_242 [1] : vector<2x2xf32> to vector<2xf32>
    %866 = vector.shape_cast %865 : vector<2xf32> to vector<2x1xf32>
    %867 = arith.addf %864, %866 : vector<2x1xf32>
    %cst_243 = arith.constant dense<0.000000e+00> : vector<2xf32>
    %868 = vector.multi_reduction <add>, %859, %cst_243 [1] : vector<2x2xf32> to vector<2xf32>
    %869 = vector.shape_cast %868 : vector<2xf32> to vector<2x1xf32>
    %870 = arith.addf %867, %869 : vector<2x1xf32>
    %cst_244 = arith.constant dense<0.000000e+00> : vector<2xf32>
    %871 = vector.multi_reduction <add>, %862, %cst_244 [1] : vector<2x2xf32> to vector<2xf32>
    %872 = vector.shape_cast %871 : vector<2xf32> to vector<2x1xf32>
    %873 = arith.addf %870, %872 : vector<2x1xf32>
    %cst_245 = arith.constant 0.000000e+00 : f32
    %874 = vector.broadcast %cst_245 : f32 to vector<2x8xf32>
    %875 = arith.truncf %853 : vector<2x2xf32> to vector<2x2xbf16>
    %cst_246 = arith.constant dense<0.000000e+00> : vector<2x8xf32>
    %876 = tpu.matmul %875, %826, %cst_246 {dimension_numbers = #tpu.dot_dimension_numbers<[1], [0], [0], [1], [0, 0, 1, 1], [], []>} : vector<2x2xbf16>, vector<2x8xbf16>, vector<2x8xf32> -> vector<2x8xf32>
    %877 = arith.addf %874, %876 : vector<2x8xf32>
    %878 = arith.truncf %856 : vector<2x2xf32> to vector<2x2xbf16>
    %cst_247 = arith.constant dense<0.000000e+00> : vector<2x8xf32>
    %879 = tpu.matmul %878, %828, %cst_247 {dimension_numbers = #tpu.dot_dimension_numbers<[1], [0], [0], [1], [0, 0, 1, 1], [], []>} : vector<2x2xbf16>, vector<2x8xbf16>, vector<2x8xf32> -> vector<2x8xf32>
    %880 = arith.addf %877, %879 : vector<2x8xf32>
    %881 = arith.truncf %859 : vector<2x2xf32> to vector<2x2xbf16>
    %cst_248 = arith.constant dense<0.000000e+00> : vector<2x8xf32>
    %882 = tpu.matmul %881, %830, %cst_248 {dimension_numbers = #tpu.dot_dimension_numbers<[1], [0], [0], [1], [0, 0, 1, 1], [], []>} : vector<2x2xbf16>, vector<2x8xbf16>, vector<2x8xf32> -> vector<2x8xf32>
    %883 = arith.addf %880, %882 : vector<2x8xf32>
    %884 = arith.truncf %862 : vector<2x2xf32> to vector<2x2xbf16>
    %cst_249 = arith.constant dense<0.000000e+00> : vector<2x8xf32>
    %885 = tpu.matmul %884, %832, %cst_249 {dimension_numbers = #tpu.dot_dimension_numbers<[1], [0], [0], [1], [0, 0, 1, 1], [], []>} : vector<2x2xbf16>, vector<2x8xbf16>, vector<2x8xf32> -> vector<2x8xf32>
    %886 = arith.addf %883, %885 : vector<2x8xf32>
    %887 = tpu.reciprocal %873 {approx = true} : vector<2x1xf32> -> vector<2x1xf32>
    %888 = vector.broadcast %887 : vector<2x1xf32> to vector<2x8xf32>
    %889 = arith.mulf %886, %888 : vector<2x8xf32>
    %890 = arith.truncf %889 : vector<2x8xf32> to vector<2x8xbf16>
    %cst_250 = arith.constant dense<0.000000e+00> : vector<2x32xf32>
    %891 = tpu.matmul %890, %15, %cst_250 {dimension_numbers = #tpu.dot_dimension_numbers<[1], [0], [0], [1], [0, 0, 1, 1], [], []>} : vector<2x8xbf16>, vector<8x32xbf16>, vector<2x32xf32> -> vector<2x32xf32>
    %892 = arith.addf %833, %891 : vector<2x32xf32>
    %893 = vector.extract_strided_slice %814 {offsets = [0, 8], sizes = [2, 8], strides = [1, 1]} : vector<2x32xf32> to vector<2x8xf32>
    %894 = arith.truncf %893 : vector<2x8xf32> to vector<2x8xbf16>
    %cst_251 = arith.constant dense<0.000000e+00> : vector<2x2xf32>
    %895 = tpu.matmul %894, %818, %cst_251 {dimension_numbers = #tpu.dot_dimension_numbers<[1], [1], [0], [0], [0, 0, 1, 0], [], []>} : vector<2x8xbf16>, vector<2x8xbf16>, vector<2x2xf32> -> vector<2x2xf32>
    %cst_252 = arith.constant dense<0.000000e+00> : vector<2x2xf32>
    %896 = tpu.matmul %894, %820, %cst_252 {dimension_numbers = #tpu.dot_dimension_numbers<[1], [1], [0], [0], [0, 0, 1, 0], [], []>} : vector<2x8xbf16>, vector<2x8xbf16>, vector<2x2xf32> -> vector<2x2xf32>
    %cst_253 = arith.constant dense<0.000000e+00> : vector<2x2xf32>
    %897 = tpu.matmul %894, %822, %cst_253 {dimension_numbers = #tpu.dot_dimension_numbers<[1], [1], [0], [0], [0, 0, 1, 0], [], []>} : vector<2x8xbf16>, vector<2x8xbf16>, vector<2x2xf32> -> vector<2x2xf32>
    %cst_254 = arith.constant dense<0.000000e+00> : vector<2x2xf32>
    %898 = tpu.matmul %894, %824, %cst_254 {dimension_numbers = #tpu.dot_dimension_numbers<[1], [1], [0], [0], [0, 0, 1, 0], [], []>} : vector<2x8xbf16>, vector<2x8xbf16>, vector<2x2xf32> -> vector<2x2xf32>
    %cst_255 = arith.constant dense<0xFF800000> : vector<2xf32>
    %899 = vector.multi_reduction <maximumf>, %895, %cst_255 [1] : vector<2x2xf32> to vector<2xf32>
    %900 = vector.shape_cast %899 : vector<2xf32> to vector<2x1xf32>
    %cst_256 = arith.constant dense<0xFF800000> : vector<2xf32>
    %901 = vector.multi_reduction <maximumf>, %896, %cst_256 [1] : vector<2x2xf32> to vector<2xf32>
    %902 = vector.shape_cast %901 : vector<2xf32> to vector<2x1xf32>
    %903 = arith.maximumf %900, %902 : vector<2x1xf32>
    %cst_257 = arith.constant dense<0xFF800000> : vector<2xf32>
    %904 = vector.multi_reduction <maximumf>, %897, %cst_257 [1] : vector<2x2xf32> to vector<2xf32>
    %905 = vector.shape_cast %904 : vector<2xf32> to vector<2x1xf32>
    %906 = arith.maximumf %903, %905 : vector<2x1xf32>
    %cst_258 = arith.constant dense<0xFF800000> : vector<2xf32>
    %907 = vector.multi_reduction <maximumf>, %898, %cst_258 [1] : vector<2x2xf32> to vector<2xf32>
    %908 = vector.shape_cast %907 : vector<2xf32> to vector<2x1xf32>
    %909 = arith.maximumf %906, %908 : vector<2x1xf32>
    %910 = vector.broadcast %909 : vector<2x1xf32> to vector<2x2xf32>
    %911 = arith.subf %895, %910 : vector<2x2xf32>
    %912 = math.exp %911 : vector<2x2xf32>
    %913 = vector.broadcast %909 : vector<2x1xf32> to vector<2x2xf32>
    %914 = arith.subf %896, %913 : vector<2x2xf32>
    %915 = math.exp %914 : vector<2x2xf32>
    %916 = vector.broadcast %909 : vector<2x1xf32> to vector<2x2xf32>
    %917 = arith.subf %897, %916 : vector<2x2xf32>
    %918 = math.exp %917 : vector<2x2xf32>
    %919 = vector.broadcast %909 : vector<2x1xf32> to vector<2x2xf32>
    %920 = arith.subf %898, %919 : vector<2x2xf32>
    %921 = math.exp %920 : vector<2x2xf32>
    %cst_259 = arith.constant dense<0.000000e+00> : vector<2xf32>
    %922 = vector.multi_reduction <add>, %912, %cst_259 [1] : vector<2x2xf32> to vector<2xf32>
    %923 = vector.shape_cast %922 : vector<2xf32> to vector<2x1xf32>
    %cst_260 = arith.constant dense<0.000000e+00> : vector<2xf32>
    %924 = vector.multi_reduction <add>, %915, %cst_260 [1] : vector<2x2xf32> to vector<2xf32>
    %925 = vector.shape_cast %924 : vector<2xf32> to vector<2x1xf32>
    %926 = arith.addf %923, %925 : vector<2x1xf32>
    %cst_261 = arith.constant dense<0.000000e+00> : vector<2xf32>
    %927 = vector.multi_reduction <add>, %918, %cst_261 [1] : vector<2x2xf32> to vector<2xf32>
    %928 = vector.shape_cast %927 : vector<2xf32> to vector<2x1xf32>
    %929 = arith.addf %926, %928 : vector<2x1xf32>
    %cst_262 = arith.constant dense<0.000000e+00> : vector<2xf32>
    %930 = vector.multi_reduction <add>, %921, %cst_262 [1] : vector<2x2xf32> to vector<2xf32>
    %931 = vector.shape_cast %930 : vector<2xf32> to vector<2x1xf32>
    %932 = arith.addf %929, %931 : vector<2x1xf32>
    %cst_263 = arith.constant 0.000000e+00 : f32
    %933 = vector.broadcast %cst_263 : f32 to vector<2x8xf32>
    %934 = arith.truncf %912 : vector<2x2xf32> to vector<2x2xbf16>
    %cst_264 = arith.constant dense<0.000000e+00> : vector<2x8xf32>
    %935 = tpu.matmul %934, %826, %cst_264 {dimension_numbers = #tpu.dot_dimension_numbers<[1], [0], [0], [1], [0, 0, 1, 1], [], []>} : vector<2x2xbf16>, vector<2x8xbf16>, vector<2x8xf32> -> vector<2x8xf32>
    %936 = arith.addf %933, %935 : vector<2x8xf32>
    %937 = arith.truncf %915 : vector<2x2xf32> to vector<2x2xbf16>
    %cst_265 = arith.constant dense<0.000000e+00> : vector<2x8xf32>
    %938 = tpu.matmul %937, %828, %cst_265 {dimension_numbers = #tpu.dot_dimension_numbers<[1], [0], [0], [1], [0, 0, 1, 1], [], []>} : vector<2x2xbf16>, vector<2x8xbf16>, vector<2x8xf32> -> vector<2x8xf32>
    %939 = arith.addf %936, %938 : vector<2x8xf32>
    %940 = arith.truncf %918 : vector<2x2xf32> to vector<2x2xbf16>
    %cst_266 = arith.constant dense<0.000000e+00> : vector<2x8xf32>
    %941 = tpu.matmul %940, %830, %cst_266 {dimension_numbers = #tpu.dot_dimension_numbers<[1], [0], [0], [1], [0, 0, 1, 1], [], []>} : vector<2x2xbf16>, vector<2x8xbf16>, vector<2x8xf32> -> vector<2x8xf32>
    %942 = arith.addf %939, %941 : vector<2x8xf32>
    %943 = arith.truncf %921 : vector<2x2xf32> to vector<2x2xbf16>
    %cst_267 = arith.constant dense<0.000000e+00> : vector<2x8xf32>
    %944 = tpu.matmul %943, %832, %cst_267 {dimension_numbers = #tpu.dot_dimension_numbers<[1], [0], [0], [1], [0, 0, 1, 1], [], []>} : vector<2x2xbf16>, vector<2x8xbf16>, vector<2x8xf32> -> vector<2x8xf32>
    %945 = arith.addf %942, %944 : vector<2x8xf32>
    %946 = tpu.reciprocal %932 {approx = true} : vector<2x1xf32> -> vector<2x1xf32>
    %947 = vector.broadcast %946 : vector<2x1xf32> to vector<2x8xf32>
    %948 = arith.mulf %945, %947 : vector<2x8xf32>
    %949 = arith.truncf %948 : vector<2x8xf32> to vector<2x8xbf16>
    %cst_268 = arith.constant dense<0.000000e+00> : vector<2x32xf32>
    %950 = tpu.matmul %949, %17, %cst_268 {dimension_numbers = #tpu.dot_dimension_numbers<[1], [0], [0], [1], [0, 0, 1, 1], [], []>} : vector<2x8xbf16>, vector<8x32xbf16>, vector<2x32xf32> -> vector<2x32xf32>
    %951 = arith.addf %892, %950 : vector<2x32xf32>
    %952 = vector.extract_strided_slice %814 {offsets = [0, 16], sizes = [2, 8], strides = [1, 1]} : vector<2x32xf32> to vector<2x8xf32>
    %953 = arith.truncf %952 : vector<2x8xf32> to vector<2x8xbf16>
    %cst_269 = arith.constant dense<0.000000e+00> : vector<2x2xf32>
    %954 = tpu.matmul %953, %818, %cst_269 {dimension_numbers = #tpu.dot_dimension_numbers<[1], [1], [0], [0], [0, 0, 1, 0], [], []>} : vector<2x8xbf16>, vector<2x8xbf16>, vector<2x2xf32> -> vector<2x2xf32>
    %cst_270 = arith.constant dense<0.000000e+00> : vector<2x2xf32>
    %955 = tpu.matmul %953, %820, %cst_270 {dimension_numbers = #tpu.dot_dimension_numbers<[1], [1], [0], [0], [0, 0, 1, 0], [], []>} : vector<2x8xbf16>, vector<2x8xbf16>, vector<2x2xf32> -> vector<2x2xf32>
    %cst_271 = arith.constant dense<0.000000e+00> : vector<2x2xf32>
    %956 = tpu.matmul %953, %822, %cst_271 {dimension_numbers = #tpu.dot_dimension_numbers<[1], [1], [0], [0], [0, 0, 1, 0], [], []>} : vector<2x8xbf16>, vector<2x8xbf16>, vector<2x2xf32> -> vector<2x2xf32>
    %cst_272 = arith.constant dense<0.000000e+00> : vector<2x2xf32>
    %957 = tpu.matmul %953, %824, %cst_272 {dimension_numbers = #tpu.dot_dimension_numbers<[1], [1], [0], [0], [0, 0, 1, 0], [], []>} : vector<2x8xbf16>, vector<2x8xbf16>, vector<2x2xf32> -> vector<2x2xf32>
    %cst_273 = arith.constant dense<0xFF800000> : vector<2xf32>
    %958 = vector.multi_reduction <maximumf>, %954, %cst_273 [1] : vector<2x2xf32> to vector<2xf32>
    %959 = vector.shape_cast %958 : vector<2xf32> to vector<2x1xf32>
    %cst_274 = arith.constant dense<0xFF800000> : vector<2xf32>
    %960 = vector.multi_reduction <maximumf>, %955, %cst_274 [1] : vector<2x2xf32> to vector<2xf32>
    %961 = vector.shape_cast %960 : vector<2xf32> to vector<2x1xf32>
    %962 = arith.maximumf %959, %961 : vector<2x1xf32>
    %cst_275 = arith.constant dense<0xFF800000> : vector<2xf32>
    %963 = vector.multi_reduction <maximumf>, %956, %cst_275 [1] : vector<2x2xf32> to vector<2xf32>
    %964 = vector.shape_cast %963 : vector<2xf32> to vector<2x1xf32>
    %965 = arith.maximumf %962, %964 : vector<2x1xf32>
    %cst_276 = arith.constant dense<0xFF800000> : vector<2xf32>
    %966 = vector.multi_reduction <maximumf>, %957, %cst_276 [1] : vector<2x2xf32> to vector<2xf32>
    %967 = vector.shape_cast %966 : vector<2xf32> to vector<2x1xf32>
    %968 = arith.maximumf %965, %967 : vector<2x1xf32>
    %969 = vector.broadcast %968 : vector<2x1xf32> to vector<2x2xf32>
    %970 = arith.subf %954, %969 : vector<2x2xf32>
    %971 = math.exp %970 : vector<2x2xf32>
    %972 = vector.broadcast %968 : vector<2x1xf32> to vector<2x2xf32>
    %973 = arith.subf %955, %972 : vector<2x2xf32>
    %974 = math.exp %973 : vector<2x2xf32>
    %975 = vector.broadcast %968 : vector<2x1xf32> to vector<2x2xf32>
    %976 = arith.subf %956, %975 : vector<2x2xf32>
    %977 = math.exp %976 : vector<2x2xf32>
    %978 = vector.broadcast %968 : vector<2x1xf32> to vector<2x2xf32>
    %979 = arith.subf %957, %978 : vector<2x2xf32>
    %980 = math.exp %979 : vector<2x2xf32>
    %cst_277 = arith.constant dense<0.000000e+00> : vector<2xf32>
    %981 = vector.multi_reduction <add>, %971, %cst_277 [1] : vector<2x2xf32> to vector<2xf32>
    %982 = vector.shape_cast %981 : vector<2xf32> to vector<2x1xf32>
    %cst_278 = arith.constant dense<0.000000e+00> : vector<2xf32>
    %983 = vector.multi_reduction <add>, %974, %cst_278 [1] : vector<2x2xf32> to vector<2xf32>
    %984 = vector.shape_cast %983 : vector<2xf32> to vector<2x1xf32>
    %985 = arith.addf %982, %984 : vector<2x1xf32>
    %cst_279 = arith.constant dense<0.000000e+00> : vector<2xf32>
    %986 = vector.multi_reduction <add>, %977, %cst_279 [1] : vector<2x2xf32> to vector<2xf32>
    %987 = vector.shape_cast %986 : vector<2xf32> to vector<2x1xf32>
    %988 = arith.addf %985, %987 : vector<2x1xf32>
    %cst_280 = arith.constant dense<0.000000e+00> : vector<2xf32>
    %989 = vector.multi_reduction <add>, %980, %cst_280 [1] : vector<2x2xf32> to vector<2xf32>
    %990 = vector.shape_cast %989 : vector<2xf32> to vector<2x1xf32>
    %991 = arith.addf %988, %990 : vector<2x1xf32>
    %cst_281 = arith.constant 0.000000e+00 : f32
    %992 = vector.broadcast %cst_281 : f32 to vector<2x8xf32>
    %993 = arith.truncf %971 : vector<2x2xf32> to vector<2x2xbf16>
    %cst_282 = arith.constant dense<0.000000e+00> : vector<2x8xf32>
    %994 = tpu.matmul %993, %826, %cst_282 {dimension_numbers = #tpu.dot_dimension_numbers<[1], [0], [0], [1], [0, 0, 1, 1], [], []>} : vector<2x2xbf16>, vector<2x8xbf16>, vector<2x8xf32> -> vector<2x8xf32>
    %995 = arith.addf %992, %994 : vector<2x8xf32>
    %996 = arith.truncf %974 : vector<2x2xf32> to vector<2x2xbf16>
    %cst_283 = arith.constant dense<0.000000e+00> : vector<2x8xf32>
    %997 = tpu.matmul %996, %828, %cst_283 {dimension_numbers = #tpu.dot_dimension_numbers<[1], [0], [0], [1], [0, 0, 1, 1], [], []>} : vector<2x2xbf16>, vector<2x8xbf16>, vector<2x8xf32> -> vector<2x8xf32>
    %998 = arith.addf %995, %997 : vector<2x8xf32>
    %999 = arith.truncf %977 : vector<2x2xf32> to vector<2x2xbf16>
    %cst_284 = arith.constant dense<0.000000e+00> : vector<2x8xf32>
    %1000 = tpu.matmul %999, %830, %cst_284 {dimension_numbers = #tpu.dot_dimension_numbers<[1], [0], [0], [1], [0, 0, 1, 1], [], []>} : vector<2x2xbf16>, vector<2x8xbf16>, vector<2x8xf32> -> vector<2x8xf32>
    %1001 = arith.addf %998, %1000 : vector<2x8xf32>
    %1002 = arith.truncf %980 : vector<2x2xf32> to vector<2x2xbf16>
    %cst_285 = arith.constant dense<0.000000e+00> : vector<2x8xf32>
    %1003 = tpu.matmul %1002, %832, %cst_285 {dimension_numbers = #tpu.dot_dimension_numbers<[1], [0], [0], [1], [0, 0, 1, 1], [], []>} : vector<2x2xbf16>, vector<2x8xbf16>, vector<2x8xf32> -> vector<2x8xf32>
    %1004 = arith.addf %1001, %1003 : vector<2x8xf32>
    %1005 = tpu.reciprocal %991 {approx = true} : vector<2x1xf32> -> vector<2x1xf32>
    %1006 = vector.broadcast %1005 : vector<2x1xf32> to vector<2x8xf32>
    %1007 = arith.mulf %1004, %1006 : vector<2x8xf32>
    %1008 = arith.truncf %1007 : vector<2x8xf32> to vector<2x8xbf16>
    %cst_286 = arith.constant dense<0.000000e+00> : vector<2x32xf32>
    %1009 = tpu.matmul %1008, %19, %cst_286 {dimension_numbers = #tpu.dot_dimension_numbers<[1], [0], [0], [1], [0, 0, 1, 1], [], []>} : vector<2x8xbf16>, vector<8x32xbf16>, vector<2x32xf32> -> vector<2x32xf32>
    %1010 = arith.addf %951, %1009 : vector<2x32xf32>
    %1011 = vector.extract_strided_slice %814 {offsets = [0, 24], sizes = [2, 8], strides = [1, 1]} : vector<2x32xf32> to vector<2x8xf32>
    %1012 = arith.truncf %1011 : vector<2x8xf32> to vector<2x8xbf16>
    %cst_287 = arith.constant dense<0.000000e+00> : vector<2x2xf32>
    %1013 = tpu.matmul %1012, %818, %cst_287 {dimension_numbers = #tpu.dot_dimension_numbers<[1], [1], [0], [0], [0, 0, 1, 0], [], []>} : vector<2x8xbf16>, vector<2x8xbf16>, vector<2x2xf32> -> vector<2x2xf32>
    %cst_288 = arith.constant dense<0.000000e+00> : vector<2x2xf32>
    %1014 = tpu.matmul %1012, %820, %cst_288 {dimension_numbers = #tpu.dot_dimension_numbers<[1], [1], [0], [0], [0, 0, 1, 0], [], []>} : vector<2x8xbf16>, vector<2x8xbf16>, vector<2x2xf32> -> vector<2x2xf32>
    %cst_289 = arith.constant dense<0.000000e+00> : vector<2x2xf32>
    %1015 = tpu.matmul %1012, %822, %cst_289 {dimension_numbers = #tpu.dot_dimension_numbers<[1], [1], [0], [0], [0, 0, 1, 0], [], []>} : vector<2x8xbf16>, vector<2x8xbf16>, vector<2x2xf32> -> vector<2x2xf32>
    %cst_290 = arith.constant dense<0.000000e+00> : vector<2x2xf32>
    %1016 = tpu.matmul %1012, %824, %cst_290 {dimension_numbers = #tpu.dot_dimension_numbers<[1], [1], [0], [0], [0, 0, 1, 0], [], []>} : vector<2x8xbf16>, vector<2x8xbf16>, vector<2x2xf32> -> vector<2x2xf32>
    %cst_291 = arith.constant dense<0xFF800000> : vector<2xf32>
    %1017 = vector.multi_reduction <maximumf>, %1013, %cst_291 [1] : vector<2x2xf32> to vector<2xf32>
    %1018 = vector.shape_cast %1017 : vector<2xf32> to vector<2x1xf32>
    %cst_292 = arith.constant dense<0xFF800000> : vector<2xf32>
    %1019 = vector.multi_reduction <maximumf>, %1014, %cst_292 [1] : vector<2x2xf32> to vector<2xf32>
    %1020 = vector.shape_cast %1019 : vector<2xf32> to vector<2x1xf32>
    %1021 = arith.maximumf %1018, %1020 : vector<2x1xf32>
    %cst_293 = arith.constant dense<0xFF800000> : vector<2xf32>
    %1022 = vector.multi_reduction <maximumf>, %1015, %cst_293 [1] : vector<2x2xf32> to vector<2xf32>
    %1023 = vector.shape_cast %1022 : vector<2xf32> to vector<2x1xf32>
    %1024 = arith.maximumf %1021, %1023 : vector<2x1xf32>
    %cst_294 = arith.constant dense<0xFF800000> : vector<2xf32>
    %1025 = vector.multi_reduction <maximumf>, %1016, %cst_294 [1] : vector<2x2xf32> to vector<2xf32>
    %1026 = vector.shape_cast %1025 : vector<2xf32> to vector<2x1xf32>
    %1027 = arith.maximumf %1024, %1026 : vector<2x1xf32>
    %1028 = vector.broadcast %1027 : vector<2x1xf32> to vector<2x2xf32>
    %1029 = arith.subf %1013, %1028 : vector<2x2xf32>
    %1030 = math.exp %1029 : vector<2x2xf32>
    %1031 = vector.broadcast %1027 : vector<2x1xf32> to vector<2x2xf32>
    %1032 = arith.subf %1014, %1031 : vector<2x2xf32>
    %1033 = math.exp %1032 : vector<2x2xf32>
    %1034 = vector.broadcast %1027 : vector<2x1xf32> to vector<2x2xf32>
    %1035 = arith.subf %1015, %1034 : vector<2x2xf32>
    %1036 = math.exp %1035 : vector<2x2xf32>
    %1037 = vector.broadcast %1027 : vector<2x1xf32> to vector<2x2xf32>
    %1038 = arith.subf %1016, %1037 : vector<2x2xf32>
    %1039 = math.exp %1038 : vector<2x2xf32>
    %cst_295 = arith.constant dense<0.000000e+00> : vector<2xf32>
    %1040 = vector.multi_reduction <add>, %1030, %cst_295 [1] : vector<2x2xf32> to vector<2xf32>
    %1041 = vector.shape_cast %1040 : vector<2xf32> to vector<2x1xf32>
    %cst_296 = arith.constant dense<0.000000e+00> : vector<2xf32>
    %1042 = vector.multi_reduction <add>, %1033, %cst_296 [1] : vector<2x2xf32> to vector<2xf32>
    %1043 = vector.shape_cast %1042 : vector<2xf32> to vector<2x1xf32>
    %1044 = arith.addf %1041, %1043 : vector<2x1xf32>
    %cst_297 = arith.constant dense<0.000000e+00> : vector<2xf32>
    %1045 = vector.multi_reduction <add>, %1036, %cst_297 [1] : vector<2x2xf32> to vector<2xf32>
    %1046 = vector.shape_cast %1045 : vector<2xf32> to vector<2x1xf32>
    %1047 = arith.addf %1044, %1046 : vector<2x1xf32>
    %cst_298 = arith.constant dense<0.000000e+00> : vector<2xf32>
    %1048 = vector.multi_reduction <add>, %1039, %cst_298 [1] : vector<2x2xf32> to vector<2xf32>
    %1049 = vector.shape_cast %1048 : vector<2xf32> to vector<2x1xf32>
    %1050 = arith.addf %1047, %1049 : vector<2x1xf32>
    %cst_299 = arith.constant 0.000000e+00 : f32
    %1051 = vector.broadcast %cst_299 : f32 to vector<2x8xf32>
    %1052 = arith.truncf %1030 : vector<2x2xf32> to vector<2x2xbf16>
    %cst_300 = arith.constant dense<0.000000e+00> : vector<2x8xf32>
    %1053 = tpu.matmul %1052, %826, %cst_300 {dimension_numbers = #tpu.dot_dimension_numbers<[1], [0], [0], [1], [0, 0, 1, 1], [], []>} : vector<2x2xbf16>, vector<2x8xbf16>, vector<2x8xf32> -> vector<2x8xf32>
    %1054 = arith.addf %1051, %1053 : vector<2x8xf32>
    %1055 = arith.truncf %1033 : vector<2x2xf32> to vector<2x2xbf16>
    %cst_301 = arith.constant dense<0.000000e+00> : vector<2x8xf32>
    %1056 = tpu.matmul %1055, %828, %cst_301 {dimension_numbers = #tpu.dot_dimension_numbers<[1], [0], [0], [1], [0, 0, 1, 1], [], []>} : vector<2x2xbf16>, vector<2x8xbf16>, vector<2x8xf32> -> vector<2x8xf32>
    %1057 = arith.addf %1054, %1056 : vector<2x8xf32>
    %1058 = arith.truncf %1036 : vector<2x2xf32> to vector<2x2xbf16>
    %cst_302 = arith.constant dense<0.000000e+00> : vector<2x8xf32>
    %1059 = tpu.matmul %1058, %830, %cst_302 {dimension_numbers = #tpu.dot_dimension_numbers<[1], [0], [0], [1], [0, 0, 1, 1], [], []>} : vector<2x2xbf16>, vector<2x8xbf16>, vector<2x8xf32> -> vector<2x8xf32>
    %1060 = arith.addf %1057, %1059 : vector<2x8xf32>
    %1061 = arith.truncf %1039 : vector<2x2xf32> to vector<2x2xbf16>
    %cst_303 = arith.constant dense<0.000000e+00> : vector<2x8xf32>
    %1062 = tpu.matmul %1061, %832, %cst_303 {dimension_numbers = #tpu.dot_dimension_numbers<[1], [0], [0], [1], [0, 0, 1, 1], [], []>} : vector<2x2xbf16>, vector<2x8xbf16>, vector<2x8xf32> -> vector<2x8xf32>
    %1063 = arith.addf %1060, %1062 : vector<2x8xf32>
    %1064 = tpu.reciprocal %1050 {approx = true} : vector<2x1xf32> -> vector<2x1xf32>
    %1065 = vector.broadcast %1064 : vector<2x1xf32> to vector<2x8xf32>
    %1066 = arith.mulf %1063, %1065 : vector<2x8xf32>
    %1067 = arith.truncf %1066 : vector<2x8xf32> to vector<2x8xbf16>
    %cst_304 = arith.constant dense<0.000000e+00> : vector<2x32xf32>
    %1068 = tpu.matmul %1067, %21, %cst_304 {dimension_numbers = #tpu.dot_dimension_numbers<[1], [0], [0], [1], [0, 0, 1, 1], [], []>} : vector<2x8xbf16>, vector<8x32xbf16>, vector<2x32xf32> -> vector<2x32xf32>
    %1069 = arith.addf %1010, %1068 : vector<2x32xf32>
    %c6_i32 = arith.constant 6 : i32
    %1070 = vector.broadcast %c6_i32 : i32 to vector<8x2xi32>
    %1071 = arith.addi %23, %1070 : vector<8x2xi32>
    %1072 = arith.cmpi eq, %22, %1071 : vector<8x2xi32>
    %1073 = arith.extui %1072 : vector<8x2xi1> to vector<8x2xi32>
    %1074 = arith.sitofp %1073 : vector<8x2xi32> to vector<8x2xf32>
    %cst_305 = arith.constant dense<0.000000e+00> : vector<8x32xf32>
    %1075 = tpu.matmul %1074, %1069, %cst_305 {dimension_numbers = #tpu.dot_dimension_numbers<[1], [0], [0], [1], [0, 0, 1, 1], [], []>} : vector<8x2xf32>, vector<2x32xf32>, vector<8x32xf32> -> vector<8x32xf32>
    %1076 = arith.addf %813, %1075 : vector<8x32xf32>
    %c0_306 = arith.constant 0 : index
    %c0_307 = arith.constant 0 : index
    %1077 = vector.load %arg5[%c0_306, %c0_307] : memref<1x32xf32, #tpu.memory_space<vmem>>, vector<1x32xf32>
    %1078 = vector.broadcast %1077 : vector<1x32xf32> to vector<8x32xf32>
    %1079 = arith.addf %1076, %1078 : vector<8x32xf32>
    %1080 = arith.addf %1079, %1 : vector<8x32xf32>
    %cst_308 = arith.constant dense<0.000000e+00> : vector<8xf32>
    %1081 = vector.multi_reduction <add>, %1080, %cst_308 [1] : vector<8x32xf32> to vector<8xf32>
    %1082 = vector.shape_cast %1081 : vector<8xf32> to vector<8x1xf32>
    %cst_309 = arith.constant 3.200000e+01 : f32
    %1083 = vector.broadcast %cst_309 : f32 to vector<8x1xf32>
    %1084 = arith.divf %1082, %1083 : vector<8x1xf32>
    %1085 = vector.broadcast %1084 : vector<8x1xf32> to vector<8x32xf32>
    %1086 = arith.subf %1080, %1085 : vector<8x32xf32>
    %1087 = arith.mulf %1086, %1086 : vector<8x32xf32>
    %cst_310 = arith.constant dense<0.000000e+00> : vector<8xf32>
    %1088 = vector.multi_reduction <add>, %1087, %cst_310 [1] : vector<8x32xf32> to vector<8xf32>
    %1089 = vector.shape_cast %1088 : vector<8xf32> to vector<8x1xf32>
    %cst_311 = arith.constant 3.200000e+01 : f32
    %1090 = vector.broadcast %cst_311 : f32 to vector<8x1xf32>
    %1091 = arith.divf %1089, %1090 : vector<8x1xf32>
    %1092 = vector.broadcast %1084 : vector<8x1xf32> to vector<8x32xf32>
    %1093 = arith.subf %1080, %1092 : vector<8x32xf32>
    %cst_312 = arith.constant 9.99999974E-6 : f32
    %1094 = vector.broadcast %cst_312 : f32 to vector<8x1xf32>
    %1095 = arith.addf %1091, %1094 : vector<8x1xf32>
    %1096 = math.rsqrt %1095 : vector<8x1xf32>
    %1097 = vector.broadcast %1096 : vector<8x1xf32> to vector<8x32xf32>
    %1098 = arith.mulf %1093, %1097 : vector<8x32xf32>
    %c0_313 = arith.constant 0 : index
    %c0_314 = arith.constant 0 : index
    %1099 = vector.load %arg6[%c0_313, %c0_314] : memref<1x32xf32, #tpu.memory_space<vmem>>, vector<1x32xf32>
    %1100 = vector.broadcast %1099 : vector<1x32xf32> to vector<8x32xf32>
    %1101 = arith.mulf %1098, %1100 : vector<8x32xf32>
    %c0_315 = arith.constant 0 : index
    %c0_316 = arith.constant 0 : index
    %1102 = vector.load %arg7[%c0_315, %c0_316] : memref<1x32xf32, #tpu.memory_space<vmem>>, vector<1x32xf32>
    %1103 = vector.broadcast %1102 : vector<1x32xf32> to vector<8x32xf32>
    %1104 = arith.addf %1101, %1103 : vector<8x32xf32>
    %1105 = arith.truncf %1104 : vector<8x32xf32> to vector<8x32xbf16>
    %c0_317 = arith.constant 0 : index
    %c0_318 = arith.constant 0 : index
    %1106 = vector.load %arg8[%c0_317, %c0_318] : memref<32x64xbf16, #tpu.memory_space<vmem>>, vector<32x64xbf16>
    %cst_319 = arith.constant dense<0.000000e+00> : vector<8x64xf32>
    %1107 = tpu.matmul %1105, %1106, %cst_319 {dimension_numbers = #tpu.dot_dimension_numbers<[1], [0], [0], [1], [0, 0, 1, 1], [], []>} : vector<8x32xbf16>, vector<32x64xbf16>, vector<8x64xf32> -> vector<8x64xf32>
    %c0_320 = arith.constant 0 : index
    %c0_321 = arith.constant 0 : index
    %1108 = vector.load %arg9[%c0_320, %c0_321] : memref<1x64xf32, #tpu.memory_space<vmem>>, vector<1x64xf32>
    %1109 = vector.broadcast %1108 : vector<1x64xf32> to vector<8x64xf32>
    %1110 = arith.addf %1107, %1109 : vector<8x64xf32>
    %cst_322 = arith.constant 0.000000e+00 : f32
    %1111 = vector.broadcast %cst_322 : f32 to vector<8x64xf32>
    %1112 = arith.maximumf %1110, %1111 : vector<8x64xf32>
    %1113 = arith.truncf %1112 : vector<8x64xf32> to vector<8x64xbf16>
    %c0_323 = arith.constant 0 : index
    %c0_324 = arith.constant 0 : index
    %1114 = vector.load %arg10[%c0_323, %c0_324] : memref<64x32xbf16, #tpu.memory_space<vmem>>, vector<64x32xbf16>
    %cst_325 = arith.constant dense<0.000000e+00> : vector<8x32xf32>
    %1115 = tpu.matmul %1113, %1114, %cst_325 {dimension_numbers = #tpu.dot_dimension_numbers<[1], [0], [0], [1], [0, 0, 1, 1], [], []>} : vector<8x64xbf16>, vector<64x32xbf16>, vector<8x32xf32> -> vector<8x32xf32>
    %c0_326 = arith.constant 0 : index
    %c0_327 = arith.constant 0 : index
    %1116 = vector.load %arg11[%c0_326, %c0_327] : memref<1x32xf32, #tpu.memory_space<vmem>>, vector<1x32xf32>
    %1117 = vector.broadcast %1116 : vector<1x32xf32> to vector<8x32xf32>
    %1118 = arith.addf %1115, %1117 : vector<8x32xf32>
    %1119 = arith.addf %1118, %1104 : vector<8x32xf32>
    %cst_328 = arith.constant dense<0.000000e+00> : vector<8xf32>
    %1120 = vector.multi_reduction <add>, %1119, %cst_328 [1] : vector<8x32xf32> to vector<8xf32>
    %1121 = vector.shape_cast %1120 : vector<8xf32> to vector<8x1xf32>
    %cst_329 = arith.constant 3.200000e+01 : f32
    %1122 = vector.broadcast %cst_329 : f32 to vector<8x1xf32>
    %1123 = arith.divf %1121, %1122 : vector<8x1xf32>
    %1124 = vector.broadcast %1123 : vector<8x1xf32> to vector<8x32xf32>
    %1125 = arith.subf %1119, %1124 : vector<8x32xf32>
    %1126 = arith.mulf %1125, %1125 : vector<8x32xf32>
    %cst_330 = arith.constant dense<0.000000e+00> : vector<8xf32>
    %1127 = vector.multi_reduction <add>, %1126, %cst_330 [1] : vector<8x32xf32> to vector<8xf32>
    %1128 = vector.shape_cast %1127 : vector<8xf32> to vector<8x1xf32>
    %cst_331 = arith.constant 3.200000e+01 : f32
    %1129 = vector.broadcast %cst_331 : f32 to vector<8x1xf32>
    %1130 = arith.divf %1128, %1129 : vector<8x1xf32>
    %1131 = vector.broadcast %1123 : vector<8x1xf32> to vector<8x32xf32>
    %1132 = arith.subf %1119, %1131 : vector<8x32xf32>
    %cst_332 = arith.constant 9.99999974E-6 : f32
    %1133 = vector.broadcast %cst_332 : f32 to vector<8x1xf32>
    %1134 = arith.addf %1130, %1133 : vector<8x1xf32>
    %1135 = math.rsqrt %1134 : vector<8x1xf32>
    %1136 = vector.broadcast %1135 : vector<8x1xf32> to vector<8x32xf32>
    %1137 = arith.mulf %1132, %1136 : vector<8x32xf32>
    %c0_333 = arith.constant 0 : index
    %c0_334 = arith.constant 0 : index
    %1138 = vector.load %arg12[%c0_333, %c0_334] : memref<1x32xf32, #tpu.memory_space<vmem>>, vector<1x32xf32>
    %1139 = vector.broadcast %1138 : vector<1x32xf32> to vector<8x32xf32>
    %1140 = arith.mulf %1137, %1139 : vector<8x32xf32>
    %c0_335 = arith.constant 0 : index
    %c0_336 = arith.constant 0 : index
    %1141 = vector.load %arg13[%c0_335, %c0_336] : memref<1x32xf32, #tpu.memory_space<vmem>>, vector<1x32xf32>
    %1142 = vector.broadcast %1141 : vector<1x32xf32> to vector<8x32xf32>
    %1143 = arith.addf %1140, %1142 : vector<8x32xf32>
    %c0_337 = arith.constant 0 : index
    %c0_338 = arith.constant 0 : index
    %c0_339 = arith.constant 0 : index
    %1144 = vector.load %arg14[%c0_337, %c0_338, %c0_339] : memref<1x8x32xf32, #tpu.memory_space<vmem>>, vector<1x8x32xf32>
    %1145 = vector.shape_cast %1144 : vector<1x8x32xf32> to vector<8x32xf32>
    %1146 = vector.shape_cast %1143 : vector<8x32xf32> to vector<1x8x32xf32>
    tpu.vector_store %arg14[%c0_337, %c0_338, %c0_339], %1146 {strides = array<i32>} : memref<1x8x32xf32, #tpu.memory_space<vmem>>, vector<1x8x32xf32>,
    return
  }
  func.func @transform_0(%arg0: i32) -> (i32, i32, i32) {
    %c0_i32 = arith.constant 0 : i32
    %c0_i32_0 = arith.constant 0 : i32
    %c0_i32_1 = arith.constant 0 : i32
    return %arg0, %c0_i32, %c0_i32_0 : i32, i32, i32
  }
  func.func @transform_1(%arg0: i32) -> (i32, i32) {
    %c0_i32 = arith.constant 0 : i32
    %c0_i32_0 = arith.constant 0 : i32
    %c0_i32_1 = arith.constant 0 : i32
    return %c0_i32, %c0_i32_0 : i32, i32
  }
  func.func @transform_2(%arg0: i32) -> (i32, i32) {
    %c0_i32 = arith.constant 0 : i32
    %c0_i32_0 = arith.constant 0 : i32
    %c0_i32_1 = arith.constant 0 : i32
    return %c0_i32, %c0_i32_0 : i32, i32
  }
  func.func @transform_3(%arg0: i32) -> (i32, i32) {
    %c0_i32 = arith.constant 0 : i32
    %c0_i32_0 = arith.constant 0 : i32
    %c0_i32_1 = arith.constant 0 : i32
    return %c0_i32, %c0_i32_0 : i32, i32
  }
  func.func @transform_4(%arg0: i32) -> (i32, i32) {
    %c0_i32 = arith.constant 0 : i32
    %c0_i32_0 = arith.constant 0 : i32
    %c0_i32_1 = arith.constant 0 : i32
    return %c0_i32, %c0_i32_0 : i32, i32
  }
  func.func @transform_5(%arg0: i32) -> (i32, i32) {
    %c0_i32 = arith.constant 0 : i32
    %c0_i32_0 = arith.constant 0 : i32
    %c0_i32_1 = arith.constant 0 : i32
    return %c0_i32, %c0_i32_0 : i32, i32
  }
  func.func @transform_6(%arg0: i32) -> (i32, i32) {
    %c0_i32 = arith.constant 0 : i32
    %c0_i32_0 = arith.constant 0 : i32
    %c0_i32_1 = arith.constant 0 : i32
    return %c0_i32, %c0_i32_0 : i32, i32
  }
  func.func @transform_7(%arg0: i32) -> (i32, i32) {
    %c0_i32 = arith.constant 0 : i32
    %c0_i32_0 = arith.constant 0 : i32
    %c0_i32_1 = arith.constant 0 : i32
    return %c0_i32, %c0_i32_0 : i32, i32
  }
  func.func @transform_8(%arg0: i32) -> (i32, i32) {
    %c0_i32 = arith.constant 0 : i32
    %c0_i32_0 = arith.constant 0 : i32
    %c0_i32_1 = arith.constant 0 : i32
    return %c0_i32, %c0_i32_0 : i32, i32
  }
  func.func @transform_9(%arg0: i32) -> (i32, i32) {
    %c0_i32 = arith.constant 0 : i32
    %c0_i32_0 = arith.constant 0 : i32
    %c0_i32_1 = arith.constant 0 : i32
    return %c0_i32, %c0_i32_0 : i32, i32
  }
  func.func @transform_10(%arg0: i32) -> (i32, i32) {
    %c0_i32 = arith.constant 0 : i32
    %c0_i32_0 = arith.constant 0 : i32
    %c0_i32_1 = arith.constant 0 : i32
    return %c0_i32, %c0_i32_0 : i32, i32
  }
  func.func @transform_11(%arg0: i32) -> (i32, i32) {
    %c0_i32 = arith.constant 0 : i32
    %c0_i32_0 = arith.constant 0 : i32
    %c0_i32_1 = arith.constant 0 : i32
    return %c0_i32, %c0_i32_0 : i32, i32
  }
  func.func @transform_12(%arg0: i32) -> (i32, i32) {
    %c0_i32 = arith.constant 0 : i32
    %c0_i32_0 = arith.constant 0 : i32
    %c0_i32_1 = arith.constant 0 : i32
    return %c0_i32, %c0_i32_0 : i32, i32
  }
  func.func @transform_13(%arg0: i32) -> (i32, i32, i32) {
    %c0_i32 = arith.constant 0 : i32
    %c0_i32_0 = arith.constant 0 : i32
    %c0_i32_1 = arith.constant 0 : i32
    return %arg0, %c0_i32, %c0_i32_0 : i32, i32, i32
  }
}

</mosaic_0001>

<bundles_post_ra>
// kernel: encoder_forward.1
= control target key start
LH: loop header
LB: loop body
LE: loop exit
PB: predicated region body
PF: predicated region fallthrough
CT: control target
= control target key end

     0   :  { %s11723_s0 = inlined_call_operand.vmem [shape: f32[2,8,32], index: 0, kind: input, shape index: {}]   ;;  %s11724_s1 = inlined_call_operand.vmem [shape: bf16[32,96], index: 1, kind: input, shape index: {}]   ;;  %s11725_s2 = inlined_call_operand.vmem [shape: f32[1,96], index: 2, kind: input, shape index: {}]   ;;  %s11726_s3 = inlined_call_operand.vmem [shape: f32[32,32], index: 3, kind: input, shape index: {}]   ;;  %s11727_s4 = inlined_call_operand.vmem [shape: f32[1,32], index: 4, kind: input, shape index: {}]   ;;  %s11728_s5 = inlined_call_operand.vmem [shape: f32[1,32], index: 5, kind: input, shape index: {}]   ;;  %s11729_s6 = inlined_call_operand.vmem [shape: f32[1,32], index: 6, kind: input, shape index: {}]   ;;  %s11730_s7 = inlined_call_operand.vmem [shape: bf16[32,64], index: 7, kind: input, shape index: {}]   ;;  %s11731_s8 = inlined_call_operand.vmem [shape: f32[1,64], index: 8, kind: input, shape index: {}]   ;;  %s11732_s9 = inlined_call_operand.vmem [shape: bf16[64,32], index: 9, kind: input, shape index: {}]   ;;  %s11733_s10 = inlined_call_operand.vmem [shape: f32[1,32], index: 10, kind: input, shape index: {}]   ;;  %s11734_s11 = inlined_call_operand.vmem [shape: f32[1,32], index: 11, kind: input, shape index: {}]   ;;  %s11735_s12 = inlined_call_operand.vmem [shape: f32[1,32], index: 12, kind: input, shape index: {}]   ;;  %s11736_s13 = inlined_call_operand.hbm [shape: f32[2,8,32], index: 13, kind: output, shape index: {}]  }
   0x1   :  { %11759 = sst [smem:[#allocation5_spill]] %s11723_s0 }
   0x2   :  { %11760 = sst [smem:[#allocation6_spill]] %s11724_s1 }
   0x3   :  { %11761 = sst [smem:[#allocation7_spill]] %s11725_s2 }
   0x4   :  { %11762 = sst [smem:[#allocation8_spill]] %s11726_s3 }
   0x5   :  { %18 = vsyncpa [#allocation3], 0 }
   0x6   :  { %20 = vsyncpa [#allocation3 + $0x1], 0  ;;  %s10236_s25 = smov 0   ;;  %s10238_s26 = smov 0  }
   0x7   :  { %s10240_s27 = smov 0   ;;  %s10242_s28 = smov 0  }
   0x8 LB: > { %s10257_s29 = sadd.s32 4294967295, %s10150_s28   ;;  %s8219_s30 = sadd.s32 4294967294, %s10150_s28   ;;  %s10150_s28 = sphi %s10242_s28, %s11783_s28   ;;  %s10146_s27 = sphi %s10240_s27, %s11782_s27   ;;  %s10142_s26 = sphi %s10238_s26, %s11781_s26   ;;  %s10138_s25 = sphi %s10236_s25, %s11780_s25  }
   0x9   : > { %s10261_s14 = sadd.s32 1, %s10150_s28   ;;  %s311_s15 = sadd.s32 1, %s10146_s27 }
   0xa   : > { %s308_s16 = ssub.s32 %s10150_s28, %s10261_s14  ;;  %p321_p0 = scmp.ne.s32.totalorder %s10146_s27, %s10142_s26 }
   0xb   : > { %p309_p1 = scmp.eq.s32.totalorder %s308_s16, 0  ;;  %p322_p2 = scmp.eq.s32.totalorder %s10257_s29, 1 }
   0xc   : > { %p327_p3 = scmp.ne.s32.totalorder %s10142_s26, %s10138_s25  ;;  %p328_p4 = scmp.eq.s32.totalorder %s8219_s30, 1 }
   0xd   : > { %s10272_s17 = scalar_select %p309_p1, %s10146_s27, %s311_s15  }
   0xe   : > { %p10274_p5 = por %p322_p2, %p321_p0  ;;  %p10278_p6 = por %p328_p4, %p327_p3 }
   0xf   : > { %p8222_p7 = scmp.ge.s32.totalorder %s10150_s28, 1  ;;  %p389_p8 = scmp.lt.s32.totalorder %s10150_s28, 3 }
  0x11   : > { %p390_p9 = pnand %p8222_p7, %p389_p8 }
  0x12   : > { %s11765_s1 = sld [smem:[#allocation6_spill]] (!%p390_p9)  ;;  %v10152_v1 = vmov (!%p390_p9), 0.0   ;;  %vm10153_vm0 = vmmov (!%p390_p9), 0   ;;  %p432_p10 = scmp.lt.s32.totalorder (!%p390_p9), %s10257_s29, 1  ;;  %vm462_vm1 = vcmask (!%p390_p9), 261120   ;;  %vm524_vm2 = vcmask (!%p390_p9), 64512  }
  0x13   : > { %393 = sbr.rel (%p390_p9) target bundleno = 10388 (0x2894), region = 72  ;;  %8711 = vmatprep.subr.bf16.mxu0 (!%p390_p9), %v10152_v1  ;;  %8719 = vmatprep.subr.bf16.mxu1 (!%p390_p9), %v10152_v1  ;;  %s11766_s0 = sld [smem:[#allocation5_spill]] (!%p390_p9)  ;;  %vm706_vm3 = vcmask (!%p390_p9), 9216   ;;  %vm757_vm4 = vcmask (!%p390_p9), 1040384   ;;  %vm753_vm5 = vcmask (!%p390_p9), 15360   ;;  %vm1344_vm6 = vcmask (!%p390_p9), 1043456  }
  0x14   : > { %8715 = vmatprep.mubr.msk.bf16.mxu0 (!%p390_p9), %vm10153_vm0, %v10152_v1  ;;  %8721 = vmatprep.mubr.msk.bf16.mxu1 (!%p390_p9), %vm10153_vm0, %v10152_v1  ;;  %s11767_s2 = sld [smem:[#allocation7_spill]] (!%p390_p9)  ;;  %s11751_s23 = smov (!%p390_p9), 80   ;;  %vm4080_vm8 = vcmask (!%p390_p9), 1041408   ;;  %vm8071_vm12 = vcmask (!%p390_p9), 523264  }
  0x15   : > { %s11755_s15 = smov (!%p390_p9), 88   ;;  %s11745_s16 = smov (!%p390_p9), 120  }
  0x16   : > { %s11737_s21 = smov (!%p390_p9), 64   ;;  %s11739_s22 = smov (!%p390_p9), 56  }
  0x17   : > { %s11768_s3 = sld [smem:[#allocation8_spill]] (!%p390_p9) }
  0x18   : > { %v9915_v0 = vld [vmem:[%s11765_s1] sm:$0xff] (!%p390_p9)   ;;  %v9916_v2 = vld [vmem:[%s11765_s1 + $0x8] sm:$0xff] (!%p390_p9)   ;;  %s11777_s1 = smov (!%p390_p9), 80  }
  0x19   : > { %8712 = vmatpush3.bf16.msra.mxu0 (!%p390_p9), %v9915_v0 }
  0x1a   : > { %8713 = vmatprep.subr.bf16.mxu0 %v10152_v1  ;;  %s433_s24 = scalar_select %p432_p10, %s10257_s29, 1  ;;  %v8225_v5 = vld [vmem:[%s11767_s2] ss:$0 sm:$0xff] }
  0x1b   : > { %s11778_s2 = smov 72  }
  0x1c   : > { %s8224_s30 = sshll.u32 %s433_s24, 3  ;;  %s11753_s24 = smov 96  }
  0x1d   : > { %8714 = vmatpush3.bf16.msra.mxu0 %v9916_v2  ;;  %s10302_s20 = scalar_lea.vmem %s11766_s0, %s8224_s30  ;;  %s11749_s30 = smov 72  }
  0x1e   : > { %8725 = vmatprep.subr.bf16.mxu0 %v10152_v1  ;;  %v437_v3 = vld [vmem:[%s10302_s20] sm:$0xff]  ;;  %s11776_s0 = smov 96  }
  0x1f   : > { %v438_v4 = vpack.c.bf16 %v437_v3, %v437_v3 }
  0x21   : > { %8716 = vmatmul.mubr.msk.bf16.vlgmr.msra.gmra.mrb[0].mxu0 %vm462_vm1, %v438_v4 }
  0x22   : > { %8727 = vmatprep.mubr.msk.bf16.mxu0 %vm10153_vm0, %v10152_v1 }
  0xf4   : > { %v500_v6 = vpop.f32.mrb[0].mxu0 }
  0xf5   : > { %v501_v7 = vadd.f32 %v8225_v5, %v500_v6  ;;  %v8717_v8 = vpop.f32.mrb[1].mxu0 }
  0xf6   : > { %v503_v9 = vpop.f32.mrb[2].mxu0 }
  0xf7   : > { %v10312_v10 = vpack.c.bf16 %v501_v7, %v501_v7  ;;  %v8718_v11 = vpop.f32.mrb[3].mxu0  ;;  %v506_v12 = vmul.f32 0.35355338, %v501_v7 }
  0xf9   : > { %616 = vrot.lane.b32.xlu1 %v10312_v10, %s11751_s23  ;;  %522 = vrot.lane.b32.xlu0 %v10312_v10, %s11753_s24  ;;  %v10322_v13 = vpack.c.bf16 %v506_v12, %v506_v12 }
  0xfd   : > { %661 = vrot.lane.b32.xlu1 %v10312_v10, %s11749_s30  ;;  %571 = vrot.lane.b32.xlu0 %v10312_v10, %s11755_s15 }
 0x101   : > { %953 = vrot.lane.b32.xlu0 %v10322_v13, %s11745_s16  ;;  %s11757_s16 = smov 104  }
 0x16b   : > { %v523_v14 = vpop.permute.xlu0 %522  ;;  %v617_v16 = vpop.permute.xlu1 %616 }
 0x16c   : > { %v10327_v15 = vsel %vm524_vm2, %v523_v14, 0  ;;  %v10337_v19 = vsel %vm524_vm2, %v617_v16, 0 }
 0x16d   : > { %8720 = vmatpush3.bf16.xpose.msra.mxu1 %v10327_v15 }
 0x16e   : > { %8731 = vmatprep.subr.bf16.mxu1 %v10152_v1 }
 0x16f   : > { %v572_v17 = vpop.permute.xlu0 %571  ;;  %v662_v20 = vpop.permute.xlu1 %661 }
 0x170   : > { %v10332_v18 = vsel %vm524_vm2, %v572_v17, 0  ;;  %v10346_v21 = vsel %vm524_vm2, %v662_v20, 0 }
 0x171   : > { %8726 = vmatpush3.bf16.xpose.msra.mxu0 %v10332_v18 }
 0x172   : > { %8737 = vmatprep.subr.bf16.mxu0 %v10152_v1 }
 0x173   : > { %v954_v22 = vpop.permute.xlu0 %953 }
 0x174   : > { %8722 = vmatmul.mubr.msk.bf16.vlgmr.msra.gmra.mrb[0].mxu1 %vm524_vm2, %v10322_v13 }
 0x175   : > { %8732 = vmatpush3.bf16.xpose.msra.mxu1 %v10337_v19  ;;  %8733 = vmatprep.mubr.msk.bf16.mxu1 %vm10153_vm0, %v10152_v1 }
 0x176   : > { %8743 = vmatprep.subr.bf16.mxu1 %v10152_v1 }
 0x178   : > { %8728 = vmatmul.mubr.msk.bf16.vlgmr.msra.gmra.mrb[4].mxu0 %vm524_vm2, %v10322_v13 }
 0x179   : > { %8738 = vmatpush3.bf16.xpose.msra.mxu0 %v10346_v21  ;;  %8739 = vmatprep.mubr.msk.bf16.mxu0 %vm10153_vm0, %v10152_v1 }
 0x17a   : > { %8767 = vmatprep.subr.bf16.mxu0 %v10152_v1 }
 0x17c   : > { %8734 = vmatmul.mubr.msk.bf16.vlgmr.msra.gmra.mrb[4].mxu1 %vm524_vm2, %v10322_v13 }
 0x17d   : > { %8745 = vmatprep.mubr.msk.bf16.mxu1 %vm10153_vm0, %v10152_v1 }
 0x180   : > { %8740 = vmatmul.mubr.msk.bf16.vlgmr.msra.gmra.mrb[8].mxu0 %vm524_vm2, %v10322_v13 }
 0x181   : > { %8768 = vmatpush3.bf16.xpose.msra.mxu0 %v10327_v15  ;;  %8769 = vmatprep.mubr.msk.bf16.mxu0 %vm10153_vm0, %v10152_v1 }
 0x182   : > { %8773 = vmatprep.subr.bf16.mxu0 %v10152_v1 }
 0x188   : > { %8770 = vmatmul.mubr.msk.bf16.vlgmr.msra.gmra.mrb[12].mxu0 %vm524_vm2, %v954_v22 }
 0x189   : > { %8774 = vmatpush3.bf16.xpose.msra.mxu0 %v10332_v18  ;;  %8775 = vmatprep.mubr.msk.bf16.mxu0 %vm10153_vm0, %v10152_v1 }
 0x18a   : > { %8779 = vmatprep.subr.bf16.mxu0 %v10152_v1 }
 0x190   : > { %8776 = vmatmul.mubr.msk.bf16.vlgmr.msra.gmra.mrb[16].mxu0 %vm524_vm2, %v954_v22 }
 0x191   : > { %8780 = vmatpush3.bf16.xpose.msra.mxu0 %v10337_v19  ;;  %8781 = vmatprep.mubr.msk.bf16.mxu0 %vm10153_vm0, %v10152_v1 }
 0x192   : > { %8785 = vmatprep.subr.bf16.mxu0 %v10152_v1 }
 0x198   : > { %8782 = vmatmul.mubr.msk.bf16.vlgmr.msra.gmra.mrb[20].mxu0 %vm524_vm2, %v954_v22 }
 0x199   : > { %8786 = vmatpush3.bf16.xpose.msra.mxu0 %v10346_v21  ;;  %8787 = vmatprep.mubr.msk.bf16.mxu0 %vm10153_vm0, %v10152_v1 }
 0x19a   : > { %8815 = vmatprep.subr.bf16.mxu0 %v10152_v1 }
 0x1a0   : > { %8788 = vmatmul.mubr.msk.bf16.vlgmr.msra.gmra.mrb[24].mxu0 %vm524_vm2, %v954_v22 }
 0x1a1   : > { %8817 = vmatprep.mubr.msk.bf16.mxu0 %vm10153_vm0, %v10152_v1 }
 0x247   : > { %v10382_v23 = vpop.f32.mrb[0].mxu1 }
 0x248   : > { %v8723_v24 = vpop.f32.mrb[1].mxu1  ;;  %v707_v25 = vsel %vm706_vm3, %v10382_v23, -inf }
 0x249   : > { %708 = vmax.xlane.f32.xlu1 %v707_v25  ;;  %v568_v26 = vpop.f32.mrb[2].mxu1 }
 0x24a   : > { %v8724_v27 = vpop.f32.mrb[3].mxu1 }
 0x24b   : > { %v10386_v28 = vpop.f32.mrb[4].mxu0 }
 0x24c   : > { %v8729_v29 = vpop.f32.mrb[5].mxu0  ;;  %v710_v30 = vsel %vm706_vm3, %v10386_v28, -inf }
 0x24d   : > { %711 = vmax.xlane.f32.xlu0 %v710_v30  ;;  %v613_v31 = vpop.f32.mrb[6].mxu0 }
 0x24e   : > { %v8730_v32 = vpop.f32.mrb[7].mxu0 }
 0x24f   : > { %v10390_v33 = vpop.f32.mrb[4].mxu1 }
 0x250   : > { %v8735_v34 = vpop.f32.mrb[5].mxu1  ;;  %v714_v35 = vsel %vm706_vm3, %v10390_v33, -inf }
 0x251   : > { %v658_v36 = vpop.f32.mrb[6].mxu1  ;;  %715 = vmax.xlane.f32.xlu0 %v714_v35 }
 0x252   : > { %v8736_v37 = vpop.f32.mrb[7].mxu1 }
 0x253   : > { %v10394_v38 = vpop.f32.mrb[8].mxu0 }
 0x254   : > { %v8741_v39 = vpop.f32.mrb[9].mxu0  ;;  %v718_v40 = vsel %vm706_vm3, %v10394_v38, -inf }
 0x255   : > { %719 = vmax.xlane.f32.xlu1 %v718_v40  ;;  %v703_v41 = vpop.f32.mrb[10].mxu0 }
 0x256   : > { %v8742_v42 = vpop.f32.mrb[11].mxu0 }
 0x25b   : > { %v10398_v43 = vpop.f32.mrb[12].mxu0 }
 0x25c   : > { %v8771_v44 = vpop.f32.mrb[13].mxu0  ;;  %v1118_v60 = vsel %vm706_vm3, %v10398_v43, -inf }
 0x25d   : > { %v995_v45 = vpop.f32.mrb[14].mxu0 }
 0x25e   : > { %v8772_v46 = vpop.f32.mrb[15].mxu0 }
 0x263   : > { %v10400_v47 = vpop.f32.mrb[16].mxu0 }
 0x264   : > { %v8777_v48 = vpop.f32.mrb[17].mxu0  ;;  %v1121_v61 = vsel %vm706_vm3, %v10400_v47, -inf }
 0x265   : > { %v1035_v49 = vpop.f32.mrb[18].mxu0 }
 0x266   : > { %801 = vrot.lane.b32.xlu1 %v10312_v10, %s11737_s21  ;;  %v8778_v50 = vpop.f32.mrb[19].mxu0  ;;  %s11743_s21 = smov 48  }
 0x267   : > { %751 = vrot.lane.b32.xlu0 %v10312_v10, %s11739_s22  ;;  %s11741_s22 = smov 40  }
 0x26b   : > { %v10406_v51 = vpop.f32.mrb[20].mxu0 }
 0x26c   : > { %v8783_v52 = vpop.f32.mrb[21].mxu0  ;;  %v1125_v59 = vsel %vm706_vm3, %v10406_v51, -inf }
 0x26d   : > { %v1075_v53 = vpop.f32.mrb[22].mxu0 }
 0x26e   : > { %v8784_v54 = vpop.f32.mrb[23].mxu0 }
 0x273   : > { %v10408_v55 = vpop.f32.mrb[24].mxu0 }
 0x274   : > { %v8789_v56 = vpop.f32.mrb[25].mxu0  ;;  %v1129_v62 = vsel %vm706_vm3, %v10408_v55, -inf }
 0x275   : > { %v1115_v57 = vpop.f32.mrb[26].mxu0 }
 0x276   : > { %v8790_v58 = vpop.f32.mrb[27].mxu0 }
 0x286   : > { %1126 = vmax.xlane.f32.xlu0 %v1125_v59 }
 0x28a   : > { %1119 = vmax.xlane.f32.xlu1 %v1118_v60 }
 0x28e   : > { %1122 = vmax.xlane.f32.xlu1 %v1121_v61 }
 0x292   : > { %1130 = vmax.xlane.f32.xlu1 %v1129_v62 }
 0x29c   : > { %850 = vrot.lane.b32.xlu0 %v10312_v10, %s11743_s21  ;;  %s11771_s21 = smov 64  }
 0x2a3   : > { %900 = vrot.lane.b32.xlu1 %v10312_v10, %s11741_s22  ;;  %s11747_s22 = smov 112  }
 0x2d6   : > { %v709_v0 = vpop.xlane.xlu1 %708 }
 0x2da   : > { %v712_v63 = vpop.xlane.xlu0 %711 }
 0x2db   : > { %v713_v3 = vmax.f32 %v709_v0, %v712_v63 }
 0x2de   : > { %v716_v2 = vpop.xlane.xlu0 %715 }
 0x2df   : > { %v717_v4 = vmax.f32 %v713_v3, %v716_v2 }
 0x2e2   : > { %v752_v5 = vpop.permute.xlu0 %751  ;;  %v720_v6 = vpop.xlane.xlu1 %719 }
 0x2e3   : > { %v10423_v7 = vsel %vm757_vm4, %v752_v5, 0  ;;  %v721_v8 = vmax.f32 %v717_v4, %v720_v6  ;;  %v508_v5 = vld [vmem:[%s11768_s3 + $0x8] sm:$0xff] }
 0x2e4   : > { %8744 = vmatpush3.bf16.msra.mxu1 %v10423_v7  ;;  %v512_v6 = vpack.c.bf16 %v508_v5, %v508_v5 }
 0x2e5   : > { %v725_v9 = vsub.f32 %v10386_v28, %v721_v8  ;;  %8749 = vmatprep.subr.bf16.mxu1 %v10152_v1  ;;  %v722_v12 = vsub.f32 %v10382_v23, %v721_v8  ;;  %v728_v25 = vsub.f32 %v10390_v33, %v721_v8  ;;  %v731_v27 = vsub.f32 %v10394_v38, %v721_v8 }
 0x2e6   : > { %v802_v17 = vpop.permute.xlu1 %801  ;;  %v10513_v8 = vsel %vm1344_vm6, %v512_v6, 0 }
 0x2e7   : > { %v726_v11 = vmul.f32 1.442695, %v725_v9  ;;  %v723_v14 = vmul.f32 1.442695, %v722_v12  ;;  %v10434_v22 = vsel %vm757_vm4, %v802_v17, 0  ;;  %8816 = vmatpush3.bf16.msra.mxu0 %v10513_v8 }
 0x2e8   : > { %v729_v26 = vmul.f32 1.442695, %v728_v25  ;;  %v732_v29 = vmul.f32 1.442695, %v731_v27  ;;  %8821 = vmatprep.subr.bf16.mxu0 %v10152_v1 }
 0x2e9   : > { %9923 = vpow2.f32 %v726_v11 }
 0x2ea   : > { %9925 = vpow2.f32 %v723_v14 }
 0x2eb   : > { %9927 = vpow2.f32 %v729_v26 }
 0x2ec   : > { %9929 = vpow2.f32 %v732_v29 }
 0x2f3   : > { %v10429_v16 = vpop.eup %9923 }
 0x2f4   : > { %v750_v20 = vpack.c.bf16 %v10429_v16, %v10429_v16  ;;  %v10441_v23 = vpop.eup %9925  ;;  %v737_v60 = vsel %vm706_vm3, %v10429_v16, 0.0 }
 0x2f5   : > { %v749_v24 = vpack.c.bf16 %v10441_v23, %v10441_v23  ;;  %v10450_v30 = vpop.eup %9927  ;;  %v734_v63 = vsel %vm706_vm3, %v10441_v23, 0.0 }
 0x2f6   : > { %8746 = vmatmul.mubr.msk.bf16.vlgmr.msra.gmra.mrb[8].mxu1 %vm753_vm5, %v750_v20  ;;  %v849_v35 = vpack.c.bf16 %v10450_v30, %v10450_v30  ;;  %v9930_v45 = vpop.eup %9929  ;;  %v741_v2 = vsel %vm706_vm3, %v10450_v30, 0.0 }
 0x2f7   : > { %8750 = vmatpush3.bf16.msra.mxu1 %v10434_v22  ;;  %8751 = vmatprep.mubr.msk.bf16.mxu1 %vm10153_vm0, %v10152_v1  ;;  %v899_v53 = vpack.c.bf16 %v9930_v45, %v9930_v45  ;;  %v745_v62 = vsel %vm706_vm3, %v9930_v45, 0.0 }
 0x2f8   : > { %8755 = vmatprep.subr.bf16.mxu1 %v10152_v1 }
 0x302   : > { %8752 = vmatmul.mubr.msk.bf16.vlgmr.msra.gmra.mrb[8].mxu1 %vm753_vm5, %v749_v24 }
 0x303   : > { %8757 = vmatprep.mubr.msk.bf16.mxu1 %vm10153_vm0, %v10152_v1 }
 0x313   : > { %v1127_v28 = vpop.xlane.xlu0 %1126 }
 0x317   : > { %v1120_v31 = vpop.xlane.xlu1 %1119  ;;  %v851_v32 = vpop.permute.xlu0 %850 }
 0x318   : > { %v10453_v34 = vsel %vm757_vm4, %v851_v32, 0 }
 0x319   : > { %8756 = vmatpush3.bf16.msra.mxu1 %v10453_v34 }
 0x31a   : > { %8761 = vmatprep.subr.bf16.mxu1 %v10152_v1 }
 0x31b   : > { %v1123_v33 = vpop.xlane.xlu1 %1122 }
 0x31c   : > { %v1124_v36 = vmax.f32 %v1120_v31, %v1123_v33  ;;  %8758 = vmatmul.mubr.msk.bf16.vlgmr.msra.gmra.mrb[8].mxu1 %vm753_vm5, %v849_v35 }
 0x31d   : > { %8763 = vmatprep.mubr.msk.bf16.mxu1 %vm10153_vm0, %v10152_v1 }
 0x31e   : > { %v1128_v37 = vmax.f32 %v1124_v36, %v1127_v28  ;;  %v507_v36 = vld [vmem:[%s11768_s3] sm:$0xff] }
 0x31f   : > { %v1131_v38 = vpop.xlane.xlu1 %1130 }
 0x320   : > { %v1132_v39 = vmax.f32 %v1128_v37, %v1131_v38  ;;  %v511_v37 = vpack.c.bf16 %v507_v36, %v507_v36 }
 0x322   : > { %v1133_v40 = vsub.f32 %v10398_v43, %v1132_v39  ;;  %v1136_v41 = vsub.f32 %v10400_v47, %v1132_v39  ;;  %v1139_v42 = vsub.f32 %v10406_v51, %v1132_v39  ;;  %v1142_v50 = vsub.f32 %v10408_v55, %v1132_v39 }
 0x323   : > { %v901_v44 = vpop.permute.xlu1 %900 }
 0x324   : > { %v1134_v46 = vmul.f32 1.442695, %v1133_v40  ;;  %v1137_v48 = vmul.f32 1.442695, %v1136_v41  ;;  %v1140_v49 = vmul.f32 1.442695, %v1139_v42 }
 0x325   : > { %v10467_v52 = vsel %vm757_vm4, %v901_v44, 0  ;;  %v1143_v43 = vmul.f32 1.442695, %v1142_v50 }
 0x326   : > { %9931 = vpow2.f32 %v1134_v46  ;;  %8762 = vmatpush3.bf16.msra.mxu1 %v10467_v52  ;;  %v10526_v46 = vsel %vm1344_vm6, %v511_v37, 0 }
 0x327   : > { %9933 = vpow2.f32 %v1137_v48  ;;  %8791 = vmatprep.subr.bf16.mxu1 %v10152_v1 }
 0x328   : > { %9935 = vpow2.f32 %v1140_v49 }
 0x329   : > { %8764 = vmatmul.mubr.msk.bf16.vlgmr.msra.gmra.mrb[8].mxu1 %vm753_vm5, %v899_v53  ;;  %9937 = vpow2.f32 %v1143_v43 }
 0x32a   : > { %8792 = vmatpush3.bf16.msra.mxu1 %v10423_v7  ;;  %8793 = vmatprep.mubr.msk.bf16.mxu1 %vm10153_vm0, %v10152_v1 }
 0x32b   : > { %8797 = vmatprep.subr.bf16.mxu1 %v10152_v1 }
 0x330   : > { %v9932_v47 = vpop.eup %9931 }
 0x331   : > { %v9934_v51 = vpop.eup %9933  ;;  %v1145_v54 = vsel %vm706_vm3, %v9932_v47, 0.0  ;;  %v1160_v0 = vpack.c.bf16 %v9932_v47, %v9932_v47 }
 0x332   : > { %v9936_v55 = vpop.eup %9935  ;;  %v1148_v56 = vsel %vm706_vm3, %v9934_v51, 0.0  ;;  %1146 = vadd.xlane.f32.xlu0 %v1145_v54  ;;  %v1161_v57 = vpack.c.bf16 %v9934_v51, %v9934_v51 }
 0x333   : > { %1149 = vadd.xlane.f32.xlu1 %v1148_v56  ;;  %v1152_v58 = vsel %vm706_vm3, %v9936_v55, 0.0  ;;  %v9938_v59 = vpop.eup %9937  ;;  %v1248_v3 = vpack.c.bf16 %v9936_v55, %v9936_v55 }
 0x334   : > { %8794 = vmatmul.mubr.msk.bf16.vlgmr.msra.gmra.mrb[12].mxu1 %vm753_vm5, %v1161_v57  ;;  %v1156_v61 = vsel %vm706_vm3, %v9938_v59, 0.0  ;;  %v1293_v4 = vpack.c.bf16 %v9938_v59, %v9938_v59 }
 0x335   : > { %8798 = vmatpush3.bf16.msra.mxu1 %v10434_v22  ;;  %8799 = vmatprep.mubr.msk.bf16.mxu1 %vm10153_vm0, %v10152_v1 }
 0x336   : > { %1153 = vadd.xlane.f32.xlu0 %v1152_v58  ;;  %8803 = vmatprep.subr.bf16.mxu1 %v10152_v1 }
 0x337   : > { %738 = vadd.xlane.f32.xlu1 %v737_v60 }
 0x33a   : > { %1157 = vadd.xlane.f32.xlu0 %v1156_v61 }
 0x33b   : > { %746 = vadd.xlane.f32.xlu1 %v745_v62 }
 0x33e   : > { %735 = vadd.xlane.f32.xlu0 %v734_v63 }
 0x340   : > { %8800 = vmatmul.mubr.msk.bf16.vlgmr.msra.gmra.mrb[12].mxu1 %vm753_vm5, %v1160_v0 }
 0x341   : > { %8804 = vmatpush3.bf16.msra.mxu1 %v10453_v34  ;;  %8805 = vmatprep.mubr.msk.bf16.mxu1 %vm10153_vm0, %v10152_v1 }
 0x342   : > { %742 = vadd.xlane.f32.xlu0 %v741_v2  ;;  %8809 = vmatprep.subr.bf16.mxu1 %v10152_v1 }
 0x34c   : > { %8806 = vmatmul.mubr.msk.bf16.vlgmr.msra.gmra.mrb[12].mxu1 %vm753_vm5, %v1248_v3 }
 0x34d   : > { %8810 = vmatpush3.bf16.msra.mxu1 %v10467_v52  ;;  %8811 = vmatprep.mubr.msk.bf16.mxu1 %vm10153_vm0, %v10152_v1 }
 0x34e   : > { %8839 = vmatprep.subr.bf16.mxu1 %v10152_v1 }
 0x358   : > { %8812 = vmatmul.mubr.msk.bf16.vlgmr.msra.gmra.mrb[12].mxu1 %vm753_vm5, %v1293_v4  ;;  %1434 = vrot.lane.b32.xlu0 %v10322_v13, %s11747_s22  ;;  %s11769_s22 = smov 120  }
 0x359   : > { %8840 = vmatpush3.bf16.xpose.msra.mxu1 %v10337_v19  ;;  %8841 = vmatprep.mubr.msk.bf16.mxu1 %vm10153_vm0, %v10152_v1 }
 0x35a   : > { %8851 = vmatprep.subr.bf16.mxu1 %v10152_v1 }
 0x3bf   : > { %v1147_v9 = vpop.xlane.xlu0 %1146 }
 0x3c0   : > { %v1150_v26 = vpop.xlane.xlu1 %1149 }
 0x3c1   : > { %v1151_v27 = vadd.f32 %v1150_v26, %v1147_v9 }
 0x3c3   : > { %v1154_v11 = vpop.xlane.xlu0 %1153 }
 0x3c4   : > { %v1155_v28 = vadd.f32 %v1154_v11, %v1151_v27  ;;  %v739_v30 = vpop.xlane.xlu1 %738 }
 0x3c7   : > { %v1158_v12 = vpop.xlane.xlu0 %1157 }
 0x3c8   : > { %v1159_v29 = vadd.f32 %v1158_v12, %v1155_v28  ;;  %v747_v35 = vpop.xlane.xlu1 %746 }
 0x3ca   : > { %9939 = vrcp.f32 %v1159_v29 }
 0x3cb   : > { %v736_v14 = vpop.xlane.xlu0 %735 }
 0x3cc   : > { %v740_v31 = vadd.f32 %v739_v30, %v736_v14 }
 0x3cf   : > { %v743_v16 = vpop.xlane.xlu0 %742 }
 0x3d0   : > { %v744_v32 = vadd.f32 %v743_v16, %v740_v31 }
 0x3d2   : > { %v748_v33 = vadd.f32 %v747_v35, %v744_v32 }
 0x3d3   : > { %v1435_v17 = vpop.permute.xlu0 %1434 }
 0x3d4   : > { %8842 = vmatmul.mubr.msk.bf16.vlgmr.msra.gmra.mrb[16].mxu1 %vm524_vm2, %v1435_v17  ;;  %v9940_v38 = vpop.eup %9939  ;;  %9941 = vrcp.f32 %v748_v33 }
 0x3d5   : > { %8852 = vmatpush3.bf16.msra.mxu1 %v10423_v7  ;;  %8853 = vmatprep.mubr.msk.bf16.mxu1 %vm10153_vm0, %v10152_v1 }
 0x3d6   : > { %8857 = vmatprep.subr.bf16.mxu1 %v10152_v1 }
 0x3de   : > { %v9942_v48 = vpop.eup %9941 }
 0x3fc   : > { %v942_v20 = vpop.f32.mrb[8].mxu1 }
 0x3fd   : > { %v8765_v23 = vpop.f32.mrb[9].mxu1  ;;  %v950_v49 = vmul.f32 %v9942_v48, %v942_v20 }
 0x3fe   : > { %v945_v24 = vpop.f32.mrb[10].mxu1 }
 0x3ff   : > { %v8766_v25 = vpop.f32.mrb[11].mxu1  ;;  %v951_v50 = vpack.c.bf16 %v950_v49, %v950_v49 }
 0x42b   : > { %v1331_v39 = vpop.f32.mrb[12].mxu1 }
 0x42c   : > { %v1339_v40 = vmul.f32 %v9940_v38, %v1331_v39  ;;  %v8813_v41 = vpop.f32.mrb[13].mxu1 }
 0x42d   : > { %v1334_v42 = vpop.f32.mrb[14].mxu1 }
 0x42e   : > { %v1340_v44 = vpack.c.bf16 %v1339_v40, %v1339_v40  ;;  %v8814_v45 = vpop.f32.mrb[15].mxu1 }
 0x430   : > { %8818 = vmatmul.mubr.msk.bf16.vlgmr.msra.gmra.mrb[28].mxu0 %vm524_vm2, %v1340_v44  ;;  %v509_v44 = vld [vmem:[%s11768_s3 + $0x10] sm:$0xff] }
 0x431   : > { %8822 = vmatpush3.bf16.msra.mxu0 %v10526_v46  ;;  %8823 = vmatprep.mubr.msk.bf16.mxu0 %vm10153_vm0, %v10152_v1  ;;  %v513_v45 = vpack.c.bf16 %v509_v44, %v509_v44 }
 0x432   : > { %8827 = vmatprep.subr.bf16.mxu0 %v10152_v1 }
 0x433   : > { %v10580_v48 = vsel %vm1344_vm6, %v513_v45, 0 }
 0x43c   : > { %8824 = vmatmul.mubr.msk.bf16.vlgmr.msra.gmra.mrb[28].mxu0 %vm524_vm2, %v951_v50 }
 0x43d   : > { %8828 = vmatpush3.bf16.xpose.msra.mxu0 %v10327_v15  ;;  %8829 = vmatprep.mubr.msk.bf16.mxu0 %vm10153_vm0, %v10152_v1 }
 0x43e   : > { %8833 = vmatprep.subr.bf16.mxu0 %v10152_v1 }
 0x444   : > { %8830 = vmatmul.mubr.msk.bf16.vlgmr.msra.gmra.mrb[32].mxu0 %vm524_vm2, %v1435_v17 }
 0x445   : > { %8834 = vmatpush3.bf16.xpose.msra.mxu0 %v10332_v18  ;;  %8835 = vmatprep.mubr.msk.bf16.mxu0 %vm10153_vm0, %v10152_v1 }
 0x446   : > { %8845 = vmatprep.subr.bf16.mxu0 %v10152_v1 }
 0x44c   : > { %8836 = vmatmul.mubr.msk.bf16.vlgmr.msra.gmra.mrb[36].mxu0 %vm524_vm2, %v1435_v17 }
 0x44d   : > { %8846 = vmatpush3.bf16.xpose.msra.mxu0 %v10346_v21  ;;  %8847 = vmatprep.mubr.msk.bf16.mxu0 %vm10153_vm0, %v10152_v1 }
 0x44e   : > { %8875 = vmatprep.subr.bf16.mxu0 %v10152_v1 }
 0x454   : > { %8848 = vmatmul.mubr.msk.bf16.vlgmr.msra.gmra.mrb[40].mxu0 %vm524_vm2, %v1435_v17 }
 0x455   : > { %8877 = vmatprep.mubr.msk.bf16.mxu0 %vm10153_vm0, %v10152_v1  ;;  %8876 = vmatpush3.bf16.msra.mxu0 %v10580_v48 }
 0x456   : > { %8881 = vmatprep.subr.bf16.mxu0 %v10152_v1 }
 0x4a7   : > { %v1553_v53 = vpop.f32.mrb[16].mxu1 }
 0x4a8   : > { %v8843_v43 = vpop.f32.mrb[17].mxu1  ;;  %v1606_v47 = vsel %vm706_vm3, %v1553_v53, -inf }
 0x4a9   : > { %1607 = vmax.xlane.f32.xlu1 %v1606_v47  ;;  %v1556_v51 = vpop.f32.mrb[18].mxu1 }
 0x4aa   : > { %v8844_v54 = vpop.f32.mrb[19].mxu1 }
 0x517   : > { %v1473_v55 = vpop.f32.mrb[32].mxu0 }
 0x518   : > { %v8831_v56 = vpop.f32.mrb[33].mxu0  ;;  %v1599_v57 = vsel %vm706_vm3, %v1473_v55, -inf }
 0x519   : > { %1600 = vmax.xlane.f32.xlu1 %v1599_v57  ;;  %v1476_v58 = vpop.f32.mrb[34].mxu0 }
 0x51a   : > { %v8832_v59 = vpop.f32.mrb[35].mxu0 }
 0x51f   : > { %v1513_v60 = vpop.f32.mrb[36].mxu0 }
 0x520   : > { %v8837_v61 = vpop.f32.mrb[37].mxu0  ;;  %v1602_v62 = vsel %vm706_vm3, %v1513_v60, -inf }
 0x521   : > { %1603 = vmax.xlane.f32.xlu1 %v1602_v62  ;;  %v1516_v63 = vpop.f32.mrb[38].mxu0 }
 0x522   : > { %v8838_v0 = vpop.f32.mrb[39].mxu0 }
 0x527   : > { %v1593_v2 = vpop.f32.mrb[40].mxu0 }
 0x528   : > { %v8849_v3 = vpop.f32.mrb[41].mxu0  ;;  %v1610_v4 = vsel %vm706_vm3, %v1593_v2, -inf }
 0x529   : > { %1611 = vmax.xlane.f32.xlu1 %v1610_v4  ;;  %v1596_v5 = vpop.f32.mrb[42].mxu0 }
 0x52a   : > { %v8850_v6 = vpop.f32.mrb[43].mxu0 }
 0x536   : > { %v1608_v9 = vpop.xlane.xlu1 %1607 }
 0x5a6   : > { %v1601_v11 = vpop.xlane.xlu1 %1600 }
 0x5ae   : > { %v1604_v12 = vpop.xlane.xlu1 %1603 }
 0x5af   : > { %v1605_v14 = vmax.f32 %v1601_v11, %v1604_v12 }
 0x5b1   : > { %v1609_v16 = vmax.f32 %v1605_v14, %v1608_v9 }
 0x5b6   : > { %v1612_v17 = vpop.xlane.xlu1 %1611 }
 0x5b7   : > { %v1613_v20 = vmax.f32 %v1609_v16, %v1612_v17 }
 0x5b9   : > { %v1614_v23 = vsub.f32 %v1473_v55, %v1613_v20  ;;  %v1617_v24 = vsub.f32 %v1513_v60, %v1613_v20  ;;  %v1620_v25 = vsub.f32 %v1553_v53, %v1613_v20  ;;  %v1623_v29 = vsub.f32 %v1593_v2, %v1613_v20 }
 0x5ba   : > { %v10616_v20 = vrot.slane %v10312_v10, 1 }
 0x5bb   : > { %v1615_v26 = vmul.f32 1.442695, %v1614_v23  ;;  %v1618_v27 = vmul.f32 1.442695, %v1617_v24  ;;  %v1621_v28 = vmul.f32 1.442695, %v1620_v25 }
 0x5bc   : > { %v1624_v30 = vmul.f32 1.442695, %v1623_v29 }
 0x5bd   : > { %9943 = vpow2.f32 %v1615_v26 }
 0x5be   : > { %9945 = vpow2.f32 %v1618_v27 }
 0x5bf   : > { %9947 = vpow2.f32 %v1621_v28 }
 0x5c0   : > { %9949 = vpow2.f32 %v1624_v30 }
 0x5c7   : > { %v9944_v31 = vpop.eup %9943 }
 0x5c8   : > { %v9946_v32 = vpop.eup %9945  ;;  %v1626_v35 = vsel %vm706_vm3, %v9944_v31, 0.0  ;;  %v1641_v41 = vpack.c.bf16 %v9944_v31, %v9944_v31 }
 0x5c9   : > { %v9948_v33 = vpop.eup %9947  ;;  %1627 = vadd.xlane.f32.xlu1 %v1626_v35  ;;  %v1642_v36 = vpack.c.bf16 %v9946_v32, %v9946_v32  ;;  %v1629_v38 = vsel %vm706_vm3, %v9946_v32, 0.0 }
 0x5ca   : > { %v1633_v37 = vsel %vm706_vm3, %v9948_v33, 0.0  ;;  %v9950_v39 = vpop.eup %9949  ;;  %v1729_v42 = vpack.c.bf16 %v9948_v33, %v9948_v33 }
 0x5cb   : > { %1634 = vadd.xlane.f32.xlu0 %v1633_v37  ;;  %8854 = vmatmul.mubr.msk.bf16.vlgmr.msra.gmra.mrb[20].mxu1 %vm753_vm5, %v1642_v36  ;;  %v1637_v40 = vsel %vm706_vm3, %v9950_v39, 0.0  ;;  %v1774_v49 = vpack.c.bf16 %v9950_v39, %v9950_v39 }
 0x5cc   : > { %8858 = vmatpush3.bf16.msra.mxu1 %v10434_v22  ;;  %8859 = vmatprep.mubr.msk.bf16.mxu1 %vm10153_vm0, %v10152_v1 }
 0x5cd   : > { %1630 = vadd.xlane.f32.xlu1 %v1629_v38  ;;  %8863 = vmatprep.subr.bf16.mxu1 %v10152_v1 }
 0x5d1   : > { %1638 = vadd.xlane.f32.xlu1 %v1637_v40 }
 0x5d7   : > { %8860 = vmatmul.mubr.msk.bf16.vlgmr.msra.gmra.mrb[20].mxu1 %vm753_vm5, %v1641_v41 }
 0x5d8   : > { %8864 = vmatpush3.bf16.msra.mxu1 %v10453_v34  ;;  %8865 = vmatprep.mubr.msk.bf16.mxu1 %vm10153_vm0, %v10152_v1 }
 0x5d9   : > { %8869 = vmatprep.subr.bf16.mxu1 %v10152_v1 }
 0x5e2   : > { %1869 = vrot.lane.b32.xlu1 %v10322_v13, %s11757_s16 }
 0x5e3   : > { %8866 = vmatmul.mubr.msk.bf16.vlgmr.msra.gmra.mrb[20].mxu1 %vm753_vm5, %v1729_v42 }
 0x5e4   : > { %8870 = vmatpush3.bf16.msra.mxu1 %v10467_v52  ;;  %8871 = vmatprep.mubr.msk.bf16.mxu1 %vm10153_vm0, %v10152_v1 }
 0x5e5   : > { %8899 = vmatprep.subr.bf16.mxu1 %v10152_v1 }
 0x5ef   : > { %8872 = vmatmul.mubr.msk.bf16.vlgmr.msra.gmra.mrb[20].mxu1 %vm753_vm5, %v1774_v49  ;;  %v10629_v49 = vrot.slane %v10322_v13, 1 }
 0x5f0   : > { %8900 = vmatpush3.bf16.xpose.msra.mxu1 %v10346_v21  ;;  %8901 = vmatprep.mubr.msk.bf16.mxu1 %vm10153_vm0, %v10152_v1 }
 0x5f1   : > { %8935 = vmatprep.subr.bf16.mxu1 %v10152_v1 }
 0x656   : > { %v1628_v50 = vpop.xlane.xlu1 %1627 }
 0x658   : > { %v1635_v54 = vpop.xlane.xlu0 %1634 }
 0x65a   : > { %v1631_v53 = vpop.xlane.xlu1 %1630 }
 0x65b   : > { %v1632_v51 = vadd.f32 %v1631_v53, %v1628_v50 }
 0x65d   : > { %v1636_v55 = vadd.f32 %v1635_v54, %v1632_v51 }
 0x65e   : > { %v1639_v43 = vpop.xlane.xlu1 %1638 }
 0x65f   : > { %v1640_v56 = vadd.f32 %v1639_v43, %v1636_v55 }
 0x661   : > { %9951 = vrcp.f32 %v1640_v56 }
 0x662   : > { %v1870_v47 = vpop.permute.xlu1 %1869 }
 0x663   : > { %8902 = vmatmul.mubr.msk.bf16.vlgmr.msra.gmra.mrb[24].mxu1 %vm524_vm2, %v1870_v47 }
 0x664   : > { %8937 = vmatprep.mubr.msk.bf16.mxu1 %vm10153_vm0, %v10152_v1 }
 0x66b   : > { %v9952_v21 = vpop.eup %9951 }
 0x6c2   : > { %v1812_v57 = vpop.f32.mrb[20].mxu1 }
 0x6c3   : > { %v1820_v58 = vmul.f32 %v9952_v21, %v1812_v57  ;;  %v8873_v59 = vpop.f32.mrb[21].mxu1 }
 0x6c4   : > { %v1815_v60 = vpop.f32.mrb[22].mxu1 }
 0x6c5   : > { %v1821_v61 = vpack.c.bf16 %v1820_v58, %v1820_v58  ;;  %v8874_v62 = vpop.f32.mrb[23].mxu1 }
 0x6c7   : > { %8878 = vmatmul.mubr.msk.bf16.vlgmr.msra.gmra.mrb[28].mxu0 %vm524_vm2, %v1821_v61 }
 0x6c8   : > { %8882 = vmatpush3.bf16.xpose.msra.mxu0 %v10327_v15  ;;  %8883 = vmatprep.mubr.msk.bf16.mxu0 %vm10153_vm0, %v10152_v1 }
 0x6c9   : > { %8887 = vmatprep.subr.bf16.mxu0 %v10152_v1 }
 0x6cf   : > { %8884 = vmatmul.mubr.msk.bf16.vlgmr.msra.gmra.mrb[44].mxu0 %vm524_vm2, %v1870_v47 }
 0x6d0   : > { %8888 = vmatpush3.bf16.xpose.msra.mxu0 %v10332_v18  ;;  %8889 = vmatprep.mubr.msk.bf16.mxu0 %vm10153_vm0, %v10152_v1 }
 0x6d1   : > { %8893 = vmatprep.subr.bf16.mxu0 %v10152_v1 }
 0x6d7   : > { %8890 = vmatmul.mubr.msk.bf16.vlgmr.msra.gmra.mrb[48].mxu0 %vm524_vm2, %v1870_v47 }
 0x6d8   : > { %8894 = vmatpush3.bf16.xpose.msra.mxu0 %v10337_v19  ;;  %8895 = vmatprep.mubr.msk.bf16.mxu0 %vm10153_vm0, %v10152_v1 }
 0x6d9   : > { %8905 = vmatprep.subr.bf16.mxu0 %v10152_v1 }
 0x6df   : > { %8896 = vmatmul.mubr.msk.bf16.vlgmr.msra.gmra.mrb[52].mxu0 %vm524_vm2, %v1870_v47 }
 0x6e0   : > { %8906 = vmatpush3.bf16.msra.mxu0 %v10423_v7  ;;  %8907 = vmatprep.mubr.msk.bf16.mxu0 %vm10153_vm0, %v10152_v1 }
 0x6e1   : > { %8911 = vmatprep.subr.bf16.mxu0 %v10152_v1 }
 0x736   : > { %v2028_v15 = vpop.f32.mrb[24].mxu1 }
 0x737   : > { %v8903_v18 = vpop.f32.mrb[25].mxu1  ;;  %v2045_v25 = vsel %vm706_vm3, %v2028_v15, -inf }
 0x738   : > { %v2031_v63 = vpop.f32.mrb[26].mxu1 }
 0x739   : > { %v8904_v0 = vpop.f32.mrb[27].mxu1 }
 0x7a2   : > { %v1908_v2 = vpop.f32.mrb[44].mxu0 }
 0x7a3   : > { %v8885_v19 = vpop.f32.mrb[45].mxu0  ;;  %v2034_v3 = vsel %vm706_vm3, %v1908_v2, -inf }
 0x7a4   : > { %2035 = vmax.xlane.f32.xlu1 %v2034_v3  ;;  %v1911_v4 = vpop.f32.mrb[46].mxu0 }
 0x7a5   : > { %v8886_v5 = vpop.f32.mrb[47].mxu0 }
 0x7aa   : > { %v1948_v6 = vpop.f32.mrb[48].mxu0 }
 0x7ab   : > { %v8891_v9 = vpop.f32.mrb[49].mxu0  ;;  %v2037_v7 = vsel %vm706_vm3, %v1948_v6, -inf }
 0x7ac   : > { %2038 = vmax.xlane.f32.xlu0 %v2037_v7  ;;  %v1951_v11 = vpop.f32.mrb[50].mxu0 }
 0x7ad   : > { %v8892_v12 = vpop.f32.mrb[51].mxu0 }
 0x7b2   : > { %v1988_v14 = vpop.f32.mrb[52].mxu0 }
 0x7b3   : > { %v8897_v16 = vpop.f32.mrb[53].mxu0  ;;  %v2041_v17 = vsel %vm706_vm3, %v1988_v14, -inf }
 0x7b4   : > { %2042 = vmax.xlane.f32.xlu0 %v2041_v17  ;;  %v1991_v23 = vpop.f32.mrb[54].mxu0 }
 0x7b5   : > { %2357 = vrot.lane.b32.xlu1 %v10616_v20, %s11755_s15  ;;  %v8898_v24 = vpop.f32.mrb[55].mxu0  ;;  %s11774_s15 = smov 112  }
 0x7b8   : > { %2046 = vmax.xlane.f32.xlu0 %v2045_v25 }
 0x7ce   : > { %2309 = vrot.lane.b32.xlu0 %v10616_v20, %s11753_s24  ;;  %s11773_s24 = smov 40  }
 0x831   : > { %v2036_v27 = vpop.xlane.xlu1 %2035 }
 0x835   : > { %v2358_v45 = vpop.permute.xlu1 %2357 }
 0x836   : > { %v10632_v50 = vsel %vm524_vm2, %v2358_v45, 0 }
 0x839   : > { %v2039_v26 = vpop.xlane.xlu0 %2038 }
 0x83a   : > { %v2040_v29 = vmax.f32 %v2036_v27, %v2039_v26 }
 0x841   : > { %v2043_v28 = vpop.xlane.xlu0 %2042 }
 0x842   : > { %v2044_v30 = vmax.f32 %v2040_v29, %v2043_v28 }
 0x845   : > { %v2047_v31 = vpop.xlane.xlu0 %2046 }
 0x846   : > { %v2048_v32 = vmax.f32 %v2044_v30, %v2047_v31 }
 0x848   : > { %v2049_v35 = vsub.f32 %v1908_v2, %v2048_v32  ;;  %v2052_v33 = vsub.f32 %v1948_v6, %v2048_v32  ;;  %v2055_v36 = vsub.f32 %v1988_v14, %v2048_v32  ;;  %v2058_v41 = vsub.f32 %v2028_v15, %v2048_v32 }
 0x849   : > { %v2310_v37 = vpop.permute.xlu0 %2309 }
 0x84a   : > { %v2050_v38 = vmul.f32 1.442695, %v2049_v35  ;;  %v2053_v39 = vmul.f32 1.442695, %v2052_v33  ;;  %v2056_v40 = vmul.f32 1.442695, %v2055_v36 }
 0x84b   : > { %v10624_v42 = vsel %vm524_vm2, %v2310_v37, 0  ;;  %v2059_v44 = vmul.f32 1.442695, %v2058_v41 }
 0x84c   : > { %9953 = vpow2.f32 %v2050_v38  ;;  %8936 = vmatpush3.bf16.xpose.msra.mxu1 %v10624_v42 }
 0x84d   : > { %9955 = vpow2.f32 %v2053_v39  ;;  %8941 = vmatprep.subr.bf16.mxu1 %v10152_v1 }
 0x84e   : > { %9957 = vpow2.f32 %v2056_v40 }
 0x84f   : > { %9959 = vpow2.f32 %v2059_v44 }
 0x853   : > { %8938 = vmatmul.mubr.msk.bf16.vlgmr.msra.gmra.mrb[28].mxu1 %vm524_vm2, %v10629_v49 }
 0x854   : > { %8942 = vmatpush3.bf16.xpose.msra.mxu1 %v10632_v50  ;;  %8943 = vmatprep.mubr.msk.bf16.mxu1 %vm10153_vm0, %v10152_v1 }
 0x855   : > { %8947 = vmatprep.subr.bf16.mxu1 %v10152_v1 }
 0x856   : > { %v9954_v53 = vpop.eup %9953 }
 0x857   : > { %v9956_v43 = vpop.eup %9955  ;;  %v2061_v47 = vsel %vm706_vm3, %v9954_v53, 0.0  ;;  %v2076_v58 = vpack.c.bf16 %v9954_v53, %v9954_v53 }
 0x858   : > { %v9958_v51 = vpop.eup %9957  ;;  %v2064_v54 = vsel %vm706_vm3, %v9956_v43, 0.0  ;;  %2062 = vadd.xlane.f32.xlu0 %v2061_v47  ;;  %v2077_v55 = vpack.c.bf16 %v9956_v43, %v9956_v43 }
 0x859   : > { %2065 = vadd.xlane.f32.xlu1 %v2064_v54  ;;  %v2068_v56 = vsel %vm706_vm3, %v9958_v51, 0.0  ;;  %v9960_v21 = vpop.eup %9959 }
 0x85a   : > { %8908 = vmatmul.mubr.msk.bf16.vlgmr.msra.gmra.mrb[56].mxu0 %vm753_vm5, %v2077_v55  ;;  %v2072_v57 = vsel %vm706_vm3, %v9960_v21, 0.0 }
 0x85b   : > { %8912 = vmatpush3.bf16.msra.mxu0 %v10434_v22  ;;  %8944 = vmatmul.mubr.msk.bf16.vlgmr.msra.gmra.mrb[32].mxu1 %vm524_vm2, %v10629_v49  ;;  %v2164_v22 = vpack.c.bf16 %v9958_v51, %v9958_v51 }
 0x85c   : > { %2069 = vadd.xlane.f32.xlu0 %v2068_v56  ;;  %8913 = vmatprep.mubr.msk.bf16.mxu0 %vm10153_vm0, %v10152_v1 }
 0x85d   : > { %8917 = vmatprep.subr.bf16.mxu0 %v10152_v1  ;;  %8949 = vmatprep.mubr.msk.bf16.mxu1 %vm10153_vm0, %v10152_v1 }
 0x860   : > { %2073 = vadd.xlane.f32.xlu0 %v2072_v57 }
 0x866   : > { %8914 = vmatmul.mubr.msk.bf16.vlgmr.msra.gmra.mrb[56].mxu0 %vm753_vm5, %v2076_v58 }
 0x867   : > { %8918 = vmatpush3.bf16.msra.mxu0 %v10453_v34  ;;  %8919 = vmatprep.mubr.msk.bf16.mxu0 %vm10153_vm0, %v10152_v1  ;;  %v2209_v34 = vpack.c.bf16 %v9960_v21, %v9960_v21 }
 0x868   : > { %8923 = vmatprep.subr.bf16.mxu0 %v10152_v1 }
 0x86a   : > { %2447 = vrot.lane.b32.xlu1 %v10616_v20, %s11749_s30  ;;  %s11770_s30 = smov 56  }
 0x872   : > { %8920 = vmatmul.mubr.msk.bf16.vlgmr.msra.gmra.mrb[56].mxu0 %vm753_vm5, %v2164_v22 }
 0x873   : > { %8924 = vmatpush3.bf16.msra.mxu0 %v10467_v52  ;;  %8925 = vmatprep.mubr.msk.bf16.mxu0 %vm10153_vm0, %v10152_v1  ;;  %v510_v52 = vld [vmem:[%s11768_s3 + $0x18] sm:$0xff]  ;;  %s11779_s3 = smov 104  }
 0x874   : > { %8929 = vmatprep.subr.bf16.mxu0 %v10152_v1  ;;  %v514_v59 = vpack.c.bf16 %v510_v52, %v510_v52 }
 0x876   : > { %2402 = vrot.lane.b32.xlu0 %v10616_v20, %s11751_s23  ;;  %v10676_v60 = vsel %vm1344_vm6, %v514_v59, 0  ;;  %s11772_s23 = smov 48  }
 0x87a   : > { %2735 = vrot.lane.b32.xlu0 %v10629_v49, %s11769_s22 }
 0x87e   : > { %8926 = vmatmul.mubr.msk.bf16.vlgmr.msra.gmra.mrb[56].mxu0 %vm753_vm5, %v2209_v34 }
 0x87f   : > { %8931 = vmatprep.mubr.msk.bf16.mxu0 %vm10153_vm0, %v10152_v1  ;;  %8930 = vmatpush3.bf16.msra.mxu0 %v10676_v60 }
 0x880   : > { %8983 = vmatprep.subr.bf16.mxu0 %v10152_v1 }
 0x8e5   : > { %v2063_v61 = vpop.xlane.xlu0 %2062 }
 0x8e6   : > { %v2066_v18 = vpop.xlane.xlu1 %2065 }
 0x8e7   : > { %v2067_v17 = vadd.f32 %v2066_v18, %v2063_v61 }
 0x8e9   : > { %v2070_v62 = vpop.xlane.xlu0 %2069 }
 0x8ea   : > { %v2448_v2 = vpop.permute.xlu1 %2447  ;;  %v2071_v23 = vadd.f32 %v2070_v62, %v2067_v17 }
 0x8eb   : > { %v10686_v19 = vsel %vm524_vm2, %v2448_v2, 0 }
 0x8ed   : > { %v2074_v15 = vpop.xlane.xlu0 %2073 }
 0x8ee   : > { %v2075_v24 = vadd.f32 %v2074_v15, %v2071_v23 }
 0x8f0   : > { %9961 = vrcp.f32 %v2075_v24 }
 0x8f1   : > { %v2403_v63 = vpop.permute.xlu0 %2402 }
 0x8f2   : > { %v10681_v0 = vsel %vm524_vm2, %v2403_v63, 0 }
 0x8f3   : > { %8948 = vmatpush3.bf16.xpose.msra.mxu1 %v10681_v0 }
 0x8f4   : > { %8953 = vmatprep.subr.bf16.mxu1 %v10152_v1 }
 0x8f5   : > { %v2736_v32 = vpop.permute.xlu0 %2735 }
 0x8fa   : > { %8950 = vmatmul.mubr.msk.bf16.vlgmr.msra.gmra.mrb[36].mxu1 %vm524_vm2, %v10629_v49  ;;  %v9962_v25 = vpop.eup %9961 }
 0x8fb   : > { %8954 = vmatpush3.bf16.xpose.msra.mxu1 %v10686_v19  ;;  %8955 = vmatprep.mubr.msk.bf16.mxu1 %vm10153_vm0, %v10152_v1 }
 0x8fc   : > { %8959 = vmatprep.subr.bf16.mxu1 %v10152_v1 }
 0x902   : > { %8956 = vmatmul.mubr.msk.bf16.vlgmr.msra.gmra.mrb[40].mxu1 %vm524_vm2, %v10629_v49 }
 0x903   : > { %8961 = vmatprep.mubr.msk.bf16.mxu1 %vm10153_vm0, %v10152_v1 }
 0x926   : > { %v10698_v3 = vpop.f32.mrb[28].mxu1 }
 0x927   : > { %v8939_v4 = vpop.f32.mrb[29].mxu1  ;;  %v2492_v5 = vsel %vm706_vm3, %v10698_v3, -inf }
 0x928   : > { %2493 = vmax.xlane.f32.xlu0 %v2492_v5  ;;  %v2354_v6 = vpop.f32.mrb[30].mxu1 }
 0x929   : > { %v8940_v9 = vpop.f32.mrb[31].mxu1 }
 0x92e   : > { %v10702_v7 = vpop.f32.mrb[32].mxu1 }
 0x92f   : > { %v8945_v11 = vpop.f32.mrb[33].mxu1  ;;  %v2495_v12 = vsel %vm706_vm3, %v10702_v7, -inf }
 0x930   : > { %2496 = vmax.xlane.f32.xlu1 %v2495_v12  ;;  %v2399_v14 = vpop.f32.mrb[34].mxu1 }
 0x931   : > { %v8946_v16 = vpop.f32.mrb[35].mxu1 }
 0x941   : > { %2536 = vrot.lane.b32.xlu1 %v10616_v20, %s11770_s30 }
 0x951   : > { %v2247_v26 = vpop.f32.mrb[56].mxu0 }
 0x952   : > { %v2255_v27 = vmul.f32 %v9962_v25, %v2247_v26  ;;  %v8927_v28 = vpop.f32.mrb[57].mxu0 }
 0x953   : > { %v2250_v29 = vpop.f32.mrb[58].mxu0 }
 0x954   : > { %v2256_v30 = vpack.c.bf16 %v2255_v27, %v2255_v27  ;;  %v8928_v31 = vpop.f32.mrb[59].mxu0 }
 0x956   : > { %8932 = vmatmul.mubr.msk.bf16.vlgmr.msra.gmra.mrb[28].mxu0 %vm524_vm2, %v2256_v30 }
 0x957   : > { %8984 = vmatpush3.bf16.xpose.msra.mxu0 %v10624_v42  ;;  %8985 = vmatprep.mubr.msk.bf16.mxu0 %vm10153_vm0, %v10152_v1 }
 0x958   : > { %8989 = vmatprep.subr.bf16.mxu0 %v10152_v1 }
 0x95e   : > { %8986 = vmatmul.mubr.msk.bf16.vlgmr.msra.gmra.mrb[60].mxu0 %vm524_vm2, %v2736_v32 }
 0x95f   : > { %8990 = vmatpush3.bf16.xpose.msra.mxu0 %v10632_v50  ;;  %8991 = vmatprep.mubr.msk.bf16.mxu0 %vm10153_vm0, %v10152_v1 }
 0x960   : > { %8995 = vmatprep.subr.bf16.mxu0 %v10152_v1 }
 0x966   : > { %8992 = vmatmul.mubr.msk.bf16.vlgmr.msra.gmra.mrb[64].mxu0 %vm524_vm2, %v2736_v32 }
 0x967   : > { %8996 = vmatpush3.bf16.xpose.msra.mxu0 %v10681_v0  ;;  %8997 = vmatprep.mubr.msk.bf16.mxu0 %vm10153_vm0, %v10152_v1 }
 0x968   : > { %9001 = vmatprep.subr.bf16.mxu0 %v10152_v1 }
 0x96e   : > { %8998 = vmatmul.mubr.msk.bf16.vlgmr.msra.gmra.mrb[68].mxu0 %vm524_vm2, %v2736_v32 }
 0x96f   : > { %9002 = vmatpush3.bf16.xpose.msra.mxu0 %v10686_v19  ;;  %9003 = vmatprep.mubr.msk.bf16.mxu0 %vm10153_vm0, %v10152_v1 }
 0x970   : > { %9031 = vmatprep.subr.bf16.mxu0 %v10152_v1 }
 0x976   : > { %9004 = vmatmul.mubr.msk.bf16.vlgmr.msra.gmra.mrb[72].mxu0 %vm524_vm2, %v2736_v32 }
 0x977   : > { %9032 = vmatpush3.bf16.msra.mxu0 %v10513_v8  ;;  %9033 = vmatprep.mubr.msk.bf16.mxu0 %vm10153_vm0, %v10152_v1 }
 0x978   : > { %9037 = vmatprep.subr.bf16.mxu0 %v10152_v1 }
 0x9b5   : > { %v2494_v16 = vpop.xlane.xlu0 %2493 }
 0x9bd   : > { %v2497_v35 = vpop.xlane.xlu1 %2496 }
 0x9be   : > { %v2498_v23 = vmax.f32 %v2494_v16, %v2497_v35 }
 0x9c1   : > { %v2537_v33 = vpop.permute.xlu1 %2536 }
 0x9c2   : > { %v10734_v36 = vsel %vm757_vm4, %v2537_v33, 0 }
 0x9c3   : > { %8960 = vmatpush3.bf16.msra.mxu1 %v10734_v36 }
 0x9c4   : > { %8965 = vmatprep.subr.bf16.mxu1 %v10152_v1 }
 0x9cd   : > { %v10738_v37 = vpop.f32.mrb[36].mxu1 }
 0x9ce   : > { %v8951_v38 = vpop.f32.mrb[37].mxu1  ;;  %v2499_v39 = vsel %vm706_vm3, %v10738_v37, -inf }
 0x9cf   : > { %2500 = vmax.xlane.f32.xlu0 %v2499_v39  ;;  %v2444_v40 = vpop.f32.mrb[38].mxu1 }
 0x9d0   : > { %v8952_v41 = vpop.f32.mrb[39].mxu1 }
 0x9d5   : > { %v10742_v44 = vpop.f32.mrb[40].mxu1 }
 0x9d6   : > { %v8957_v45 = vpop.f32.mrb[41].mxu1  ;;  %v2503_v53 = vsel %vm706_vm3, %v10742_v44, -inf }
 0x9d7   : > { %2504 = vmax.xlane.f32.xlu0 %v2503_v53  ;;  %v2489_v43 = vpop.f32.mrb[42].mxu1 }
 0x9d8   : > { %v8958_v47 = vpop.f32.mrb[43].mxu1 }
 0x9ed   : > { %2584 = vrot.lane.b32.xlu0 %v10616_v20, %s11771_s21 }
 0xa29   : > { %v10748_v51 = vpop.f32.mrb[28].mxu0 }
 0xa2a   : > { %v8933_v54 = vpop.f32.mrb[29].mxu0 }
 0xa2b   : > { %v2300_v55 = vpop.f32.mrb[30].mxu0 }
 0xa2c   : > { %v8934_v56 = vpop.f32.mrb[31].mxu0 }
 0xa31   : > { %v10750_v21 = vpop.f32.mrb[60].mxu0 }
 0xa32   : > { %v8987_v57 = vpop.f32.mrb[61].mxu0  ;;  %v2900_v58 = vsel %vm706_vm3, %v10750_v21, -inf }
 0xa33   : > { %2901 = vmax.xlane.f32.xlu0 %v2900_v58  ;;  %v2777_v22 = vpop.f32.mrb[62].mxu0 }
 0xa34   : > { %v8988_v34 = vpop.f32.mrb[63].mxu0 }
 0xa39   : > { %v10754_v52 = vpop.f32.mrb[64].mxu0 }
 0xa3a   : > { %v8993_v59 = vpop.f32.mrb[65].mxu0  ;;  %v2903_v61 = vsel %vm706_vm3, %v10754_v52, -inf }
 0xa3b   : > { %2904 = vmax.xlane.f32.xlu0 %v2903_v61  ;;  %v2817_v62 = vpop.f32.mrb[66].mxu0 }
 0xa3c   : > { %v8994_v15 = vpop.f32.mrb[67].mxu0 }
 0xa41   : > { %v10758_v18 = vpop.f32.mrb[68].mxu0 }
 0xa42   : > { %v8999_v63 = vpop.f32.mrb[69].mxu0  ;;  %v2907_v2 = vsel %vm706_vm3, %v10758_v18, -inf }
 0xa43   : > { %2908 = vmax.xlane.f32.xlu1 %v2907_v2  ;;  %v2857_v4 = vpop.f32.mrb[70].mxu0 }
 0xa44   : > { %v9000_v5 = vpop.f32.mrb[71].mxu0 }
 0xa49   : > { %v10762_v6 = vpop.f32.mrb[72].mxu0 }
 0xa4a   : > { %v9005_v9 = vpop.f32.mrb[73].mxu0  ;;  %v2911_v11 = vsel %vm706_vm3, %v10762_v6, -inf }
 0xa4b   : > { %2912 = vmax.xlane.f32.xlu0 %v2911_v11  ;;  %v2897_v12 = vpop.f32.mrb[74].mxu0 }
 0xa4c   : > { %v9006_v14 = vpop.f32.mrb[75].mxu0 }
 0xa54   : > { %2633 = vrot.lane.b32.xlu1 %v10616_v20, %s11772_s23 }
 0xa5c   : > { %v2501_v17 = vpop.xlane.xlu0 %2500 }
 0xa5d   : > { %v2502_v24 = vmax.f32 %v2498_v23, %v2501_v17 }
 0xa61   : > { %2683 = vrot.lane.b32.xlu0 %v10616_v20, %s11773_s24 }
 0xa64   : > { %v2505_v25 = vpop.xlane.xlu0 %2504 }
 0xa65   : > { %v2506_v26 = vmax.f32 %v2502_v24, %v2505_v25 }
 0xa67   : > { %v2510_v27 = vsub.f32 %v10702_v7, %v2506_v26  ;;  %v2513_v28 = vsub.f32 %v10738_v37, %v2506_v26  ;;  %v2516_v29 = vsub.f32 %v10742_v44, %v2506_v26  ;;  %v2507_v31 = vsub.f32 %v10698_v3, %v2506_v26 }
 0xa68   : > { %v2585_v35 = vpop.permute.xlu0 %2584 }
 0xa69   : > { %v2511_v30 = vmul.f32 1.442695, %v2510_v27  ;;  %v2508_v32 = vmul.f32 1.442695, %v2507_v31  ;;  %v10779_v38 = vsel %vm757_vm4, %v2585_v35, 0 }
 0xa6a   : > { %v2514_v37 = vmul.f32 1.442695, %v2513_v28  ;;  %v2517_v41 = vmul.f32 1.442695, %v2516_v29 }
 0xa6b   : > { %9963 = vpow2.f32 %v2511_v30 }
 0xa6c   : > { %9965 = vpow2.f32 %v2508_v32 }
 0xa6d   : > { %9967 = vpow2.f32 %v2514_v37 }
 0xa6e   : > { %9969 = vpow2.f32 %v2517_v41 }
 0xa75   : > { %v10774_v33 = vpop.eup %9963 }
 0xa76   : > { %v2535_v20 = vpack.c.bf16 %v10774_v33, %v10774_v33  ;;  %v10786_v3 = vpop.eup %9965  ;;  %v2522_v17 = vsel %vm706_vm3, %v10774_v33, 0.0 }
 0xa77   : > { %v2534_v7 = vpack.c.bf16 %v10786_v3, %v10786_v3  ;;  %v9968_v45 = vpop.eup %9967  ;;  %v2519_v25 = vsel %vm706_vm3, %v10786_v3, 0.0 }
 0xa78   : > { %8962 = vmatmul.mubr.msk.bf16.vlgmr.msra.gmra.mrb[44].mxu1 %vm753_vm5, %v2535_v20  ;;  %v2632_v55 = vpack.c.bf16 %v9968_v45, %v9968_v45  ;;  %v9970_v4 = vpop.eup %9969  ;;  %v2526_v27 = vsel %vm706_vm3, %v9968_v45, 0.0 }
 0xa79   : > { %8966 = vmatpush3.bf16.msra.mxu1 %v10779_v38  ;;  %8967 = vmatprep.mubr.msk.bf16.mxu1 %vm10153_vm0, %v10152_v1  ;;  %v2530_v24 = vsel %vm706_vm3, %v9970_v4, 0.0 }
 0xa7a   : > { %8971 = vmatprep.subr.bf16.mxu1 %v10152_v1 }
 0xa84   : > { %8968 = vmatmul.mubr.msk.bf16.vlgmr.msra.gmra.mrb[44].mxu1 %vm753_vm5, %v2534_v7 }
 0xa85   : > { %8973 = vmatprep.mubr.msk.bf16.mxu1 %vm10153_vm0, %v10152_v1 }
 0xac0   : > { %v2902_v39 = vpop.xlane.xlu0 %2901 }
 0xac8   : > { %v2905_v44 = vpop.xlane.xlu0 %2904 }
 0xac9   : > { %v2906_v43 = vmax.f32 %v2902_v39, %v2905_v44 }
 0xad0   : > { %v2909_v40 = vpop.xlane.xlu1 %2908 }
 0xad1   : > { %v2910_v54 = vmax.f32 %v2906_v43, %v2909_v40 }
 0xad4   : > { %v2634_v53 = vpop.permute.xlu1 %2633 }
 0xad5   : > { %v10794_v47 = vsel %vm757_vm4, %v2634_v53, 0 }
 0xad6   : > { %8972 = vmatpush3.bf16.msra.mxu1 %v10794_v47 }
 0xad7   : > { %8977 = vmatprep.subr.bf16.mxu1 %v10152_v1 }
 0xad8   : > { %v2913_v56 = vpop.xlane.xlu0 %2912 }
 0xad9   : > { %v2914_v57 = vmax.f32 %v2910_v54, %v2913_v56  ;;  %8974 = vmatmul.mubr.msk.bf16.vlgmr.msra.gmra.mrb[44].mxu1 %vm753_vm5, %v2632_v55 }
 0xada   : > { %8979 = vmatprep.mubr.msk.bf16.mxu1 %vm10153_vm0, %v10152_v1 }
 0xadb   : > { %v2915_v58 = vsub.f32 %v10750_v21, %v2914_v57  ;;  %v2918_v22 = vsub.f32 %v10754_v52, %v2914_v57  ;;  %v2921_v34 = vsub.f32 %v10758_v18, %v2914_v57  ;;  %v2924_v63 = vsub.f32 %v10762_v6, %v2914_v57 }
 0xadc   : > { %v2684_v59 = vpop.permute.xlu0 %2683  ;;  %v2682_v52 = vpack.c.bf16 %v9970_v4, %v9970_v4 }
 0xadd   : > { %v2916_v61 = vmul.f32 1.442695, %v2915_v58  ;;  %v2919_v62 = vmul.f32 1.442695, %v2918_v22  ;;  %v2922_v15 = vmul.f32 1.442695, %v2921_v34 }
 0xade   : > { %v10806_v2 = vsel %vm757_vm4, %v2684_v59, 0  ;;  %v2925_v21 = vmul.f32 1.442695, %v2924_v63 }
 0xadf   : > { %9971 = vpow2.f32 %v2916_v61  ;;  %8978 = vmatpush3.bf16.msra.mxu1 %v10806_v2 }
 0xae0   : > { %9973 = vpow2.f32 %v2919_v62  ;;  %9007 = vmatprep.subr.bf16.mxu1 %v10152_v1 }
 0xae1   : > { %9975 = vpow2.f32 %v2922_v15 }
 0xae2   : > { %9977 = vpow2.f32 %v2925_v21 }
 0xae5   : > { %8980 = vmatmul.mubr.msk.bf16.vlgmr.msra.gmra.mrb[44].mxu1 %vm753_vm5, %v2682_v52 }
 0xae6   : > { %9008 = vmatpush3.bf16.msra.mxu1 %v10734_v36  ;;  %9009 = vmatprep.mubr.msk.bf16.mxu1 %vm10153_vm0, %v10152_v1 }
 0xae7   : > { %9013 = vmatprep.subr.bf16.mxu1 %v10152_v1 }
 0xae9   : > { %v9972_v18 = vpop.eup %9971 }
 0xaea   : > { %v9974_v5 = vpop.eup %9973  ;;  %v2927_v6 = vsel %vm706_vm3, %v9972_v18, 0.0  ;;  %v2942_v26 = vpack.c.bf16 %v9972_v18, %v9972_v18 }
 0xaeb   : > { %v9976_v9 = vpop.eup %9975  ;;  %v2930_v11 = vsel %vm706_vm3, %v9974_v5, 0.0  ;;  %2928 = vadd.xlane.f32.xlu1 %v2927_v6  ;;  %v2943_v12 = vpack.c.bf16 %v9974_v5, %v9974_v5 }
 0xaec   : > { %2931 = vadd.xlane.f32.xlu0 %v2930_v11  ;;  %v2934_v14 = vsel %vm706_vm3, %v9976_v9, 0.0  ;;  %v9978_v16 = vpop.eup %9977  ;;  %v3030_v28 = vpack.c.bf16 %v9976_v9, %v9976_v9 }
 0xaed   : > { %9010 = vmatmul.mubr.msk.bf16.vlgmr.msra.gmra.mrb[48].mxu1 %vm753_vm5, %v2943_v12  ;;  %v2938_v23 = vsel %vm706_vm3, %v9978_v16, 0.0  ;;  %v3075_v29 = vpack.c.bf16 %v9978_v16, %v9978_v16 }
 0xaee   : > { %9014 = vmatpush3.bf16.msra.mxu1 %v10779_v38  ;;  %9015 = vmatprep.mubr.msk.bf16.mxu1 %vm10153_vm0, %v10152_v1 }
 0xaef   : > { %2935 = vadd.xlane.f32.xlu1 %v2934_v14  ;;  %9019 = vmatprep.subr.bf16.mxu1 %v10152_v1 }
 0xaf0   : > { %2523 = vadd.xlane.f32.xlu0 %v2522_v17 }
 0xaf3   : > { %2939 = vadd.xlane.f32.xlu1 %v2938_v23 }
 0xaf4   : > { %2531 = vadd.xlane.f32.xlu0 %v2530_v24 }
 0xaf7   : > { %2520 = vadd.xlane.f32.xlu1 %v2519_v25 }
 0xaf9   : > { %9016 = vmatmul.mubr.msk.bf16.vlgmr.msra.gmra.mrb[48].mxu1 %vm753_vm5, %v2942_v26 }
 0xafa   : > { %9020 = vmatpush3.bf16.msra.mxu1 %v10794_v47  ;;  %9021 = vmatprep.mubr.msk.bf16.mxu1 %vm10153_vm0, %v10152_v1 }
 0xafb   : > { %2527 = vadd.xlane.f32.xlu1 %v2526_v27  ;;  %9025 = vmatprep.subr.bf16.mxu1 %v10152_v1 }
 0xb05   : > { %9022 = vmatmul.mubr.msk.bf16.vlgmr.msra.gmra.mrb[48].mxu1 %vm753_vm5, %v3030_v28 }
 0xb06   : > { %9026 = vmatpush3.bf16.msra.mxu1 %v10806_v2  ;;  %9027 = vmatprep.mubr.msk.bf16.mxu1 %vm10153_vm0, %v10152_v1 }
 0xb07   : > { %9055 = vmatprep.subr.bf16.mxu1 %v10152_v1 }
 0xb0c   : > { %3209 = vrot.lane.b32.xlu1 %v10629_v49, %s11774_s15 }
 0xb11   : > { %9028 = vmatmul.mubr.msk.bf16.vlgmr.msra.gmra.mrb[48].mxu1 %vm753_vm5, %v3075_v29 }
 0xb12   : > { %9056 = vmatpush3.bf16.xpose.msra.mxu1 %v10681_v0  ;;  %9057 = vmatprep.mubr.msk.bf16.mxu1 %vm10153_vm0, %v10152_v1 }
 0xb13   : > { %9067 = vmatprep.subr.bf16.mxu1 %v10152_v1 }
 0xb78   : > { %v2929_v30 = vpop.xlane.xlu1 %2928 }
 0xb79   : > { %v2932_v40 = vpop.xlane.xlu0 %2931 }
 0xb7a   : > { %v2933_v41 = vadd.f32 %v2932_v40, %v2929_v30 }
 0xb7c   : > { %v2936_v31 = vpop.xlane.xlu1 %2935 }
 0xb7d   : > { %v2937_v44 = vadd.f32 %v2936_v31, %v2933_v41  ;;  %v2524_v53 = vpop.xlane.xlu0 %2523 }
 0xb80   : > { %v2940_v32 = vpop.xlane.xlu1 %2939 }
 0xb81   : > { %v2941_v45 = vadd.f32 %v2940_v32, %v2937_v44  ;;  %v2532_v55 = vpop.xlane.xlu0 %2531 }
 0xb83   : > { %9979 = vrcp.f32 %v2941_v45 }
 0xb84   : > { %v2521_v33 = vpop.xlane.xlu1 %2520 }
 0xb85   : > { %v2525_v43 = vadd.f32 %v2524_v53, %v2521_v33 }
 0xb88   : > { %v2528_v35 = vpop.xlane.xlu1 %2527 }
 0xb89   : > { %v2529_v54 = vadd.f32 %v2528_v35, %v2525_v43 }
 0xb8b   : > { %v2533_v56 = vadd.f32 %v2532_v55, %v2529_v54 }
 0xb8c   : > { %v3210_v20 = vpop.permute.xlu1 %3209 }
 0xb8d   : > { %9058 = vmatmul.mubr.msk.bf16.vlgmr.msra.gmra.mrb[52].mxu1 %vm524_vm2, %v3210_v20  ;;  %v9980_v57 = vpop.eup %9979  ;;  %9981 = vrcp.f32 %v2533_v56 }
 0xb8e   : > { %9068 = vmatpush3.bf16.msra.mxu1 %v10734_v36  ;;  %9069 = vmatprep.mubr.msk.bf16.mxu1 %vm10153_vm0, %v10152_v1 }
 0xb8f   : > { %9073 = vmatprep.subr.bf16.mxu1 %v10152_v1 }
 0xb97   : > { %v9982_v15 = vpop.eup %9981 }
 0xbb8   : > { %v2725_v3 = vpop.f32.mrb[44].mxu1 }
 0xbb9   : > { %v8981_v7 = vpop.f32.mrb[45].mxu1  ;;  %v2733_v63 = vmul.f32 %v9982_v15, %v2725_v3 }
 0xbba   : > { %v2728_v37 = vpop.f32.mrb[46].mxu1 }
 0xbbb   : > { %v8982_v39 = vpop.f32.mrb[47].mxu1  ;;  %v2734_v4 = vpack.c.bf16 %v2733_v63, %v2733_v63 }
 0xbe4   : > { %v3113_v58 = vpop.f32.mrb[48].mxu1 }
 0xbe5   : > { %v3121_v22 = vmul.f32 %v9980_v57, %v3113_v58  ;;  %v9029_v34 = vpop.f32.mrb[49].mxu1 }
 0xbe6   : > { %v3116_v59 = vpop.f32.mrb[50].mxu1 }
 0xbe7   : > { %v3122_v61 = vpack.c.bf16 %v3121_v22, %v3121_v22  ;;  %v9030_v62 = vpop.f32.mrb[51].mxu1 }
 0xbe9   : > { %9034 = vmatmul.mubr.msk.bf16.vlgmr.msra.gmra.mrb[76].mxu0 %vm524_vm2, %v3122_v61 }
 0xbea   : > { %9038 = vmatpush3.bf16.msra.mxu0 %v10526_v46  ;;  %9039 = vmatprep.mubr.msk.bf16.mxu0 %vm10153_vm0, %v10152_v1 }
 0xbeb   : > { %9043 = vmatprep.subr.bf16.mxu0 %v10152_v1 }
 0xbf5   : > { %9040 = vmatmul.mubr.msk.bf16.vlgmr.msra.gmra.mrb[76].mxu0 %vm524_vm2, %v2734_v4 }
 0xbf6   : > { %9044 = vmatpush3.bf16.xpose.msra.mxu0 %v10624_v42  ;;  %9045 = vmatprep.mubr.msk.bf16.mxu0 %vm10153_vm0, %v10152_v1 }
 0xbf7   : > { %9049 = vmatprep.subr.bf16.mxu0 %v10152_v1 }
 0xbfd   : > { %9046 = vmatmul.mubr.msk.bf16.vlgmr.msra.gmra.mrb[80].mxu0 %vm524_vm2, %v3210_v20 }
 0xbfe   : > { %9050 = vmatpush3.bf16.xpose.msra.mxu0 %v10632_v50  ;;  %9051 = vmatprep.mubr.msk.bf16.mxu0 %vm10153_vm0, %v10152_v1 }
 0xbff   : > { %9061 = vmatprep.subr.bf16.mxu0 %v10152_v1 }
 0xc05   : > { %9052 = vmatmul.mubr.msk.bf16.vlgmr.msra.gmra.mrb[84].mxu0 %vm524_vm2, %v3210_v20 }
 0xc06   : > { %9062 = vmatpush3.bf16.xpose.msra.mxu0 %v10686_v19  ;;  %9063 = vmatprep.mubr.msk.bf16.mxu0 %vm10153_vm0, %v10152_v1 }
 0xc07   : > { %9091 = vmatprep.subr.bf16.mxu0 %v10152_v1 }
 0xc0d   : > { %9064 = vmatmul.mubr.msk.bf16.vlgmr.msra.gmra.mrb[88].mxu0 %vm524_vm2, %v3210_v20 }
 0xc0e   : > { %9092 = vmatpush3.bf16.msra.mxu0 %v10580_v48  ;;  %9093 = vmatprep.mubr.msk.bf16.mxu0 %vm10153_vm0, %v10152_v1 }
 0xc0f   : > { %9097 = vmatprep.subr.bf16.mxu0 %v10152_v1 }
 0xc60   : > { %v3328_v21 = vpop.f32.mrb[52].mxu1 }
 0xc61   : > { %v9059_v52 = vpop.f32.mrb[53].mxu1  ;;  %v3381_v18 = vsel %vm706_vm3, %v3328_v21, -inf }
 0xc62   : > { %3382 = vmax.xlane.f32.xlu0 %v3381_v18  ;;  %v3331_v5 = vpop.f32.mrb[54].mxu1 }
 0xc63   : > { %v9060_v6 = vpop.f32.mrb[55].mxu1 }
 0xcd0   : > { %v3248_v9 = vpop.f32.mrb[80].mxu0 }
 0xcd1   : > { %v9047_v11 = vpop.f32.mrb[81].mxu0  ;;  %v3374_v12 = vsel %vm706_vm3, %v3248_v9, -inf }
 0xcd2   : > { %3375 = vmax.xlane.f32.xlu0 %v3374_v12  ;;  %v3251_v14 = vpop.f32.mrb[82].mxu0 }
 0xcd3   : > { %v9048_v16 = vpop.f32.mrb[83].mxu0 }
 0xcd8   : > { %v3288_v17 = vpop.f32.mrb[84].mxu0 }
 0xcd9   : > { %v9053_v23 = vpop.f32.mrb[85].mxu0  ;;  %v3377_v24 = vsel %vm706_vm3, %v3288_v17, -inf }
 0xcda   : > { %3378 = vmax.xlane.f32.xlu0 %v3377_v24  ;;  %v3291_v25 = vpop.f32.mrb[86].mxu0 }
 0xcdb   : > { %v9054_v26 = vpop.f32.mrb[87].mxu0 }
 0xce0   : > { %v3368_v27 = vpop.f32.mrb[88].mxu0 }
 0xce1   : > { %v9065_v28 = vpop.f32.mrb[89].mxu0  ;;  %v3385_v29 = vsel %vm706_vm3, %v3368_v27, -inf }
 0xce2   : > { %3386 = vmax.xlane.f32.xlu0 %v3385_v29  ;;  %v3371_v30 = vpop.f32.mrb[90].mxu0 }
 0xce3   : > { %v9066_v31 = vpop.f32.mrb[91].mxu0 }
 0xcef   : > { %v3383_v32 = vpop.xlane.xlu0 %3382 }
 0xd5f   : > { %v3376_v33 = vpop.xlane.xlu0 %3375 }
 0xd67   : > { %v3379_v35 = vpop.xlane.xlu0 %3378 }
 0xd68   : > { %v3380_v20 = vmax.f32 %v3376_v33, %v3379_v35 }
 0xd6a   : > { %v3384_v3 = vmax.f32 %v3380_v20, %v3383_v32 }
 0xd6f   : > { %v3387_v7 = vpop.xlane.xlu0 %3386 }
 0xd70   : > { %v3388_v37 = vmax.f32 %v3384_v3, %v3387_v7 }
 0xd72   : > { %v3389_v39 = vsub.f32 %v3248_v9, %v3388_v37  ;;  %v3392_v40 = vsub.f32 %v3288_v17, %v3388_v37  ;;  %v3395_v41 = vsub.f32 %v3328_v21, %v3388_v37  ;;  %v3398_v43 = vsub.f32 %v3368_v27, %v3388_v37 }
 0xd74   : > { %v3390_v44 = vmul.f32 1.442695, %v3389_v39  ;;  %v3393_v45 = vmul.f32 1.442695, %v3392_v40  ;;  %v3396_v53 = vmul.f32 1.442695, %v3395_v41 }
 0xd75   : > { %v3399_v54 = vmul.f32 1.442695, %v3398_v43  ;;  %v10935_v41 = vrot.slane %v10312_v10, 2 }
 0xd76   : > { %9983 = vpow2.f32 %v3390_v44  ;;  %v10940_v44 = vrot.slane %v10322_v13, 2 }
 0xd77   : > { %9985 = vpow2.f32 %v3393_v45 }
 0xd78   : > { %9987 = vpow2.f32 %v3396_v53 }
 0xd79   : > { %9989 = vpow2.f32 %v3399_v54 }
 0xd80   : > { %v9984_v55 = vpop.eup %9983 }
 0xd81   : > { %v9986_v56 = vpop.eup %9985  ;;  %v3401_v57 = vsel %vm706_vm3, %v9984_v55, 0.0  ;;  %v3416_v15 = vpack.c.bf16 %v9984_v55, %v9984_v55 }
 0xd82   : > { %v3404_v58 = vsel %vm706_vm3, %v9986_v56, 0.0  ;;  %3402 = vadd.xlane.f32.xlu1 %v3401_v57  ;;  %v3417_v22 = vpack.c.bf16 %v9986_v56, %v9986_v56  ;;  %v9988_v34 = vpop.eup %9987 }
 0xd83   : > { %3405 = vadd.xlane.f32.xlu0 %v3404_v58  ;;  %v3408_v59 = vsel %vm706_vm3, %v9988_v34, 0.0  ;;  %v9990_v61 = vpop.eup %9989  ;;  %v3504_v63 = vpack.c.bf16 %v9988_v34, %v9988_v34 }
 0xd84   : > { %9070 = vmatmul.mubr.msk.bf16.vlgmr.msra.gmra.mrb[56].mxu1 %vm753_vm5, %v3417_v22  ;;  %v3412_v62 = vsel %vm706_vm3, %v9990_v61, 0.0  ;;  %v3549_v4 = vpack.c.bf16 %v9990_v61, %v9990_v61 }
 0xd85   : > { %9074 = vmatpush3.bf16.msra.mxu1 %v10779_v38  ;;  %9075 = vmatprep.mubr.msk.bf16.mxu1 %vm10153_vm0, %v10152_v1 }
 0xd86   : > { %9079 = vmatprep.subr.bf16.mxu1 %v10152_v1 }
 0xd87   : > { %3409 = vadd.xlane.f32.xlu0 %v3408_v59 }
 0xd8b   : > { %3413 = vadd.xlane.f32.xlu0 %v3412_v62 }
 0xd90   : > { %9076 = vmatmul.mubr.msk.bf16.vlgmr.msra.gmra.mrb[56].mxu1 %vm753_vm5, %v3416_v15 }
 0xd91   : > { %9080 = vmatpush3.bf16.msra.mxu1 %v10794_v47  ;;  %9081 = vmatprep.mubr.msk.bf16.mxu1 %vm10153_vm0, %v10152_v1 }
 0xd92   : > { %9085 = vmatprep.subr.bf16.mxu1 %v10152_v1 }
 0xd9c   : > { %9082 = vmatmul.mubr.msk.bf16.vlgmr.msra.gmra.mrb[56].mxu1 %vm753_vm5, %v3504_v63 }
 0xd9d   : > { %9086 = vmatpush3.bf16.msra.mxu1 %v10806_v2  ;;  %9087 = vmatprep.mubr.msk.bf16.mxu1 %vm10153_vm0, %v10152_v1 }
 0xd9e   : > { %9115 = vmatprep.subr.bf16.mxu1 %v10152_v1 }
 0xda1   : > { %3641 = vrot.lane.b32.xlu0 %v10629_v49, %s11757_s16  ;;  %s11775_s16 = smov 88  }
 0xda8   : > { %9088 = vmatmul.mubr.msk.bf16.vlgmr.msra.gmra.mrb[56].mxu1 %vm753_vm5, %v3549_v4 }
 0xda9   : > { %9116 = vmatpush3.bf16.xpose.msra.mxu1 %v10686_v19  ;;  %9117 = vmatprep.mubr.msk.bf16.mxu1 %vm10153_vm0, %v10152_v1 }
 0xdaa   : > { %9151 = vmatprep.subr.mxu1 %v10152_v1 }
 0xe0f   : > { %v3403_v52 = vpop.xlane.xlu1 %3402 }
 0xe10   : > { %v3406_v21 = vpop.xlane.xlu0 %3405 }
 0xe11   : > { %v3407_v5 = vadd.f32 %v3406_v21, %v3403_v52 }
 0xe14   : > { %v3410_v18 = vpop.xlane.xlu0 %3409 }
 0xe15   : > { %v3411_v6 = vadd.f32 %v3410_v18, %v3407_v5 }
 0xe18   : > { %v3414_v9 = vpop.xlane.xlu0 %3413 }
 0xe19   : > { %v3415_v11 = vadd.f32 %v3414_v9, %v3411_v6 }
 0xe1b   : > { %9991 = vrcp.f32 %v3415_v11 }
 0xe1c   : > { %v3642_v12 = vpop.permute.xlu0 %3641 }
 0xe1d   : > { %9118 = vmatmul.mubr.msk.bf16.vlgmr.msra.gmra.mrb[60].mxu1 %vm524_vm2, %v3642_v12 }
 0xe1e   : > { %9153 = vmatprep.mubr.msk.f32.mxu1 %vm10153_vm0, %v10152_v1 }
 0xe25   : > { %v9992_v49 = vpop.eup %9991 }
 0xe7b   : > { %v3587_v19 = vpop.f32.mrb[56].mxu1 }
 0xe7c   : > { %v3595_v14 = vmul.f32 %v9992_v49, %v3587_v19  ;;  %v9089_v16 = vpop.f32.mrb[57].mxu1 }
 0xe7d   : > { %v3590_v17 = vpop.f32.mrb[58].mxu1 }
 0xe7e   : > { %v3596_v23 = vpack.c.bf16 %v3595_v14, %v3595_v14  ;;  %v9090_v24 = vpop.f32.mrb[59].mxu1 }
 0xe80   : > { %9094 = vmatmul.mubr.msk.bf16.vlgmr.msra.gmra.mrb[76].mxu0 %vm524_vm2, %v3596_v23 }
 0xe81   : > { %9098 = vmatpush3.bf16.xpose.msra.mxu0 %v10624_v42  ;;  %9099 = vmatprep.mubr.msk.bf16.mxu0 %vm10153_vm0, %v10152_v1 }
 0xe82   : > { %9103 = vmatprep.subr.bf16.mxu0 %v10152_v1 }
 0xe88   : > { %9100 = vmatmul.mubr.msk.bf16.vlgmr.msra.gmra.mrb[92].mxu0 %vm524_vm2, %v3642_v12 }
 0xe89   : > { %9104 = vmatpush3.bf16.xpose.msra.mxu0 %v10632_v50  ;;  %9105 = vmatprep.mubr.msk.bf16.mxu0 %vm10153_vm0, %v10152_v1 }
 0xe8a   : > { %9109 = vmatprep.subr.bf16.mxu0 %v10152_v1 }
 0xe90   : > { %9106 = vmatmul.mubr.msk.bf16.vlgmr.msra.gmra.mrb[96].mxu0 %vm524_vm2, %v3642_v12 }
 0xe91   : > { %9110 = vmatpush3.bf16.xpose.msra.mxu0 %v10681_v0  ;;  %9111 = vmatprep.mubr.msk.bf16.mxu0 %vm10153_vm0, %v10152_v1 }
 0xe92   : > { %9121 = vmatprep.subr.bf16.mxu0 %v10152_v1 }
 0xe98   : > { %9112 = vmatmul.mubr.msk.bf16.vlgmr.msra.gmra.mrb[100].mxu0 %vm524_vm2, %v3642_v12 }
 0xe99   : > { %9122 = vmatpush3.bf16.msra.mxu0 %v10734_v36  ;;  %9123 = vmatprep.mubr.msk.bf16.mxu0 %vm10153_vm0, %v10152_v1 }
 0xe9a   : > { %9127 = vmatprep.subr.bf16.mxu0 %v10152_v1 }
 0xef0   : > { %v3800_v42 = vpop.f32.mrb[60].mxu1 }
 0xef1   : > { %v9119_v50 = vpop.f32.mrb[61].mxu1  ;;  %v3817_v40 = vsel %vm706_vm3, %v3800_v42, -inf }
 0xef2   : > { %v3803_v25 = vpop.f32.mrb[62].mxu1 }
 0xef3   : > { %v9120_v26 = vpop.f32.mrb[63].mxu1 }
 0xf5b   : > { %v3680_v27 = vpop.f32.mrb[92].mxu0 }
 0xf5c   : > { %v9101_v0 = vpop.f32.mrb[93].mxu0  ;;  %v3806_v28 = vsel %vm706_vm3, %v3680_v27, -inf }
 0xf5d   : > { %3807 = vmax.xlane.f32.xlu0 %v3806_v28  ;;  %v3683_v29 = vpop.f32.mrb[94].mxu0 }
 0xf5e   : > { %v9102_v30 = vpop.f32.mrb[95].mxu0  ;;  %v515_v29 = vlaneseq }
 0xf60   : > { %v10977_v30 = vand.u32 127, %v515_v29 }
 0xf63   : > { %v3720_v31 = vpop.f32.mrb[96].mxu0 }
 0xf64   : > { %v9107_v32 = vpop.f32.mrb[97].mxu0  ;;  %v3809_v36 = vsel %vm706_vm3, %v3720_v31, -inf }
 0xf65   : > { %3810 = vmax.xlane.f32.xlu1 %v3809_v36  ;;  %v3723_v33 = vpop.f32.mrb[98].mxu0  ;;  %v4073_v32 = vadd.s32 2, %v10977_v30 }
 0xf66   : > { %v9108_v35 = vpop.f32.mrb[99].mxu0 }
 0xf6b   : > { %v3760_v20 = vpop.f32.mrb[100].mxu0 }
 0xf6c   : > { %v9113_v3 = vpop.f32.mrb[101].mxu0  ;;  %v3813_v7 = vsel %vm706_vm3, %v3760_v20, -inf }
 0xf6d   : > { %3814 = vmax.xlane.f32.xlu1 %v3813_v7  ;;  %v3763_v37 = vpop.f32.mrb[102].mxu0 }
 0xf6e   : > { %v9114_v39 = vpop.f32.mrb[103].mxu0 }
 0xf71   : > { %3818 = vmax.xlane.f32.xlu1 %v3817_v40 }
 0xf73   : > { %4280 = vrot.lane.b32.xlu0 %v10935_v41, %s11775_s16 }
 0xf77   : > { %4658 = vrot.lane.b32.xlu0 %v10940_v44, %s11769_s22 }
 0xfea   : > { %v3808_v53 = vpop.xlane.xlu0 %3807 }
 0xff2   : > { %v3811_v45 = vpop.xlane.xlu1 %3810 }
 0xff3   : > { %v3812_v54 = vmax.f32 %v3808_v53, %v3811_v45 }
 0xffa   : > { %v3815_v43 = vpop.xlane.xlu1 %3814 }
 0xffb   : > { %v3816_v55 = vmax.f32 %v3812_v54, %v3815_v43 }
 0xffe   : > { %v3819_v56 = vpop.xlane.xlu1 %3818 }
 0xfff   : > { %v3820_v57 = vmax.f32 %v3816_v55, %v3819_v56 }
0x1001   : > { %v3821_v58 = vsub.f32 %v3680_v27, %v3820_v57  ;;  %v3824_v22 = vsub.f32 %v3720_v31, %v3820_v57  ;;  %v3827_v61 = vsub.f32 %v3760_v20, %v3820_v57  ;;  %v3830_v15 = vsub.f32 %v3800_v42, %v3820_v57 }
0x1002   : > { %v10979_v31 = vshrl.u32 %v515_v29, 7 }
0x1003   : > { %v3822_v34 = vmul.f32 1.442695, %v3821_v58  ;;  %v3825_v59 = vmul.f32 1.442695, %v3824_v22  ;;  %v3828_v62 = vmul.f32 1.442695, %v3827_v61 }
0x1004   : > { %v3831_v63 = vmul.f32 1.442695, %v3830_v15  ;;  %vm4074_vm7 = vcmp.eq.s32.totalorder %v10979_v31, %v4073_v32  ;;  %vm2304_vm9 = vcmp.eq.s32.totalorder %v10979_v31, %v10977_v30 }
0x1005   : > { %9993 = vpow2.f32 %v3822_v34  ;;  %v8302_v36 = vsel %vm4074_vm7, 1.0, %v10152_v1  ;;  %v8265_v7 = vsel %vm2304_vm9, 1.0, %v10152_v1 }
0x1006   : > { %9995 = vpow2.f32 %v3825_v59 }
0x1007   : > { %9997 = vpow2.f32 %v3828_v62 }
0x1008   : > { %9999 = vpow2.f32 %v3831_v63 }
0x100f   : > { %v9994_v4 = vpop.eup %9993 }
0x1010   : > { %v9996_v21 = vpop.eup %9995  ;;  %v3833_v52 = vsel %vm706_vm3, %v9994_v4, 0.0  ;;  %v3848_v49 = vpack.c.bf16 %v9994_v4, %v9994_v4 }
0x1011   : > { %3834 = vadd.xlane.f32.xlu1 %v3833_v52  ;;  %v3849_v18 = vpack.c.bf16 %v9996_v21, %v9996_v21  ;;  %v3836_v5 = vsel %vm706_vm3, %v9996_v21, 0.0  ;;  %v9998_v6 = vpop.eup %9997 }
0x1012   : > { %v3840_v9 = vsel %vm706_vm3, %v9998_v6, 0.0  ;;  %v10000_v11 = vpop.eup %9999 }
0x1013   : > { %9124 = vmatmul.mubr.msk.bf16.vlgmr.msra.gmra.mrb[104].mxu0 %vm753_vm5, %v3849_v18  ;;  %v3844_v12 = vsel %vm706_vm3, %v10000_v11, 0.0 }
0x1014   : > { %9128 = vmatpush3.bf16.msra.mxu0 %v10779_v38  ;;  %9129 = vmatprep.mubr.msk.bf16.mxu0 %vm10153_vm0, %v10152_v1  ;;  %v3936_v38 = vpack.c.bf16 %v9998_v6, %v9998_v6 }
0x1015   : > { %3837 = vadd.xlane.f32.xlu1 %v3836_v5  ;;  %9133 = vmatprep.subr.bf16.mxu0 %v10152_v1 }
0x1019   : > { %3841 = vadd.xlane.f32.xlu1 %v3840_v9 }
0x101d   : > { %3845 = vadd.xlane.f32.xlu1 %v3844_v12 }
0x101f   : > { %9130 = vmatmul.mubr.msk.bf16.vlgmr.msra.gmra.mrb[104].mxu0 %vm753_vm5, %v3848_v49 }
0x1020   : > { %9134 = vmatpush3.bf16.msra.mxu0 %v10794_v47  ;;  %9135 = vmatprep.mubr.msk.bf16.mxu0 %vm10153_vm0, %v10152_v1  ;;  %v3981_v47 = vpack.c.bf16 %v10000_v11, %v10000_v11 }
0x1021   : > { %9139 = vmatprep.subr.bf16.mxu0 %v10152_v1 }
0x102b   : > { %9136 = vmatmul.mubr.msk.bf16.vlgmr.msra.gmra.mrb[104].mxu0 %vm753_vm5, %v3936_v38 }
0x102c   : > { %9140 = vmatpush3.bf16.msra.mxu0 %v10806_v2  ;;  %9141 = vmatprep.mubr.msk.bf16.mxu0 %vm10153_vm0, %v10152_v1 }
0x102d   : > { %9145 = vmatprep.subr.bf16.mxu0 %v10152_v1 }
0x102e   : > { %4232 = vrot.lane.b32.xlu1 %v10935_v41, %s11776_s0 }
0x1032   : > { %4325 = vrot.lane.b32.xlu1 %v10935_v41, %s11777_s1 }
0x1036   : > { %4370 = vrot.lane.b32.xlu1 %v10935_v41, %s11778_s2 }
0x1037   : > { %9142 = vmatmul.mubr.msk.bf16.vlgmr.msra.gmra.mrb[104].mxu0 %vm753_vm5, %v3981_v47 }
0x1038   : > { %9146 = vmatpush3.bf16.msra.mxu0 %v10676_v60  ;;  %9147 = vmatprep.mubr.msk.bf16.mxu0 %vm10153_vm0, %v10152_v1 }
0x1039   : > { %9185 = vmatprep.subr.bf16.mxu0 %v10152_v1 }
0x109e   : > { %v3835_v2 = vpop.xlane.xlu1 %3834 }
0x10a2   : > { %v3838_v19 = vpop.xlane.xlu1 %3837 }
0x10a3   : > { %v3839_v16 = vadd.f32 %v3838_v19, %v3835_v2 }
0x10a6   : > { %v3842_v14 = vpop.xlane.xlu1 %3841 }
0x10a7   : > { %v3843_v23 = vadd.f32 %v3842_v14, %v3839_v16 }
0x10aa   : > { %v3846_v17 = vpop.xlane.xlu1 %3845 }
0x10ab   : > { %v3847_v24 = vadd.f32 %v3846_v17, %v3843_v23 }
0x10ad   : > { %10001 = vrcp.f32 %v3847_v24 }
0x10ae   : > { %v4233_v37 = vpop.permute.xlu1 %4232 }
0x10af   : > { %v10999_v39 = vsel %vm524_vm2, %v4233_v37, 0 }
0x10b2   : > { %v4326_v45 = vpop.permute.xlu1 %4325 }
0x10b3   : > { %v11013_v53 = vsel %vm524_vm2, %v4326_v45, 0 }
0x10b6   : > { %v4371_v43 = vpop.permute.xlu1 %4370 }
0x10b7   : > { %v10002_v42 = vpop.eup %10001  ;;  %v11022_v54 = vsel %vm524_vm2, %v4371_v43, 0 }
0x110a   : > { %v4019_v50 = vpop.f32.mrb[104].mxu0 }
0x110b   : > { %v4027_v25 = vmul.f32 %v10002_v42, %v4019_v50  ;;  %v9143_v26 = vpop.f32.mrb[105].mxu0 }
0x110c   : > { %v4022_v27 = vpop.f32.mrb[106].mxu0 }
0x110d   : > { %v4028_v0 = vpack.c.bf16 %v4027_v25, %v4027_v25  ;;  %v9144_v28 = vpop.f32.mrb[107].mxu0 }
0x110f   : > { %9148 = vmatmul.mubr.msk.bf16.vlgmr.msra.gmra.mrb[76].mxu0 %vm524_vm2, %v4028_v0 }
0x1110   : > { %9187 = vmatprep.mubr.msk.bf16.mxu0 %vm10153_vm0, %v10152_v1 }
0x11e2   : > { %v4066_v33 = vpop.f32.mrb[76].mxu0 }
0x11e3   : > { %v9149_v35 = vpop.f32.mrb[77].mxu0  ;;  %9152 = vmatpush3.msk.msra.mxu1 %vm4080_vm8, %v4066_v33 }
0x11e4   : > { %v4069_v20 = vpop.f32.mrb[78].mxu0  ;;  %9154 = vmatmul.mubr.msk.f32.vlgmr.msra.gmra.mrb[64].mxu1 %vm753_vm5, %v8302_v36  ;;  %9156 = vmatprep.subr.mxu1 %v10152_v1 }
0x11e5   : > { %v9150_v3 = vpop.f32.mrb[79].mxu0  ;;  %9157 = vmatpush3.msk.msra.mxu1 %vm4080_vm8, %v10748_v51  ;;  %9158 = vmatprep.mubr.msk.f32.mxu1 %vm10153_vm0, %v10152_v1  ;;  %v4281_v51 = vpop.permute.xlu0 %4280 }
0x11e6   : > { %9161 = vmatprep.subr.bf16.mxu1 %v10152_v1  ;;  %v11004_v40 = vsel %vm524_vm2, %v4281_v51, 0 }
0x11e8   : > { %9159 = vmatmul.mubr.msk.f32.vlgmr.msra.gmra.mrb[66].mxu1 %vm753_vm5, %v8265_v7 }
0x11e9   : > { %9163 = vmatprep.mubr.msk.bf16.mxu1 %vm10153_vm0, %v10152_v1  ;;  %v4659_v55 = vpop.permute.xlu0 %4658 }
0x11ec   : > { %9162 = vmatpush3.bf16.xpose.msra.mxu1 %v10999_v39 }
0x11ed   : > { %9167 = vmatprep.subr.bf16.mxu1 %v10152_v1 }
0x11f3   : > { %9164 = vmatmul.mubr.msk.bf16.vlgmr.msra.gmra.mrb[68].mxu1 %vm524_vm2, %v10940_v44 }
0x11f4   : > { %9168 = vmatpush3.bf16.xpose.msra.mxu1 %v11004_v40  ;;  %9169 = vmatprep.mubr.msk.bf16.mxu1 %vm10153_vm0, %v10152_v1 }
0x11f5   : > { %9173 = vmatprep.subr.bf16.mxu1 %v10152_v1 }
0x11fb   : > { %9170 = vmatmul.mubr.msk.bf16.vlgmr.msra.gmra.mrb[72].mxu1 %vm524_vm2, %v10940_v44 }
0x11fc   : > { %9174 = vmatpush3.bf16.xpose.msra.mxu1 %v11013_v53  ;;  %9175 = vmatprep.mubr.msk.bf16.mxu1 %vm10153_vm0, %v10152_v1 }
0x11fd   : > { %9179 = vmatprep.subr.bf16.mxu1 %v10152_v1 }
0x1203   : > { %9176 = vmatmul.mubr.msk.bf16.vlgmr.msra.gmra.mrb[76].mxu1 %vm524_vm2, %v10940_v44 }
0x1204   : > { %9180 = vmatpush3.bf16.xpose.msra.mxu1 %v11022_v54  ;;  %9181 = vmatprep.mubr.msk.bf16.mxu1 %vm10153_vm0, %v10152_v1 }
0x1205   : > { %9209 = vmatprep.subr.bf16.mxu1 %v10152_v1 }
0x120b   : > { %9182 = vmatmul.mubr.msk.bf16.vlgmr.msra.gmra.mrb[80].mxu1 %vm524_vm2, %v10940_v44 }
0x120c   : > { %9210 = vmatpush3.bf16.xpose.msra.mxu1 %v10999_v39  ;;  %9211 = vmatprep.mubr.msk.bf16.mxu1 %vm10153_vm0, %v10152_v1 }
0x120d   : > { %9215 = vmatprep.subr.bf16.mxu1 %v10152_v1 }
0x1213   : > { %9212 = vmatmul.mubr.msk.bf16.vlgmr.msra.gmra.mrb[84].mxu1 %vm524_vm2, %v4659_v55 }
0x1214   : > { %9216 = vmatpush3.bf16.xpose.msra.mxu1 %v11004_v40  ;;  %9217 = vmatprep.mubr.msk.bf16.mxu1 %vm10153_vm0, %v10152_v1 }
0x1215   : > { %9221 = vmatprep.subr.bf16.mxu1 %v10152_v1 }
0x121b   : > { %9218 = vmatmul.mubr.msk.bf16.vlgmr.msra.gmra.mrb[88].mxu1 %vm524_vm2, %v4659_v55 }
0x121c   : > { %9222 = vmatpush3.bf16.xpose.msra.mxu1 %v11013_v53  ;;  %9223 = vmatprep.mubr.msk.bf16.mxu1 %vm10153_vm0, %v10152_v1 }
0x121d   : > { %9227 = vmatprep.subr.bf16.mxu1 %v10152_v1 }
0x1223   : > { %9224 = vmatmul.mubr.msk.bf16.vlgmr.msra.gmra.mrb[92].mxu1 %vm524_vm2, %v4659_v55 }
0x1224   : > { %9228 = vmatpush3.bf16.xpose.msra.mxu1 %v11022_v54  ;;  %9229 = vmatprep.mubr.msk.bf16.mxu1 %vm10153_vm0, %v10152_v1 }
0x1225   : > { %9257 = vmatprep.subr.bf16.mxu1 %v10152_v1 }
0x122b   : > { %9230 = vmatmul.mubr.msk.bf16.vlgmr.msra.gmra.mrb[96].mxu1 %vm524_vm2, %v4659_v55 }
0x122c   : > { %9258 = vmatpush3.bf16.msra.mxu1 %v10513_v8  ;;  %9259 = vmatprep.mubr.msk.bf16.mxu1 %vm10153_vm0, %v10152_v1 }
0x122d   : > { %9263 = vmatprep.subr.bf16.mxu1 %v10152_v1 }
0x12b7   : > { %v4150_v56 = vpop.f32.mrb[64].mxu1 }
0x12b8   : > { %v9155_v57 = vpop.f32.mrb[65].mxu1 }
0x12bb   : > { %v4226_v58 = vpop.f32.mrb[66].mxu1 }
0x12bc   : > { %v11056_v22 = vadd.f32 %v4226_v58, %v4150_v56  ;;  %v9160_v34 = vpop.f32.mrb[67].mxu1 }
0x12c6   : > { %v11058_v59 = vpop.f32.mrb[68].mxu1 }
0x12c7   : > { %v9165_v61 = vpop.f32.mrb[69].mxu1  ;;  %v4415_v62 = vsel %vm706_vm3, %v11058_v59, -inf }
0x12c8   : > { %4416 = vmax.xlane.f32.xlu1 %v4415_v62  ;;  %v4277_v15 = vpop.f32.mrb[70].mxu1 }
0x12c9   : > { %v9166_v63 = vpop.f32.mrb[71].mxu1 }
0x12ce   : > { %v4319_v4 = vpop.f32.mrb[72].mxu1 }
0x12cf   : > { %v9171_v21 = vpop.f32.mrb[73].mxu1  ;;  %v4418_v52 = vsel %vm706_vm3, %v4319_v4, -inf }
0x12d0   : > { %4419 = vmax.xlane.f32.xlu0 %v4418_v52  ;;  %v4322_v18 = vpop.f32.mrb[74].mxu1 }
0x12d1   : > { %v9172_v5 = vpop.f32.mrb[75].mxu1 }
0x12d6   : > { %v11063_v6 = vpop.f32.mrb[76].mxu1 }
0x12d7   : > { %v9177_v9 = vpop.f32.mrb[77].mxu1  ;;  %v4422_v11 = vsel %vm706_vm3, %v11063_v6, -inf }
0x12d8   : > { %4423 = vmax.xlane.f32.xlu0 %v4422_v11  ;;  %v4367_v12 = vpop.f32.mrb[78].mxu1 }
0x12d9   : > { %v9178_v49 = vpop.f32.mrb[79].mxu1 }
0x12de   : > { %v11067_v38 = vpop.f32.mrb[80].mxu1 }
0x12df   : > { %v9183_v47 = vpop.f32.mrb[81].mxu1  ;;  %v4426_v2 = vsel %vm706_vm3, %v11067_v38, -inf }
0x12e0   : > { %4427 = vmax.xlane.f32.xlu1 %v4426_v2  ;;  %v4412_v19 = vpop.f32.mrb[82].mxu1 }
0x12e1   : > { %v9184_v14 = vpop.f32.mrb[83].mxu1 }
0x12e6   : > { %v11071_v16 = vpop.f32.mrb[84].mxu1 }
0x12e7   : > { %v9213_v17 = vpop.f32.mrb[85].mxu1  ;;  %v4823_v3 = vsel %vm706_vm3, %v11071_v16, -inf }
0x12e8   : > { %v4700_v23 = vpop.f32.mrb[86].mxu1 }
0x12e9   : > { %v9214_v24 = vpop.f32.mrb[87].mxu1 }
0x12ee   : > { %4459 = vrot.lane.b32.xlu0 %v10935_v41, %s11770_s30  ;;  %v11075_v42 = vpop.f32.mrb[88].mxu1 }
0x12ef   : > { %v9219_v50 = vpop.f32.mrb[89].mxu1  ;;  %v4826_v7 = vsel %vm706_vm3, %v11075_v42, -inf }
0x12f0   : > { %v4740_v25 = vpop.f32.mrb[90].mxu1 }
0x12f1   : > { %4507 = vrot.lane.b32.xlu1 %v10935_v41, %s11771_s21  ;;  %v9220_v26 = vpop.f32.mrb[91].mxu1 }
0x12f6   : > { %v11079_v27 = vpop.f32.mrb[92].mxu1 }
0x12f7   : > { %v9225_v0 = vpop.f32.mrb[93].mxu1  ;;  %v4830_v20 = vsel %vm706_vm3, %v11079_v27, -inf }
0x12f8   : > { %v4780_v28 = vpop.f32.mrb[94].mxu1 }
0x12f9   : > { %v9226_v29 = vpop.f32.mrb[95].mxu1 }
0x12fe   : > { %v11081_v32 = vpop.f32.mrb[96].mxu1 }
0x12ff   : > { %v9231_v36 = vpop.f32.mrb[97].mxu1  ;;  %v4834_v37 = vsel %vm706_vm3, %v11081_v32, -inf }
0x1300   : > { %v4820_v33 = vpop.f32.mrb[98].mxu1 }
0x1301   : > { %v9232_v35 = vpop.f32.mrb[99].mxu1 }
0x130d   : > { %4831 = vmax.xlane.f32.xlu0 %v4830_v20 }
0x1315   : > { %4824 = vmax.xlane.f32.xlu1 %v4823_v3 }
0x1319   : > { %4827 = vmax.xlane.f32.xlu1 %v4826_v7 }
0x131d   : > { %4835 = vmax.xlane.f32.xlu1 %v4834_v37 }
0x1323   : > { %4556 = vrot.lane.b32.xlu0 %v10935_v41, %s11772_s23 }
0x132e   : > { %4606 = vrot.lane.b32.xlu1 %v10935_v41, %s11773_s24 }
0x1355   : > { %v4417_v43 = vpop.xlane.xlu1 %4416 }
0x135d   : > { %v4420_v51 = vpop.xlane.xlu0 %4419 }
0x135e   : > { %v4421_v56 = vmax.f32 %v4417_v43, %v4420_v51 }
0x1365   : > { %v4424_v45 = vpop.xlane.xlu0 %4423 }
0x1366   : > { %v4425_v58 = vmax.f32 %v4421_v56, %v4424_v45 }
0x1369   : > { %v4460_v55 = vpop.permute.xlu0 %4459 }
0x136a   : > { %v11096_v57 = vsel %vm757_vm4, %v4460_v55, 0 }
0x136b   : > { %9186 = vmatpush3.bf16.msra.mxu0 %v11096_v57 }
0x136c   : > { %9191 = vmatprep.subr.bf16.mxu0 %v10152_v1 }
0x136d   : > { %v4428_v34 = vpop.xlane.xlu1 %4427 }
0x136e   : > { %v4429_v61 = vmax.f32 %v4425_v58, %v4428_v34 }
0x1370   : > { %v4433_v62 = vsub.f32 %v4319_v4, %v4429_v61  ;;  %v4430_v41 = vsub.f32 %v11058_v59, %v4429_v61  ;;  %v4436_v4 = vsub.f32 %v11063_v6, %v4429_v61  ;;  %v4439_v49 = vsub.f32 %v11067_v38, %v4429_v61 }
0x1371   : > { %v4508_v52 = vpop.permute.xlu1 %4507 }
0x1372   : > { %v4434_v15 = vmul.f32 1.442695, %v4433_v62  ;;  %v4431_v63 = vmul.f32 1.442695, %v4430_v41  ;;  %v11106_v5 = vsel %vm757_vm4, %v4508_v52, 0 }
0x1373   : > { %v4437_v11 = vmul.f32 1.442695, %v4436_v4  ;;  %v4440_v6 = vmul.f32 1.442695, %v4439_v49 }
0x1374   : > { %10003 = vpow2.f32 %v4434_v15 }
0x1375   : > { %10005 = vpow2.f32 %v4431_v63 }
0x1376   : > { %10007 = vpow2.f32 %v4437_v11 }
0x1377   : > { %10009 = vpow2.f32 %v4440_v6 }
0x137e   : > { %v11101_v21 = vpop.eup %10003 }
0x137f   : > { %v4458_v18 = vpack.c.bf16 %v11101_v21, %v11101_v21  ;;  %v11113_v59 = vpop.eup %10005  ;;  %v4445_v58 = vsel %vm706_vm3, %v11101_v21, 0.0 }
0x1380   : > { %v4457_v9 = vpack.c.bf16 %v11113_v59, %v11113_v59  ;;  %v11122_v47 = vpop.eup %10007  ;;  %v4442_v62 = vsel %vm706_vm3, %v11113_v59, 0.0 }
0x1381   : > { %9188 = vmatmul.mubr.msk.bf16.vlgmr.msra.gmra.mrb[108].mxu0 %vm753_vm5, %v4458_v18  ;;  %v4555_v14 = vpack.c.bf16 %v11122_v47, %v11122_v47  ;;  %v10010_v36 = vpop.eup %10009  ;;  %v4449_v41 = vsel %vm706_vm3, %v11122_v47, 0.0 }
0x1382   : > { %9192 = vmatpush3.bf16.msra.mxu0 %v11106_v5  ;;  %9193 = vmatprep.mubr.msk.bf16.mxu0 %vm10153_vm0, %v10152_v1  ;;  %v4605_v37 = vpack.c.bf16 %v10010_v36, %v10010_v36  ;;  %v4453_v61 = vsel %vm706_vm3, %v10010_v36, 0.0 }
0x1383   : > { %9197 = vmatprep.subr.bf16.mxu0 %v10152_v1 }
0x138d   : > { %9194 = vmatmul.mubr.msk.bf16.vlgmr.msra.gmra.mrb[108].mxu0 %vm753_vm5, %v4457_v9 }
0x138e   : > { %9199 = vmatprep.mubr.msk.bf16.mxu0 %vm10153_vm0, %v10152_v1 }
0x139a   : > { %v4832_v12 = vpop.xlane.xlu0 %4831 }
0x139e   : > { %v4557_v2 = vpop.permute.xlu0 %4556 }
0x139f   : > { %v11125_v19 = vsel %vm757_vm4, %v4557_v2, 0 }
0x13a0   : > { %9198 = vmatpush3.bf16.msra.mxu0 %v11125_v19 }
0x13a1   : > { %9203 = vmatprep.subr.bf16.mxu0 %v10152_v1 }
0x13a2   : > { %v4825_v17 = vpop.xlane.xlu1 %4824 }
0x13a3   : > { %9200 = vmatmul.mubr.msk.bf16.vlgmr.msra.gmra.mrb[108].mxu0 %vm753_vm5, %v4555_v14 }
0x13a4   : > { %9205 = vmatprep.mubr.msk.bf16.mxu0 %vm10153_vm0, %v10152_v1 }
0x13a6   : > { %v4828_v38 = vpop.xlane.xlu1 %4827 }
0x13a7   : > { %v4829_v23 = vmax.f32 %v4825_v17, %v4828_v38 }
0x13a9   : > { %v4833_v24 = vmax.f32 %v4829_v23, %v4832_v12 }
0x13aa   : > { %v4836_v50 = vpop.xlane.xlu1 %4835 }
0x13ab   : > { %v4837_v25 = vmax.f32 %v4833_v24, %v4836_v50 }
0x13ad   : > { %v4838_v26 = vsub.f32 %v11071_v16, %v4837_v25  ;;  %v4841_v0 = vsub.f32 %v11075_v42, %v4837_v25  ;;  %v4844_v28 = vsub.f32 %v11079_v27, %v4837_v25  ;;  %v4847_v3 = vsub.f32 %v11081_v32, %v4837_v25 }
0x13ae   : > { %v4607_v29 = vpop.permute.xlu1 %4606 }
0x13af   : > { %v4839_v33 = vmul.f32 1.442695, %v4838_v26  ;;  %v4842_v35 = vmul.f32 1.442695, %v4841_v0  ;;  %v4845_v20 = vmul.f32 1.442695, %v4844_v28 }
0x13b0   : > { %v11139_v7 = vsel %vm757_vm4, %v4607_v29, 0  ;;  %v4848_v16 = vmul.f32 1.442695, %v4847_v3 }
0x13b1   : > { %10011 = vpow2.f32 %v4839_v33  ;;  %9204 = vmatpush3.bf16.msra.mxu0 %v11139_v7 }
0x13b2   : > { %10013 = vpow2.f32 %v4842_v35  ;;  %9233 = vmatprep.subr.bf16.mxu0 %v10152_v1 }
0x13b3   : > { %10015 = vpow2.f32 %v4845_v20 }
0x13b4   : > { %9206 = vmatmul.mubr.msk.bf16.vlgmr.msra.gmra.mrb[108].mxu0 %vm753_vm5, %v4605_v37  ;;  %10017 = vpow2.f32 %v4848_v16 }
0x13b5   : > { %9234 = vmatpush3.bf16.msra.mxu0 %v11096_v57  ;;  %9235 = vmatprep.mubr.msk.bf16.mxu0 %vm10153_vm0, %v10152_v1 }
0x13b6   : > { %9239 = vmatprep.subr.bf16.mxu0 %v10152_v1 }
0x13bb   : > { %v10012_v42 = vpop.eup %10011 }
0x13bc   : > { %v10014_v27 = vpop.eup %10013  ;;  %v4850_v32 = vsel %vm706_vm3, %v10012_v42, 0.0  ;;  %v4865_v15 = vpack.c.bf16 %v10012_v42, %v10012_v42 }
0x13bd   : > { %v10016_v51 = vpop.eup %10015  ;;  %v4853_v45 = vsel %vm706_vm3, %v10014_v27, 0.0  ;;  %4851 = vadd.xlane.f32.xlu0 %v4850_v32  ;;  %v4866_v43 = vpack.c.bf16 %v10014_v27, %v10014_v27 }
0x13be   : > { %4854 = vadd.xlane.f32.xlu1 %v4853_v45  ;;  %v4857_v55 = vsel %vm706_vm3, %v10016_v51, 0.0  ;;  %v10018_v56 = vpop.eup %10017  ;;  %v4953_v63 = vpack.c.bf16 %v10016_v51, %v10016_v51 }
0x13bf   : > { %9236 = vmatmul.mubr.msk.bf16.vlgmr.msra.gmra.mrb[112].mxu0 %vm753_vm5, %v4866_v43  ;;  %v4861_v34 = vsel %vm706_vm3, %v10018_v56, 0.0  ;;  %v4998_v21 = vpack.c.bf16 %v10018_v56, %v10018_v56 }
0x13c0   : > { %9240 = vmatpush3.bf16.msra.mxu0 %v11106_v5  ;;  %9241 = vmatprep.mubr.msk.bf16.mxu0 %vm10153_vm0, %v10152_v1 }
0x13c1   : > { %4858 = vadd.xlane.f32.xlu0 %v4857_v55  ;;  %9245 = vmatprep.subr.bf16.mxu0 %v10152_v1 }
0x13c2   : > { %4446 = vadd.xlane.f32.xlu1 %v4445_v58 }
0x13c5   : > { %4862 = vadd.xlane.f32.xlu0 %v4861_v34 }
0x13c6   : > { %4454 = vadd.xlane.f32.xlu1 %v4453_v61 }
0x13c9   : > { %4443 = vadd.xlane.f32.xlu0 %v4442_v62 }
0x13cb   : > { %9242 = vmatmul.mubr.msk.bf16.vlgmr.msra.gmra.mrb[112].mxu0 %vm753_vm5, %v4865_v15 }
0x13cc   : > { %9246 = vmatpush3.bf16.msra.mxu0 %v11125_v19  ;;  %9247 = vmatprep.mubr.msk.bf16.mxu0 %vm10153_vm0, %v10152_v1 }
0x13cd   : > { %4450 = vadd.xlane.f32.xlu0 %v4449_v41  ;;  %9251 = vmatprep.subr.bf16.mxu0 %v10152_v1 }
0x13d7   : > { %9248 = vmatmul.mubr.msk.bf16.vlgmr.msra.gmra.mrb[112].mxu0 %vm753_vm5, %v4953_v63 }
0x13d8   : > { %9252 = vmatpush3.bf16.msra.mxu0 %v11139_v7  ;;  %9253 = vmatprep.mubr.msk.bf16.mxu0 %vm10153_vm0, %v10152_v1 }
0x13d9   : > { %9281 = vmatprep.subr.bf16.mxu0 %v10152_v1 }
0x13e3   : > { %9254 = vmatmul.mubr.msk.bf16.vlgmr.msra.gmra.mrb[112].mxu0 %vm753_vm5, %v4998_v21  ;;  %5132 = vrot.lane.b32.xlu0 %v10940_v44, %s11774_s15 }
0x13e4   : > { %9282 = vmatpush3.bf16.xpose.msra.mxu0 %v11013_v53  ;;  %9283 = vmatprep.mubr.msk.bf16.mxu0 %vm10153_vm0, %v10152_v1 }
0x13e5   : > { %9293 = vmatprep.subr.bf16.mxu0 %v10152_v1 }
0x144a   : > { %v4852_v52 = vpop.xlane.xlu0 %4851 }
0x144b   : > { %v4855_v18 = vpop.xlane.xlu1 %4854 }
0x144c   : > { %v4856_v59 = vadd.f32 %v4855_v18, %v4852_v52 }
0x144e   : > { %v4859_v4 = vpop.xlane.xlu0 %4858 }
0x144f   : > { %v4860_v9 = vadd.f32 %v4859_v4, %v4856_v59  ;;  %v4447_v47 = vpop.xlane.xlu1 %4446 }
0x1452   : > { %v4863_v11 = vpop.xlane.xlu0 %4862 }
0x1453   : > { %v4864_v12 = vadd.f32 %v4863_v11, %v4860_v9  ;;  %v4455_v38 = vpop.xlane.xlu1 %4454 }
0x1456   : > { %v4444_v49 = vpop.xlane.xlu0 %4443 }
0x1457   : > { %v4448_v2 = vadd.f32 %v4447_v47, %v4444_v49 }
0x145a   : > { %v4451_v6 = vpop.xlane.xlu0 %4450 }
0x145b   : > { %v4452_v14 = vadd.f32 %v4451_v6, %v4448_v2 }
0x145d   : > { %v4456_v23 = vadd.f32 %v4455_v38, %v4452_v14 }
0x145e   : > { %v5133_v17 = vpop.permute.xlu0 %5132 }
0x145f   : > { %9284 = vmatmul.mubr.msk.bf16.vlgmr.msra.gmra.mrb[116].mxu0 %vm524_vm2, %v5133_v17  ;;  %10019 = vrcp.f32 %v4456_v23 }
0x1460   : > { %9294 = vmatpush3.bf16.msra.mxu0 %v11096_v57  ;;  %9295 = vmatprep.mubr.msk.bf16.mxu0 %vm10153_vm0, %v10152_v1  ;;  %10021 = vrcp.f32 %v4864_v12 }
0x1461   : > { %9299 = vmatprep.subr.bf16.mxu0 %v10152_v1 }
0x1469   : > { %v10020_v24 = vpop.eup %10019 }
0x146a   : > { %v10022_v29 = vpop.eup %10021 }
0x1487   : > { %v4648_v50 = vpop.f32.mrb[108].mxu0 }
0x1488   : > { %v4656_v25 = vmul.f32 %v10020_v24, %v4648_v50  ;;  %v9207_v26 = vpop.f32.mrb[109].mxu0 }
0x1489   : > { %v4651_v0 = vpop.f32.mrb[110].mxu0 }
0x148a   : > { %v9208_v28 = vpop.f32.mrb[111].mxu0  ;;  %v4657_v16 = vpack.c.bf16 %v4656_v25, %v4656_v25 }
0x14b6   : > { %v5036_v36 = vpop.f32.mrb[112].mxu0 }
0x14b7   : > { %v5044_v33 = vmul.f32 %v10022_v29, %v5036_v36  ;;  %v9255_v35 = vpop.f32.mrb[113].mxu0 }
0x14b8   : > { %v5039_v20 = vpop.f32.mrb[114].mxu0 }
0x14b9   : > { %v5045_v3 = vpack.c.bf16 %v5044_v33, %v5044_v33  ;;  %v9256_v37 = vpop.f32.mrb[115].mxu0 }
0x14bb   : > { %9260 = vmatmul.mubr.msk.bf16.vlgmr.msra.gmra.mrb[100].mxu1 %vm524_vm2, %v5045_v3 }
0x14bc   : > { %9264 = vmatpush3.bf16.msra.mxu1 %v10526_v46  ;;  %9265 = vmatprep.mubr.msk.bf16.mxu1 %vm10153_vm0, %v10152_v1 }
0x14bd   : > { %9269 = vmatprep.subr.bf16.mxu1 %v10152_v1 }
0x14c7   : > { %9266 = vmatmul.mubr.msk.bf16.vlgmr.msra.gmra.mrb[100].mxu1 %vm524_vm2, %v4657_v16 }
0x14c8   : > { %9270 = vmatpush3.bf16.xpose.msra.mxu1 %v10999_v39  ;;  %9271 = vmatprep.mubr.msk.bf16.mxu1 %vm10153_vm0, %v10152_v1 }
0x14c9   : > { %9275 = vmatprep.subr.bf16.mxu1 %v10152_v1 }
0x14cf   : > { %9272 = vmatmul.mubr.msk.bf16.vlgmr.msra.gmra.mrb[104].mxu1 %vm524_vm2, %v5133_v17 }
0x14d0   : > { %9276 = vmatpush3.bf16.xpose.msra.mxu1 %v11004_v40  ;;  %9277 = vmatprep.mubr.msk.bf16.mxu1 %vm10153_vm0, %v10152_v1 }
0x14d1   : > { %9287 = vmatprep.subr.bf16.mxu1 %v10152_v1 }
0x14d7   : > { %9278 = vmatmul.mubr.msk.bf16.vlgmr.msra.gmra.mrb[108].mxu1 %vm524_vm2, %v5133_v17 }
0x14d8   : > { %9288 = vmatpush3.bf16.xpose.msra.mxu1 %v11022_v54  ;;  %9289 = vmatprep.mubr.msk.bf16.mxu1 %vm10153_vm0, %v10152_v1 }
0x14d9   : > { %9317 = vmatprep.subr.bf16.mxu1 %v10152_v1 }
0x14df   : > { %9290 = vmatmul.mubr.msk.bf16.vlgmr.msra.gmra.mrb[112].mxu1 %vm524_vm2, %v5133_v17 }
0x14e0   : > { %9318 = vmatpush3.bf16.msra.mxu1 %v10580_v48  ;;  %9319 = vmatprep.mubr.msk.bf16.mxu1 %vm10153_vm0, %v10152_v1 }
0x14e1   : > { %9323 = vmatprep.subr.bf16.mxu1 %v10152_v1 }
0x1532   : > { %v5251_v42 = vpop.f32.mrb[116].mxu0 }
0x1533   : > { %v9285_v27 = vpop.f32.mrb[117].mxu0  ;;  %v5304_v32 = vsel %vm706_vm3, %v5251_v42, -inf }
0x1534   : > { %5305 = vmax.xlane.f32.xlu1 %v5304_v32  ;;  %v5254_v51 = vpop.f32.mrb[118].mxu0 }
0x1535   : > { %v9286_v45 = vpop.f32.mrb[119].mxu0 }
0x15a2   : > { %v5171_v43 = vpop.f32.mrb[104].mxu1 }
0x15a3   : > { %v9273_v55 = vpop.f32.mrb[105].mxu1  ;;  %v5297_v56 = vsel %vm706_vm3, %v5171_v43, -inf }
0x15a4   : > { %v5174_v58 = vpop.f32.mrb[106].mxu1  ;;  %5298 = vmax.xlane.f32.xlu1 %v5297_v56 }
0x15a5   : > { %v9274_v34 = vpop.f32.mrb[107].mxu1 }
0x15aa   : > { %v5211_v61 = vpop.f32.mrb[108].mxu1 }
0x15ab   : > { %v9279_v62 = vpop.f32.mrb[109].mxu1  ;;  %v5300_v15 = vsel %vm706_vm3, %v5211_v61, -inf }
0x15ac   : > { %v5214_v41 = vpop.f32.mrb[110].mxu1  ;;  %5301 = vmax.xlane.f32.xlu1 %v5300_v15 }
0x15ad   : > { %v9280_v63 = vpop.f32.mrb[111].mxu1 }
0x15b2   : > { %v5291_v21 = vpop.f32.mrb[112].mxu1 }
0x15b3   : > { %v9291_v52 = vpop.f32.mrb[113].mxu1  ;;  %v5308_v18 = vsel %vm706_vm3, %v5291_v21, -inf }
0x15b4   : > { %v5294_v59 = vpop.f32.mrb[114].mxu1  ;;  %5309 = vmax.xlane.f32.xlu1 %v5308_v18 }
0x15b5   : > { %v9292_v4 = vpop.f32.mrb[115].mxu1 }
0x15c1   : > { %v5306_v9 = vpop.xlane.xlu1 %5305 }
0x1631   : > { %v5299_v11 = vpop.xlane.xlu1 %5298 }
0x1639   : > { %v5302_v12 = vpop.xlane.xlu1 %5301 }
0x163a   : > { %v5303_v49 = vmax.f32 %v5299_v11, %v5302_v12 }
0x163c   : > { %v5307_v47 = vmax.f32 %v5303_v49, %v5306_v9 }
0x1641   : > { %v5310_v2 = vpop.xlane.xlu1 %5309 }
0x1642   : > { %v5311_v6 = vmax.f32 %v5307_v47, %v5310_v2 }
0x1644   : > { %v5312_v14 = vsub.f32 %v5171_v43, %v5311_v6  ;;  %v5315_v17 = vsub.f32 %v5211_v61, %v5311_v6  ;;  %v5318_v38 = vsub.f32 %v5251_v42, %v5311_v6  ;;  %v5321_v25 = vsub.f32 %v5291_v21, %v5311_v6 }
0x1646   : > { %v5313_v23 = vmul.f32 1.442695, %v5312_v14  ;;  %v5316_v24 = vmul.f32 1.442695, %v5315_v17  ;;  %v5319_v50 = vmul.f32 1.442695, %v5318_v38 }
0x1647   : > { %v5322_v26 = vmul.f32 1.442695, %v5321_v25  ;;  %v11268_v17 = vrot.slane %v10312_v10, 3 }
0x1648   : > { %10023 = vpow2.f32 %v5313_v23 }
0x1649   : > { %10025 = vpow2.f32 %v5316_v24 }
0x164a   : > { %10027 = vpow2.f32 %v5319_v50  ;;  %v11276_v50 = vrot.slane %v10322_v13, 3 }
0x164b   : > { %10029 = vpow2.f32 %v5322_v26 }
0x1652   : > { %v10024_v0 = vpop.eup %10023 }
0x1653   : > { %v10026_v28 = vpop.eup %10025  ;;  %v5324_v29 = vsel %vm706_vm3, %v10024_v0, 0.0  ;;  %v5339_v16 = vpack.c.bf16 %v10024_v0, %v10024_v0 }
0x1654   : > { %v10028_v36 = vpop.eup %10027  ;;  %5325 = vadd.xlane.f32.xlu1 %v5324_v29  ;;  %v5340_v33 = vpack.c.bf16 %v10026_v28, %v10026_v28  ;;  %v5327_v20 = vsel %vm706_vm3, %v10026_v28, 0.0 }
0x1655   : > { %v5331_v35 = vsel %vm706_vm3, %v10028_v36, 0.0  ;;  %v10030_v3 = vpop.eup %10029  ;;  %v5427_v42 = vpack.c.bf16 %v10028_v36, %v10028_v36 }
0x1656   : > { %5332 = vadd.xlane.f32.xlu0 %v5331_v35  ;;  %9296 = vmatmul.mubr.msk.bf16.vlgmr.msra.gmra.mrb[120].mxu0 %vm753_vm5, %v5340_v33  ;;  %v5335_v37 = vsel %vm706_vm3, %v10030_v3, 0.0  ;;  %v5472_v27 = vpack.c.bf16 %v10030_v3, %v10030_v3 }
0x1657   : > { %9300 = vmatpush3.bf16.msra.mxu0 %v11106_v5  ;;  %9301 = vmatprep.mubr.msk.bf16.mxu0 %vm10153_vm0, %v10152_v1 }
0x1658   : > { %5328 = vadd.xlane.f32.xlu1 %v5327_v20  ;;  %9305 = vmatprep.subr.bf16.mxu0 %v10152_v1 }
0x165c   : > { %5336 = vadd.xlane.f32.xlu1 %v5335_v37 }
0x1662   : > { %9302 = vmatmul.mubr.msk.bf16.vlgmr.msra.gmra.mrb[120].mxu0 %vm753_vm5, %v5339_v16 }
0x1663   : > { %9306 = vmatpush3.bf16.msra.mxu0 %v11125_v19  ;;  %9307 = vmatprep.mubr.msk.bf16.mxu0 %vm10153_vm0, %v10152_v1 }
0x1664   : > { %9311 = vmatprep.subr.bf16.mxu0 %v10152_v1 }
0x166d   : > { %5564 = vrot.lane.b32.xlu1 %v10940_v44, %s11779_s3 }
0x166e   : > { %9308 = vmatmul.mubr.msk.bf16.vlgmr.msra.gmra.mrb[120].mxu0 %vm753_vm5, %v5427_v42 }
0x166f   : > { %9312 = vmatpush3.bf16.msra.mxu0 %v11139_v7  ;;  %9313 = vmatprep.mubr.msk.bf16.mxu0 %vm10153_vm0, %v10152_v1 }
0x1670   : > { %9341 = vmatprep.subr.bf16.mxu0 %v10152_v1 }
0x167a   : > { %9314 = vmatmul.mubr.msk.bf16.vlgmr.msra.gmra.mrb[120].mxu0 %vm753_vm5, %v5472_v27 }
0x167b   : > { %9342 = vmatpush3.bf16.xpose.msra.mxu0 %v11022_v54  ;;  %9343 = vmatprep.mubr.msk.bf16.mxu0 %vm10153_vm0, %v10152_v1 }
0x167c   : > { %9377 = vmatprep.subr.mxu0 %v10152_v1 }
0x16e1   : > { %v5326_v44 = vpop.xlane.xlu1 %5325 }
0x16e3   : > { %v5333_v45 = vpop.xlane.xlu0 %5332 }
0x16e5   : > { %v5329_v32 = vpop.xlane.xlu1 %5328 }
0x16e6   : > { %v5330_v51 = vadd.f32 %v5329_v32, %v5326_v44 }
0x16e8   : > { %v5334_v43 = vadd.f32 %v5333_v45, %v5330_v51 }
0x16e9   : > { %v5337_v55 = vpop.xlane.xlu1 %5336 }
0x16ea   : > { %v5338_v56 = vadd.f32 %v5337_v55, %v5334_v43 }
0x16ec   : > { %10031 = vrcp.f32 %v5338_v56 }
0x16ed   : > { %v5565_v58 = vpop.permute.xlu1 %5564 }
0x16ee   : > { %9344 = vmatmul.mubr.msk.bf16.vlgmr.msra.gmra.mrb[124].mxu0 %vm524_vm2, %v5565_v58 }
0x16ef   : > { %9379 = vmatprep.mubr.msk.f32.mxu0 %vm10153_vm0, %v10152_v1 }
0x16f6   : > { %v10032_v54 = vpop.eup %10031 }
0x174d   : > { %v5510_v34 = vpop.f32.mrb[120].mxu0 }
0x174e   : > { %v5518_v61 = vmul.f32 %v10032_v54, %v5510_v34  ;;  %v9315_v62 = vpop.f32.mrb[121].mxu0 }
0x174f   : > { %v5513_v15 = vpop.f32.mrb[122].mxu0 }
0x1750   : > { %v5519_v41 = vpack.c.bf16 %v5518_v61, %v5518_v61  ;;  %v9316_v63 = vpop.f32.mrb[123].mxu0 }
0x1752   : > { %9320 = vmatmul.mubr.msk.bf16.vlgmr.msra.gmra.mrb[100].mxu1 %vm524_vm2, %v5519_v41 }
0x1753   : > { %9324 = vmatpush3.bf16.xpose.msra.mxu1 %v10999_v39  ;;  %9325 = vmatprep.mubr.msk.bf16.mxu1 %vm10153_vm0, %v10152_v1 }
0x1754   : > { %9329 = vmatprep.subr.bf16.mxu1 %v10152_v1 }
0x175a   : > { %9326 = vmatmul.mubr.msk.bf16.vlgmr.msra.gmra.mrb[116].mxu1 %vm524_vm2, %v5565_v58 }
0x175b   : > { %9330 = vmatpush3.bf16.xpose.msra.mxu1 %v11004_v40  ;;  %9331 = vmatprep.mubr.msk.bf16.mxu1 %vm10153_vm0, %v10152_v1 }
0x175c   : > { %9335 = vmatprep.subr.bf16.mxu1 %v10152_v1 }
0x1762   : > { %9332 = vmatmul.mubr.msk.bf16.vlgmr.msra.gmra.mrb[120].mxu1 %vm524_vm2, %v5565_v58 }
0x1763   : > { %9336 = vmatpush3.bf16.xpose.msra.mxu1 %v11013_v53  ;;  %9337 = vmatprep.mubr.msk.bf16.mxu1 %vm10153_vm0, %v10152_v1 }
0x1764   : > { %9347 = vmatprep.subr.bf16.mxu1 %v10152_v1 }
0x176a   : > { %9338 = vmatmul.mubr.msk.bf16.vlgmr.msra.gmra.mrb[124].mxu1 %vm524_vm2, %v5565_v58 }
0x176b   : > { %9348 = vmatpush3.bf16.msra.mxu1 %v11096_v57  ;;  %9349 = vmatprep.mubr.msk.bf16.mxu1 %vm10153_vm0, %v10152_v1 }
0x176c   : > { %9353 = vmatprep.subr.bf16.mxu1 %v10152_v1 }
0x17c1   : > { %v5723_v39 = vpop.f32.mrb[124].mxu0 }
0x17c2   : > { %v9345_v40 = vpop.f32.mrb[125].mxu0  ;;  %v5740_v24 = vsel %vm706_vm3, %v5723_v39, -inf }
0x17c3   : > { %v5726_v21 = vpop.f32.mrb[126].mxu0 }
0x17c4   : > { %v9346_v52 = vpop.f32.mrb[127].mxu0 }
0x182d   : > { %v5603_v18 = vpop.f32.mrb[116].mxu1 }
0x182e   : > { %v9327_v53 = vpop.f32.mrb[117].mxu1  ;;  %v5729_v59 = vsel %vm706_vm3, %v5603_v18, -inf }
0x182f   : > { %5730 = vmax.xlane.f32.xlu1 %v5729_v59  ;;  %v5606_v4 = vpop.f32.mrb[118].mxu1 }
0x1830   : > { %v9328_v9 = vpop.f32.mrb[119].mxu1  ;;  %v5996_v4 = vadd.s32 4, %v10977_v30 }
0x1832   : > { %vm5997_vm10 = vcmp.eq.s32.totalorder %v10979_v31, %v5996_v4 }
0x1833   : > { %v8343_v9 = vsel %vm5997_vm10, 1.0, %v10152_v1 }
0x1835   : > { %v5643_v11 = vpop.f32.mrb[120].mxu1 }
0x1836   : > { %v9333_v12 = vpop.f32.mrb[121].mxu1  ;;  %v5732_v57 = vsel %vm706_vm3, %v5643_v11, -inf }
0x1837   : > { %5733 = vmax.xlane.f32.xlu0 %v5732_v57  ;;  %v5646_v49 = vpop.f32.mrb[122].mxu1 }
0x1838   : > { %v9334_v47 = vpop.f32.mrb[123].mxu1 }
0x183d   : > { %v5683_v2 = vpop.f32.mrb[124].mxu1 }
0x183e   : > { %v9339_v6 = vpop.f32.mrb[125].mxu1  ;;  %v5736_v14 = vsel %vm706_vm3, %v5683_v2, -inf }
0x183f   : > { %5737 = vmax.xlane.f32.xlu0 %v5736_v14  ;;  %v5686_v38 = vpop.f32.mrb[126].mxu1 }
0x1840   : > { %6127 = vrot.lane.b32.xlu1 %v11268_v17, %s11775_s16  ;;  %v9340_v23 = vpop.f32.mrb[127].mxu1 }
0x1843   : > { %5741 = vmax.xlane.f32.xlu0 %v5740_v24 }
0x1844   : > { %6172 = vrot.lane.b32.xlu1 %v11268_v17, %s11777_s1 }
0x1848   : > { %6505 = vrot.lane.b32.xlu1 %v11276_v50, %s11769_s22 }
0x18bc   : > { %v5731_v25 = vpop.xlane.xlu1 %5730 }
0x18c0   : > { %v6128_v6 = vpop.permute.xlu1 %6127 }
0x18c1   : > { %v11325_v14 = vsel %vm524_vm2, %v6128_v6, 0 }
0x18c4   : > { %v5734_v10 = vpop.xlane.xlu0 %5733  ;;  %v6173_v38 = vpop.permute.xlu1 %6172 }
0x18c5   : > { %v5735_v0 = vmax.f32 %v5731_v25, %v5734_v10  ;;  %v11334_v23 = vsel %vm524_vm2, %v6173_v38, 0 }
0x18c8   : > { %v6506_v25 = vpop.permute.xlu1 %6505 }
0x18cc   : > { %v5738_v26 = vpop.xlane.xlu0 %5737 }
0x18cd   : > { %v5739_v28 = vmax.f32 %v5735_v0, %v5738_v26 }
0x18d0   : > { %v5742_v29 = vpop.xlane.xlu0 %5741 }
0x18d1   : > { %v5743_v36 = vmax.f32 %v5739_v28, %v5742_v29 }
0x18d3   : > { %v5744_v33 = vsub.f32 %v5603_v18, %v5743_v36  ;;  %v5747_v35 = vsub.f32 %v5643_v11, %v5743_v36  ;;  %v5750_v37 = vsub.f32 %v5683_v2, %v5743_v36  ;;  %v5753_v13 = vsub.f32 %v5723_v39, %v5743_v36 }
0x18d5   : > { %v5745_v20 = vmul.f32 1.442695, %v5744_v33  ;;  %v5748_v3 = vmul.f32 1.442695, %v5747_v35  ;;  %v5751_v16 = vmul.f32 1.442695, %v5750_v37 }
0x18d6   : > { %v5754_v42 = vmul.f32 1.442695, %v5753_v13 }
0x18d7   : > { %10033 = vpow2.f32 %v5745_v20 }
0x18d8   : > { %10035 = vpow2.f32 %v5748_v3 }
0x18d9   : > { %10037 = vpow2.f32 %v5751_v16 }
0x18da   : > { %10039 = vpow2.f32 %v5754_v42 }
0x18e1   : > { %v10034_v27 = vpop.eup %10033 }
0x18e2   : > { %v10036_v44 = vpop.eup %10035  ;;  %v5756_v32 = vsel %vm706_vm3, %v10034_v27, 0.0  ;;  %v5771_v54 = vpack.c.bf16 %v10034_v27, %v10034_v27 }
0x18e3   : > { %5757 = vadd.xlane.f32.xlu0 %v5756_v32  ;;  %v5772_v51 = vpack.c.bf16 %v10036_v44, %v10036_v44  ;;  %v5759_v45 = vsel %vm706_vm3, %v10036_v44, 0.0  ;;  %v10038_v43 = vpop.eup %10037 }
0x18e4   : > { %v5763_v55 = vsel %vm706_vm3, %v10038_v43, 0.0  ;;  %v10040_v56 = vpop.eup %10039 }
0x18e5   : > { %9350 = vmatmul.mubr.msk.bf16.vlgmr.msra.gmra.mrb[128].mxu1 %vm753_vm5, %v5772_v51  ;;  %v5767_v58 = vsel %vm706_vm3, %v10040_v56, 0.0  ;;  %v5904_v34 = vpack.c.bf16 %v10040_v56, %v10040_v56 }
0x18e6   : > { %9354 = vmatpush3.bf16.msra.mxu1 %v11106_v5  ;;  %9355 = vmatprep.mubr.msk.bf16.mxu1 %vm10153_vm0, %v10152_v1  ;;  %v5859_v5 = vpack.c.bf16 %v10038_v43, %v10038_v43 }
0x18e7   : > { %5760 = vadd.xlane.f32.xlu0 %v5759_v45  ;;  %9359 = vmatprep.subr.bf16.mxu1 %v10152_v1 }
0x18eb   : > { %5764 = vadd.xlane.f32.xlu0 %v5763_v55 }
0x18ef   : > { %5768 = vadd.xlane.f32.xlu0 %v5767_v58 }
0x18f1   : > { %9356 = vmatmul.mubr.msk.bf16.vlgmr.msra.gmra.mrb[128].mxu1 %vm753_vm5, %v5771_v54 }
0x18f2   : > { %9360 = vmatpush3.bf16.msra.mxu1 %v11125_v19  ;;  %9361 = vmatprep.mubr.msk.bf16.mxu1 %vm10153_vm0, %v10152_v1 }
0x18f3   : > { %9365 = vmatprep.subr.bf16.mxu1 %v10152_v1 }
0x18fd   : > { %9362 = vmatmul.mubr.msk.bf16.vlgmr.msra.gmra.mrb[128].mxu1 %vm753_vm5, %v5859_v5 }
0x18fe   : > { %9366 = vmatpush3.bf16.msra.mxu1 %v11139_v7  ;;  %9367 = vmatprep.mubr.msk.bf16.mxu1 %vm10153_vm0, %v10152_v1 }
0x18ff   : > { %9371 = vmatprep.subr.bf16.mxu1 %v10152_v1 }
0x1905   : > { %6079 = vrot.lane.b32.xlu0 %v11268_v17, %s11776_s0 }
0x1909   : > { %9368 = vmatmul.mubr.msk.bf16.vlgmr.msra.gmra.mrb[128].mxu1 %vm753_vm5, %v5904_v34  ;;  %6217 = vrot.lane.b32.xlu0 %v11268_v17, %s11778_s2 }
0x190a   : > { %9372 = vmatpush3.bf16.msra.mxu1 %v10676_v60  ;;  %9373 = vmatprep.mubr.msk.bf16.mxu1 %vm10153_vm0, %v10152_v1 }
0x190b   : > { %9406 = vmatprep.subr.bf16.mxu1 %v10152_v1 }
0x1970   : > { %v5758_v19 = vpop.xlane.xlu0 %5757 }
0x1974   : > { %v5761_v7 = vpop.xlane.xlu0 %5760 }
0x1975   : > { %v5762_v62 = vadd.f32 %v5761_v7, %v5758_v19 }
0x1978   : > { %v5765_v61 = vpop.xlane.xlu0 %5764 }
0x1979   : > { %v5766_v41 = vadd.f32 %v5765_v61, %v5762_v62 }
0x197c   : > { %v5769_v15 = vpop.xlane.xlu0 %5768 }
0x197d   : > { %v5770_v63 = vadd.f32 %v5769_v15, %v5766_v41 }
0x197f   : > { %10041 = vrcp.f32 %v5770_v63 }
0x1980   : > { %v6080_v47 = vpop.permute.xlu0 %6079 }
0x1981   : > { %v11320_v2 = vsel %vm524_vm2, %v6080_v47, 0 }
0x1984   : > { %v6218_v24 = vpop.permute.xlu0 %6217 }
0x1985   : > { %v11343_v10 = vsel %vm524_vm2, %v6218_v24, 0 }
0x1989   : > { %v10042_v39 = vpop.eup %10041 }
0x19dc   : > { %v5942_v40 = vpop.f32.mrb[128].mxu1 }
0x19dd   : > { %v5950_v21 = vmul.f32 %v10042_v39, %v5942_v40  ;;  %v9369_v52 = vpop.f32.mrb[129].mxu1 }
0x19de   : > { %v5945_v18 = vpop.f32.mrb[130].mxu1 }
0x19df   : > { %v5951_v53 = vpack.c.bf16 %v5950_v21, %v5950_v21  ;;  %v9370_v59 = vpop.f32.mrb[131].mxu1 }
0x19e1   : > { %9374 = vmatmul.mubr.msk.bf16.vlgmr.msra.gmra.mrb[100].mxu1 %vm524_vm2, %v5951_v53 }
0x19e2   : > { %9408 = vmatprep.mubr.msk.bf16.mxu1 %vm10153_vm0, %v10152_v1 }
0x1ab4   : > { %v5989_v11 = vpop.f32.mrb[100].mxu1 }
0x1ab5   : > { %v9375_v12 = vpop.f32.mrb[101].mxu1  ;;  %9378 = vmatpush3.msk.msra.mxu0 %vm4080_vm8, %v5989_v11 }
0x1ab6   : > { %v5992_v57 = vpop.f32.mrb[102].mxu1  ;;  %9380 = vmatmul.mubr.msk.f32.vlgmr.msra.gmra.mrb[128].mxu0 %vm753_vm5, %v8343_v9  ;;  %9382 = vmatprep.subr.bf16.mxu0 %v10152_v1 }
0x1ab7   : > { %v9376_v49 = vpop.f32.mrb[103].mxu1  ;;  %9384 = vmatprep.mubr.msk.bf16.mxu0 %vm10153_vm0, %v10152_v1 }
0x1abc   : > { %9383 = vmatpush3.bf16.xpose.msra.mxu0 %v11320_v2 }
0x1abd   : > { %9388 = vmatprep.subr.bf16.mxu0 %v10152_v1 }
0x1ac3   : > { %9385 = vmatmul.mubr.msk.bf16.vlgmr.msra.gmra.mrb[132].mxu0 %vm524_vm2, %v11276_v50 }
0x1ac4   : > { %9389 = vmatpush3.bf16.xpose.msra.mxu0 %v11325_v14  ;;  %9390 = vmatprep.mubr.msk.bf16.mxu0 %vm10153_vm0, %v10152_v1 }
0x1ac5   : > { %9394 = vmatprep.subr.bf16.mxu0 %v10152_v1 }
0x1acb   : > { %9391 = vmatmul.mubr.msk.bf16.vlgmr.msra.gmra.mrb[136].mxu0 %vm524_vm2, %v11276_v50 }
0x1acc   : > { %9395 = vmatpush3.bf16.xpose.msra.mxu0 %v11334_v23  ;;  %9396 = vmatprep.mubr.msk.bf16.mxu0 %vm10153_vm0, %v10152_v1 }
0x1acd   : > { %9400 = vmatprep.subr.bf16.mxu0 %v10152_v1 }
0x1ad3   : > { %9397 = vmatmul.mubr.msk.bf16.vlgmr.msra.gmra.mrb[140].mxu0 %vm524_vm2, %v11276_v50 }
0x1ad4   : > { %9401 = vmatpush3.bf16.xpose.msra.mxu0 %v11343_v10  ;;  %9402 = vmatprep.mubr.msk.bf16.mxu0 %vm10153_vm0, %v10152_v1 }
0x1ad5   : > { %9430 = vmatprep.subr.bf16.mxu0 %v10152_v1 }
0x1adb   : > { %9403 = vmatmul.mubr.msk.bf16.vlgmr.msra.gmra.mrb[144].mxu0 %vm524_vm2, %v11276_v50 }
0x1adc   : > { %9431 = vmatpush3.bf16.xpose.msra.mxu0 %v11320_v2  ;;  %9432 = vmatprep.mubr.msk.bf16.mxu0 %vm10153_vm0, %v10152_v1 }
0x1add   : > { %9436 = vmatprep.subr.bf16.mxu0 %v10152_v1 }
0x1ae3   : > { %9433 = vmatmul.mubr.msk.bf16.vlgmr.msra.gmra.mrb[148].mxu0 %vm524_vm2, %v6506_v25 }
0x1ae4   : > { %9437 = vmatpush3.bf16.xpose.msra.mxu0 %v11325_v14  ;;  %9438 = vmatprep.mubr.msk.bf16.mxu0 %vm10153_vm0, %v10152_v1 }
0x1ae5   : > { %9442 = vmatprep.subr.bf16.mxu0 %v10152_v1 }
0x1aeb   : > { %9439 = vmatmul.mubr.msk.bf16.vlgmr.msra.gmra.mrb[152].mxu0 %vm524_vm2, %v6506_v25 }
0x1aec   : > { %9443 = vmatpush3.bf16.xpose.msra.mxu0 %v11334_v23  ;;  %9444 = vmatprep.mubr.msk.bf16.mxu0 %vm10153_vm0, %v10152_v1 }
0x1aed   : > { %9448 = vmatprep.subr.bf16.mxu0 %v10152_v1 }
0x1af3   : > { %9445 = vmatmul.mubr.msk.bf16.vlgmr.msra.gmra.mrb[156].mxu0 %vm524_vm2, %v6506_v25 }
0x1af4   : > { %9449 = vmatpush3.bf16.xpose.msra.mxu0 %v11343_v10  ;;  %9450 = vmatprep.mubr.msk.bf16.mxu0 %vm10153_vm0, %v10152_v1 }
0x1af5   : > { %9478 = vmatprep.subr.bf16.mxu0 %v10152_v1 }
0x1afb   : > { %9451 = vmatmul.mubr.msk.bf16.vlgmr.msra.gmra.mrb[160].mxu0 %vm524_vm2, %v6506_v25 }
0x1afc   : > { %9479 = vmatpush3.bf16.msra.mxu0 %v10513_v8  ;;  %9480 = vmatprep.mubr.msk.bf16.mxu0 %vm10153_vm0, %v10152_v1 }
0x1afd   : > { %9484 = vmatprep.subr.bf16.mxu0 %v10152_v1 }
0x1b89   : > { %v6072_v26 = vpop.f32.mrb[128].mxu0 }
0x1b8a   : > { %v11378_v0 = vadd.f32 %v6072_v26, %v11056_v22  ;;  %v9381_v28 = vpop.f32.mrb[129].mxu0 }
0x1b96   : > { %v11380_v29 = vpop.f32.mrb[132].mxu0 }
0x1b97   : > { %v9386_v36 = vpop.f32.mrb[133].mxu0  ;;  %v6262_v33 = vsel %vm706_vm3, %v11380_v29, -inf }
0x1b98   : > { %6263 = vmax.xlane.f32.xlu0 %v6262_v33  ;;  %v6124_v35 = vpop.f32.mrb[134].mxu0 }
0x1b99   : > { %v9387_v20 = vpop.f32.mrb[135].mxu0 }
0x1b9e   : > { %v6166_v8 = vpop.f32.mrb[136].mxu0 }
0x1b9f   : > { %v9392_v3 = vpop.f32.mrb[137].mxu0  ;;  %v6265_v37 = vsel %vm706_vm3, %v6166_v8, -inf }
0x1ba0   : > { %6266 = vmax.xlane.f32.xlu1 %v6265_v37  ;;  %v6169_v16 = vpop.f32.mrb[138].mxu0 }
0x1ba1   : > { %v9393_v13 = vpop.f32.mrb[139].mxu0 }
0x1ba6   : > { %v11385_v42 = vpop.f32.mrb[140].mxu0 }
0x1ba7   : > { %v9398_v22 = vpop.f32.mrb[141].mxu0  ;;  %v6269_v27 = vsel %vm706_vm3, %v11385_v42, -inf }
0x1ba8   : > { %6270 = vmax.xlane.f32.xlu0 %v6269_v27  ;;  %v6214_v44 = vpop.f32.mrb[142].mxu0 }
0x1ba9   : > { %v9399_v32 = vpop.f32.mrb[143].mxu0 }
0x1bae   : > { %v11389_v51 = vpop.f32.mrb[144].mxu0 }
0x1baf   : > { %v9404_v45 = vpop.f32.mrb[145].mxu0  ;;  %v6273_v43 = vsel %vm706_vm3, %v11389_v51, -inf }
0x1bb0   : > { %6274 = vmax.xlane.f32.xlu0 %v6273_v43  ;;  %v6259_v55 = vpop.f32.mrb[146].mxu0 }
0x1bb1   : > { %6306 = vrot.lane.b32.xlu1 %v11268_v17, %s11770_s30  ;;  %v9405_v56 = vpop.f32.mrb[147].mxu0  ;;  %s429_s30 = sand.u32 1, %s10142_s26  }
0x1bb2   : > { %s8147_s0 = scalar_lea.sflag [#allocation3], %s429_s30 }
0x1bb6   : > { %v11395_v58 = vpop.f32.mrb[148].mxu0 }
0x1bb7   : > { %v9434_v54 = vpop.f32.mrb[149].mxu0  ;;  %v6670_v59 = vsel %vm706_vm3, %v11395_v58, -inf }
0x1bb8   : > { %v6547_v5 = vpop.f32.mrb[150].mxu0 }
0x1bb9   : > { %v9435_v34 = vpop.f32.mrb[151].mxu0 }
0x1bbe   : > { %v11397_v19 = vpop.f32.mrb[152].mxu0 }
0x1bbf   : > { %v9440_v7 = vpop.f32.mrb[153].mxu0  ;;  %v6673_v4 = vsel %vm706_vm3, %v11397_v19, -inf }
0x1bc0   : > { %v6587_v61 = vpop.f32.mrb[154].mxu0 }
0x1bc1   : > { %v9441_v62 = vpop.f32.mrb[155].mxu0 }
0x1bc6   : > { %6354 = vrot.lane.b32.xlu0 %v11268_v17, %s11771_s21  ;;  %v11401_v15 = vpop.f32.mrb[156].mxu0  ;;  %s8223_s21 = sshll.u32 %s429_s30, 3 }
0x1bc7   : > { %v9446_v41 = vpop.f32.mrb[157].mxu0  ;;  %v6677_v53 = vsel %vm706_vm3, %v11401_v15, -inf }
0x1bc8   : > { %v6627_v63 = vpop.f32.mrb[158].mxu0 }
0x1bc9   : > { %v9447_v39 = vpop.f32.mrb[159].mxu0 }
0x1bce   : > { %v11403_v40 = vpop.f32.mrb[160].mxu0 }
0x1bcf   : > { %v9452_v21 = vpop.f32.mrb[161].mxu0  ;;  %v6681_v9 = vsel %vm706_vm3, %v11403_v40, -inf }
0x1bd0   : > { %v6667_v52 = vpop.f32.mrb[162].mxu0 }
0x1bd1   : > { %v9453_v18 = vpop.f32.mrb[163].mxu0 }
0x1bd5   : > { %6678 = vmax.xlane.f32.xlu1 %v6677_v53 }
0x1be5   : > { %6671 = vmax.xlane.f32.xlu0 %v6670_v59 }
0x1be6   : > { %6403 = vrot.lane.b32.xlu1 %v11268_v17, %s11772_s23  ;;  %s8401_s23 = sshll.u32 %s10257_s29, 7  ;;  %s10165_s29 = smov [#allocation2]  }
0x1be7   : > { %s11680_s22 = scalar_lea.hbm %s11736_s13, %s8401_s23 }
0x1be9   : > { %6674 = vmax.xlane.f32.xlu0 %v6673_v4 }
0x1bed   : > { %6682 = vmax.xlane.f32.xlu0 %v6681_v9 }
0x1c03   : > { %6453 = vrot.lane.b32.xlu0 %v11268_v17, %s11773_s24  ;;  %s431_s24 = scalar_lea.vmem [#allocation2], %s8223_s21  ;;  %s10092_s21 = sshll.u32 %s10165_s29, 4  ;;  %s10093_s21 = int_to_ptr.vmem [resolvable:$false] %s10092_s21 }
0x1c04   : > { %s10094_s2 = scalar_lea.vmem %s10093_s21, 256 }
0x1c25   : > { %v6264_v49 = vpop.xlane.xlu0 %6263 }
0x1c2d   : > { %v6267_v11 = vpop.xlane.xlu1 %6266 }
0x1c2e   : > { %v6268_v6 = vmax.f32 %v6264_v49, %v6267_v11 }
0x1c31   : > { %v6307_v12 = vpop.permute.xlu1 %6306 }
0x1c32   : > { %v11418_v57 = vsel %vm757_vm4, %v6307_v12, 0 }
0x1c33   : > { %9407 = vmatpush3.bf16.msra.mxu1 %v11418_v57 }
0x1c34   : > { %9412 = vmatprep.subr.bf16.mxu1 %v10152_v1 }
0x1c35   : > { %v6271_v47 = vpop.xlane.xlu0 %6270 }
0x1c36   : > { %v6272_v38 = vmax.f32 %v6268_v6, %v6271_v47 }
0x1c3d   : > { %v6275_v24 = vpop.xlane.xlu0 %6274 }
0x1c3e   : > { %v6276_v25 = vmax.f32 %v6272_v38, %v6275_v24 }
0x1c40   : > { %v6280_v26 = vsub.f32 %v6166_v8, %v6276_v25  ;;  %v6277_v17 = vsub.f32 %v11380_v29, %v6276_v25  ;;  %v6283_v29 = vsub.f32 %v11385_v42, %v6276_v25  ;;  %v6286_v32 = vsub.f32 %v11389_v51, %v6276_v25 }
0x1c41   : > { %v6355_v35 = vpop.permute.xlu0 %6354 }
0x1c42   : > { %v6281_v28 = vmul.f32 1.442695, %v6280_v26  ;;  %v6278_v36 = vmul.f32 1.442695, %v6277_v17  ;;  %v11428_v3 = vsel %vm757_vm4, %v6355_v35, 0 }
0x1c43   : > { %v6284_v8 = vmul.f32 1.442695, %v6283_v29  ;;  %v6287_v45 = vmul.f32 1.442695, %v6286_v32 }
0x1c44   : > { %10043 = vpow2.f32 %v6281_v28 }
0x1c45   : > { %10045 = vpow2.f32 %v6278_v36 }
0x1c46   : > { %10047 = vpow2.f32 %v6284_v8 }
0x1c47   : > { %10049 = vpow2.f32 %v6287_v45 }
0x1c4e   : > { %v11423_v33 = vpop.eup %10043 }
0x1c4f   : > { %v6305_v20 = vpack.c.bf16 %v11423_v33, %v11423_v33  ;;  %v11436_v37 = vpop.eup %10045  ;;  %v6292_v49 = vsel %vm706_vm3, %v11423_v33, 0.0 }
0x1c50   : > { %v6304_v16 = vpack.c.bf16 %v11436_v37, %v11436_v37  ;;  %v11443_v22 = vpop.eup %10047  ;;  %v6289_v38 = vsel %vm706_vm3, %v11436_v37, 0.0 }
0x1c51   : > { %9409 = vmatmul.mubr.msk.bf16.vlgmr.msra.gmra.mrb[132].mxu1 %vm753_vm5, %v6305_v20  ;;  %v6402_v44 = vpack.c.bf16 %v11443_v22, %v11443_v22  ;;  %v10050_v63 = vpop.eup %10049  ;;  %v6296_v25 = vsel %vm706_vm3, %v11443_v22, 0.0 }
0x1c52   : > { %9413 = vmatpush3.bf16.msra.mxu1 %v11428_v3  ;;  %9414 = vmatprep.mubr.msk.bf16.mxu1 %vm10153_vm0, %v10152_v1  ;;  %v6452_v53 = vpack.c.bf16 %v10050_v63, %v10050_v63  ;;  %v6300_v6 = vsel %vm706_vm3, %v10050_v63, 0.0 }
0x1c53   : > { %9418 = vmatprep.subr.bf16.mxu1 %v10152_v1 }
0x1c5d   : > { %9415 = vmatmul.mubr.msk.bf16.vlgmr.msra.gmra.mrb[132].mxu1 %vm753_vm5, %v6304_v16 }
0x1c5e   : > { %9420 = vmatprep.mubr.msk.bf16.mxu1 %vm10153_vm0, %v10152_v1 }
0x1c62   : > { %v6679_v13 = vpop.xlane.xlu1 %6678 }
0x1c66   : > { %v6404_v27 = vpop.permute.xlu1 %6403 }
0x1c67   : > { %v11446_v42 = vsel %vm757_vm4, %v6404_v27, 0 }
0x1c68   : > { %9419 = vmatpush3.bf16.msra.mxu1 %v11446_v42 }
0x1c69   : > { %9424 = vmatprep.subr.bf16.mxu1 %v10152_v1 }
0x1c6b   : > { %9421 = vmatmul.mubr.msk.bf16.vlgmr.msra.gmra.mrb[132].mxu1 %vm753_vm5, %v6402_v44 }
0x1c6c   : > { %9426 = vmatprep.mubr.msk.bf16.mxu1 %vm10153_vm0, %v10152_v1 }
0x1c72   : > { %v6672_v43 = vpop.xlane.xlu0 %6671 }
0x1c76   : > { %v6675_v55 = vpop.xlane.xlu0 %6674 }
0x1c77   : > { %v6676_v56 = vmax.f32 %v6672_v43, %v6675_v55 }
0x1c79   : > { %v6680_v54 = vmax.f32 %v6676_v56, %v6679_v13 }
0x1c7a   : > { %v6683_v5 = vpop.xlane.xlu0 %6682 }
0x1c7b   : > { %v6684_v34 = vmax.f32 %v6680_v54, %v6683_v5 }
0x1c7d   : > { %v6685_v7 = vsub.f32 %v11395_v58, %v6684_v34  ;;  %v6688_v61 = vsub.f32 %v11397_v19, %v6684_v34  ;;  %v6691_v62 = vsub.f32 %v11401_v15, %v6684_v34  ;;  %v6694_v51 = vsub.f32 %v11403_v40, %v6684_v34 }
0x1c7e   : > { %v6454_v41 = vpop.permute.xlu0 %6453 }
0x1c7f   : > { %v6686_v39 = vmul.f32 1.442695, %v6685_v7  ;;  %v6689_v21 = vmul.f32 1.442695, %v6688_v61  ;;  %v6692_v52 = vmul.f32 1.442695, %v6691_v62 }
0x1c80   : > { %v11461_v18 = vsel %vm757_vm4, %v6454_v41, 0  ;;  %v6695_v58 = vmul.f32 1.442695, %v6694_v51 }
0x1c81   : > { %10051 = vpow2.f32 %v6686_v39  ;;  %9425 = vmatpush3.bf16.msra.mxu1 %v11461_v18 }
0x1c82   : > { %10053 = vpow2.f32 %v6689_v21  ;;  %9454 = vmatprep.subr.bf16.mxu1 %v10152_v1 }
0x1c83   : > { %10055 = vpow2.f32 %v6692_v52 }
0x1c84   : > { %9427 = vmatmul.mubr.msk.bf16.vlgmr.msra.gmra.mrb[132].mxu1 %vm753_vm5, %v6452_v53  ;;  %10057 = vpow2.f32 %v6695_v58 }
0x1c85   : > { %9455 = vmatpush3.bf16.msra.mxu1 %v11418_v57  ;;  %9456 = vmatprep.mubr.msk.bf16.mxu1 %vm10153_vm0, %v10152_v1 }
0x1c86   : > { %9460 = vmatprep.subr.bf16.mxu1 %v10152_v1 }
0x1c8b   : > { %v10052_v19 = vpop.eup %10051 }
0x1c8c   : > { %v10054_v15 = vpop.eup %10053  ;;  %v6697_v40 = vsel %vm706_vm3, %v10052_v19, 0.0  ;;  %v6712_v24 = vpack.c.bf16 %v10052_v19, %v10052_v19 }
0x1c8d   : > { %v10056_v59 = vpop.eup %10055  ;;  %v6700_v4 = vsel %vm706_vm3, %v10054_v15, 0.0  ;;  %6698 = vadd.xlane.f32.xlu1 %v6697_v40  ;;  %v6713_v9 = vpack.c.bf16 %v10054_v15, %v10054_v15 }
0x1c8e   : > { %6701 = vadd.xlane.f32.xlu0 %v6700_v4  ;;  %v6704_v11 = vsel %vm706_vm3, %v10056_v59, 0.0  ;;  %v10058_v12 = vpop.eup %10057  ;;  %v6800_v26 = vpack.c.bf16 %v10056_v59, %v10056_v59 }
0x1c8f   : > { %9457 = vmatmul.mubr.msk.bf16.vlgmr.msra.gmra.mrb[136].mxu1 %vm753_vm5, %v6713_v9  ;;  %v6708_v47 = vsel %vm706_vm3, %v10058_v12, 0.0  ;;  %v6845_v28 = vpack.c.bf16 %v10058_v12, %v10058_v12 }
0x1c90   : > { %9461 = vmatpush3.bf16.msra.mxu1 %v11428_v3  ;;  %9462 = vmatprep.mubr.msk.bf16.mxu1 %vm10153_vm0, %v10152_v1 }
0x1c91   : > { %6705 = vadd.xlane.f32.xlu1 %v6704_v11  ;;  %9466 = vmatprep.subr.bf16.mxu1 %v10152_v1 }
0x1c92   : > { %6293 = vadd.xlane.f32.xlu0 %v6292_v49 }
0x1c95   : > { %6709 = vadd.xlane.f32.xlu1 %v6708_v47 }
0x1c96   : > { %6301 = vadd.xlane.f32.xlu0 %v6300_v6 }
0x1c99   : > { %6290 = vadd.xlane.f32.xlu1 %v6289_v38 }
0x1c9b   : > { %9463 = vmatmul.mubr.msk.bf16.vlgmr.msra.gmra.mrb[136].mxu1 %vm753_vm5, %v6712_v24 }
0x1c9c   : > { %9467 = vmatpush3.bf16.msra.mxu1 %v11446_v42  ;;  %9468 = vmatprep.mubr.msk.bf16.mxu1 %vm10153_vm0, %v10152_v1 }
0x1c9d   : > { %6297 = vadd.xlane.f32.xlu1 %v6296_v25  ;;  %9472 = vmatprep.subr.bf16.mxu1 %v10152_v1 }
0x1ca7   : > { %9469 = vmatmul.mubr.msk.bf16.vlgmr.msra.gmra.mrb[136].mxu1 %vm753_vm5, %v6800_v26 }
0x1ca8   : > { %9473 = vmatpush3.bf16.msra.mxu1 %v11461_v18  ;;  %9474 = vmatprep.mubr.msk.bf16.mxu1 %vm10153_vm0, %v10152_v1 }
0x1ca9   : > { %9502 = vmatprep.subr.bf16.mxu1 %v10152_v1 }
0x1cae   : > { %6979 = vrot.lane.b32.xlu1 %v11276_v50, %s11774_s15 }
0x1cb3   : > { %9475 = vmatmul.mubr.msk.bf16.vlgmr.msra.gmra.mrb[136].mxu1 %vm753_vm5, %v6845_v28 }
0x1cb4   : > { %9503 = vmatpush3.bf16.xpose.msra.mxu1 %v11334_v23  ;;  %9504 = vmatprep.mubr.msk.bf16.mxu1 %vm10153_vm0, %v10152_v1 }
0x1cb5   : > { %9514 = vmatprep.subr.bf16.mxu1 %v10152_v1 }
0x1d1a   : > { %v6699_v17 = vpop.xlane.xlu1 %6698 }
0x1d1b   : > { %v6702_v36 = vpop.xlane.xlu0 %6701 }
0x1d1c   : > { %v6703_v33 = vadd.f32 %v6702_v36, %v6699_v17 }
0x1d1e   : > { %v6706_v35 = vpop.xlane.xlu1 %6705 }
0x1d1f   : > { %v6707_v20 = vadd.f32 %v6706_v35, %v6703_v33  ;;  %v6294_v16 = vpop.xlane.xlu0 %6293 }
0x1d22   : > { %v6710_v29 = vpop.xlane.xlu1 %6709 }
0x1d23   : > { %v6711_v8 = vadd.f32 %v6710_v29, %v6707_v20  ;;  %v6302_v32 = vpop.xlane.xlu0 %6301 }
0x1d26   : > { %v6291_v37 = vpop.xlane.xlu1 %6290 }
0x1d27   : > { %v6295_v13 = vadd.f32 %v6294_v16, %v6291_v37 }
0x1d2a   : > { %v6298_v22 = vpop.xlane.xlu1 %6297 }
0x1d2b   : > { %v6299_v27 = vadd.f32 %v6298_v22, %v6295_v13 }
0x1d2d   : > { %v6303_v45 = vadd.f32 %v6302_v32, %v6299_v27 }
0x1d2e   : > { %v6980_v44 = vpop.permute.xlu1 %6979 }
0x1d2f   : > { %9505 = vmatmul.mubr.msk.bf16.vlgmr.msra.gmra.mrb[140].mxu1 %vm524_vm2, %v6980_v44  ;;  %10059 = vrcp.f32 %v6303_v45 }
0x1d30   : > { %9515 = vmatpush3.bf16.msra.mxu1 %v11418_v57  ;;  %9516 = vmatprep.mubr.msk.bf16.mxu1 %vm10153_vm0, %v10152_v1  ;;  %10061 = vrcp.f32 %v6711_v8 }
0x1d31   : > { %9520 = vmatprep.subr.bf16.mxu1 %v10152_v1 }
0x1d39   : > { %v10060_v43 = vpop.eup %10059 }
0x1d3a   : > { %v10062_v7 = vpop.eup %10061 }
0x1d57   : > { %v6495_v55 = vpop.f32.mrb[132].mxu1 }
0x1d58   : > { %v6503_v56 = vmul.f32 %v10060_v43, %v6495_v55  ;;  %v9428_v54 = vpop.f32.mrb[133].mxu1 }
0x1d59   : > { %v6498_v5 = vpop.f32.mrb[134].mxu1 }
0x1d5a   : > { %v9429_v34 = vpop.f32.mrb[135].mxu1  ;;  %v6504_v52 = vpack.c.bf16 %v6503_v56, %v6503_v56 }
0x1d86   : > { %v6883_v61 = vpop.f32.mrb[136].mxu1 }
0x1d87   : > { %v6891_v62 = vmul.f32 %v10062_v7, %v6883_v61  ;;  %v9476_v41 = vpop.f32.mrb[137].mxu1 }
0x1d88   : > { %v6886_v63 = vpop.f32.mrb[138].mxu1 }
0x1d89   : > { %v6892_v39 = vpack.c.bf16 %v6891_v62, %v6891_v62  ;;  %v9477_v21 = vpop.f32.mrb[139].mxu1 }
0x1d8b   : > { %9481 = vmatmul.mubr.msk.bf16.vlgmr.msra.gmra.mrb[164].mxu0 %vm524_vm2, %v6892_v39 }
0x1d8c   : > { %9485 = vmatpush3.bf16.msra.mxu0 %v10526_v46  ;;  %9486 = vmatprep.mubr.msk.bf16.mxu0 %vm10153_vm0, %v10152_v1 }
0x1d8d   : > { %9490 = vmatprep.subr.bf16.mxu0 %v10152_v1 }
0x1d97   : > { %9487 = vmatmul.mubr.msk.bf16.vlgmr.msra.gmra.mrb[164].mxu0 %vm524_vm2, %v6504_v52 }
0x1d98   : > { %9491 = vmatpush3.bf16.xpose.msra.mxu0 %v11320_v2  ;;  %9492 = vmatprep.mubr.msk.bf16.mxu0 %vm10153_vm0, %v10152_v1 }
0x1d99   : > { %9496 = vmatprep.subr.bf16.mxu0 %v10152_v1 }
0x1d9f   : > { %9493 = vmatmul.mubr.msk.bf16.vlgmr.msra.gmra.mrb[168].mxu0 %vm524_vm2, %v6980_v44 }
0x1da0   : > { %9497 = vmatpush3.bf16.xpose.msra.mxu0 %v11325_v14  ;;  %9498 = vmatprep.mubr.msk.bf16.mxu0 %vm10153_vm0, %v10152_v1 }
0x1da1   : > { %9508 = vmatprep.subr.bf16.mxu0 %v10152_v1 }
0x1da7   : > { %9499 = vmatmul.mubr.msk.bf16.vlgmr.msra.gmra.mrb[172].mxu0 %vm524_vm2, %v6980_v44 }
0x1da8   : > { %9509 = vmatpush3.bf16.xpose.msra.mxu0 %v11343_v10  ;;  %9510 = vmatprep.mubr.msk.bf16.mxu0 %vm10153_vm0, %v10152_v1 }
0x1da9   : > { %9538 = vmatprep.subr.bf16.mxu0 %v10152_v1 }
0x1daf   : > { %9511 = vmatmul.mubr.msk.bf16.vlgmr.msra.gmra.mrb[176].mxu0 %vm524_vm2, %v6980_v44 }
0x1db0   : > { %9539 = vmatpush3.bf16.msra.mxu0 %v10580_v48  ;;  %9540 = vmatprep.mubr.msk.bf16.mxu0 %vm10153_vm0, %v10152_v1 }
0x1db1   : > { %9544 = vmatprep.subr.bf16.mxu0 %v10152_v1 }
0x1e02   : > { %v7098_v46 = vpop.f32.mrb[140].mxu1 }
0x1e03   : > { %v9506_v51 = vpop.f32.mrb[141].mxu1  ;;  %v7151_v53 = vsel %vm706_vm3, %v7098_v46, -inf }
0x1e04   : > { %7152 = vmax.xlane.f32.xlu0 %v7151_v53  ;;  %v7101_v58 = vpop.f32.mrb[142].mxu1 }
0x1e05   : > { %v9507_v19 = vpop.f32.mrb[143].mxu1 }
0x1e72   : > { %v7018_v15 = vpop.f32.mrb[168].mxu0 }
0x1e73   : > { %v9494_v40 = vpop.f32.mrb[169].mxu0  ;;  %v7144_v59 = vsel %vm706_vm3, %v7018_v15, -inf }
0x1e74   : > { %7145 = vmax.xlane.f32.xlu0 %v7144_v59  ;;  %v7021_v4 = vpop.f32.mrb[170].mxu0 }
0x1e75   : > { %v9495_v9 = vpop.f32.mrb[171].mxu0 }
0x1e7a   : > { %v7058_v48 = vpop.f32.mrb[172].mxu0 }
0x1e7b   : > { %v9500_v11 = vpop.f32.mrb[173].mxu0  ;;  %v7147_v12 = vsel %vm706_vm3, %v7058_v48, -inf }
0x1e7c   : > { %7148 = vmax.xlane.f32.xlu0 %v7147_v12  ;;  %v7061_v49 = vpop.f32.mrb[174].mxu0 }
0x1e7d   : > { %v9501_v47 = vpop.f32.mrb[175].mxu0 }
0x1e82   : > { %v7138_v6 = vpop.f32.mrb[176].mxu0 }
0x1e83   : > { %v9512_v38 = vpop.f32.mrb[177].mxu0  ;;  %v7155_v24 = vsel %vm706_vm3, %v7138_v6, -inf }
0x1e84   : > { %7156 = vmax.xlane.f32.xlu0 %v7155_v24  ;;  %v7141_v25 = vpop.f32.mrb[178].mxu0 }
0x1e85   : > { %v9513_v26 = vpop.f32.mrb[179].mxu0 }
0x1e91   : > { %v7153_v28 = vpop.xlane.xlu0 %7152 }
0x1f01   : > { %v7146_v17 = vpop.xlane.xlu0 %7145 }
0x1f09   : > { %v7149_v36 = vpop.xlane.xlu0 %7148 }
0x1f0a   : > { %v7150_v33 = vmax.f32 %v7146_v17, %v7149_v36 }
0x1f0c   : > { %v7154_v35 = vmax.f32 %v7150_v33, %v7153_v28 }
0x1f11   : > { %v7157_v20 = vpop.xlane.xlu0 %7156 }
0x1f12   : > { %v7158_v29 = vmax.f32 %v7154_v35, %v7157_v20 }
0x1f14   : > { %v7159_v8 = vsub.f32 %v7018_v15, %v7158_v29  ;;  %v7162_v37 = vsub.f32 %v7058_v48, %v7158_v29  ;;  %v7165_v16 = vsub.f32 %v7098_v46, %v7158_v29  ;;  %v7168_v44 = vsub.f32 %v7138_v6, %v7158_v29 }
0x1f16   : > { %v7160_v13 = vmul.f32 1.442695, %v7159_v8  ;;  %v7163_v22 = vmul.f32 1.442695, %v7162_v37  ;;  %v7166_v27 = vmul.f32 1.442695, %v7165_v16 }
0x1f17   : > { %v7169_v32 = vmul.f32 1.442695, %v7168_v44 }
0x1f18   : > { %10063 = vpow2.f32 %v7160_v13 }
0x1f19   : > { %10065 = vpow2.f32 %v7163_v22 }
0x1f1a   : > { %10067 = vpow2.f32 %v7166_v27 }
0x1f1b   : > { %10069 = vpow2.f32 %v7169_v32 }
0x1f22   : > { %v10064_v45 = vpop.eup %10063 }
0x1f23   : > { %v10066_v43 = vpop.eup %10065  ;;  %v7171_v55 = vsel %vm706_vm3, %v10064_v45, 0.0  ;;  %v7186_v62 = vpack.c.bf16 %v10064_v45, %v10064_v45 }
0x1f24   : > { %v7174_v56 = vsel %vm706_vm3, %v10066_v43, 0.0  ;;  %7172 = vadd.xlane.f32.xlu1 %v7171_v55  ;;  %v7187_v54 = vpack.c.bf16 %v10066_v43, %v10066_v43  ;;  %v10068_v5 = vpop.eup %10067 }
0x1f25   : > { %7175 = vadd.xlane.f32.xlu0 %v7174_v56  ;;  %v7178_v34 = vsel %vm706_vm3, %v10068_v5, 0.0  ;;  %v10070_v7 = vpop.eup %10069  ;;  %v7274_v41 = vpack.c.bf16 %v10068_v5, %v10068_v5 }
0x1f26   : > { %9517 = vmatmul.mubr.msk.bf16.vlgmr.msra.gmra.mrb[144].mxu1 %vm753_vm5, %v7187_v54  ;;  %v7182_v61 = vsel %vm706_vm3, %v10070_v7, 0.0  ;;  %v7319_v63 = vpack.c.bf16 %v10070_v7, %v10070_v7 }
0x1f27   : > { %9521 = vmatpush3.bf16.msra.mxu1 %v11428_v3  ;;  %9522 = vmatprep.mubr.msk.bf16.mxu1 %vm10153_vm0, %v10152_v1 }
0x1f28   : > { %9526 = vmatprep.subr.bf16.mxu1 %v10152_v1 }
0x1f29   : > { %7179 = vadd.xlane.f32.xlu0 %v7178_v34 }
0x1f2d   : > { %7183 = vadd.xlane.f32.xlu0 %v7182_v61 }
0x1f32   : > { %9523 = vmatmul.mubr.msk.bf16.vlgmr.msra.gmra.mrb[144].mxu1 %vm753_vm5, %v7186_v62 }
0x1f33   : > { %9527 = vmatpush3.bf16.msra.mxu1 %v11446_v42  ;;  %9528 = vmatprep.mubr.msk.bf16.mxu1 %vm10153_vm0, %v10152_v1 }
0x1f34   : > { %9532 = vmatprep.subr.bf16.mxu1 %v10152_v1 }
0x1f3e   : > { %9529 = vmatmul.mubr.msk.bf16.vlgmr.msra.gmra.mrb[144].mxu1 %vm753_vm5, %v7274_v41 }
0x1f3f   : > { %9533 = vmatpush3.bf16.msra.mxu1 %v11461_v18  ;;  %9534 = vmatprep.mubr.msk.bf16.mxu1 %vm10153_vm0, %v10152_v1 }
0x1f40   : > { %9562 = vmatprep.subr.bf16.mxu1 %v10152_v1 }
0x1f43   : > { %7411 = vrot.lane.b32.xlu0 %v11276_v50, %s11779_s3 }
0x1f4a   : > { %9535 = vmatmul.mubr.msk.bf16.vlgmr.msra.gmra.mrb[144].mxu1 %vm753_vm5, %v7319_v63 }
0x1f4b   : > { %9563 = vmatpush3.bf16.xpose.msra.mxu1 %v11343_v10  ;;  %9564 = vmatprep.mubr.msk.bf16.mxu1 %vm10153_vm0, %v10152_v1 }
0x1f4c   : > { %9598 = vmatprep.subr.mxu1 %v10152_v1 }
0x1fb1   : > { %v7173_v21 = vpop.xlane.xlu1 %7172 }
0x1fb2   : > { %v7176_v39 = vpop.xlane.xlu0 %7175 }
0x1fb3   : > { %v7177_v52 = vadd.f32 %v7176_v39, %v7173_v21 }
0x1fb6   : > { %v7180_v46 = vpop.xlane.xlu0 %7179 }
0x1fb7   : > { %v7181_v51 = vadd.f32 %v7180_v46, %v7177_v52 }
0x1fba   : > { %v7184_v53 = vpop.xlane.xlu0 %7183 }
0x1fbb   : > { %v7185_v58 = vadd.f32 %v7184_v53, %v7181_v51 }
0x1fbd   : > { %10071 = vrcp.f32 %v7185_v58 }
0x1fbe   : > { %v7412_v19 = vpop.permute.xlu0 %7411 }
0x1fbf   : > { %9565 = vmatmul.mubr.msk.bf16.vlgmr.msra.gmra.mrb[148].mxu1 %vm524_vm2, %v7412_v19 }
0x1fc0   : > { %9600 = vmatprep.mubr.msk.f32.mxu1 %vm10153_vm0, %v10152_v1 }
0x1fc7   : > { %v10072_v50 = vpop.eup %10071 }
0x201d   : > { %v7357_v10 = vpop.f32.mrb[144].mxu1 }
0x201e   : > { %v7365_v15 = vmul.f32 %v10072_v50, %v7357_v10  ;;  %v9536_v40 = vpop.f32.mrb[145].mxu1 }
0x201f   : > { %v7360_v59 = vpop.f32.mrb[146].mxu1 }
0x2020   : > { %v7366_v4 = vpack.c.bf16 %v7365_v15, %v7365_v15  ;;  %v9537_v9 = vpop.f32.mrb[147].mxu1 }
0x2022   : > { %9541 = vmatmul.mubr.msk.bf16.vlgmr.msra.gmra.mrb[164].mxu0 %vm524_vm2, %v7366_v4 }
0x2023   : > { %9545 = vmatpush3.bf16.xpose.msra.mxu0 %v11320_v2  ;;  %9546 = vmatprep.mubr.msk.bf16.mxu0 %vm10153_vm0, %v10152_v1 }
0x2024   : > { %9550 = vmatprep.subr.bf16.mxu0 %v10152_v1 }
0x202a   : > { %9547 = vmatmul.mubr.msk.bf16.vlgmr.msra.gmra.mrb[180].mxu0 %vm524_vm2, %v7412_v19 }
0x202b   : > { %9551 = vmatpush3.bf16.xpose.msra.mxu0 %v11325_v14  ;;  %9552 = vmatprep.mubr.msk.bf16.mxu0 %vm10153_vm0, %v10152_v1 }
0x202c   : > { %9556 = vmatprep.subr.bf16.mxu0 %v10152_v1 }
0x2032   : > { %9553 = vmatmul.mubr.msk.bf16.vlgmr.msra.gmra.mrb[184].mxu0 %vm524_vm2, %v7412_v19 }
0x2033   : > { %9557 = vmatpush3.bf16.xpose.msra.mxu0 %v11334_v23  ;;  %9558 = vmatprep.mubr.msk.bf16.mxu0 %vm10153_vm0, %v10152_v1 }
0x2034   : > { %9568 = vmatprep.subr.bf16.mxu0 %v10152_v1 }
0x203a   : > { %9559 = vmatmul.mubr.msk.bf16.vlgmr.msra.gmra.mrb[188].mxu0 %vm524_vm2, %v7412_v19 }
0x203b   : > { %9569 = vmatpush3.bf16.msra.mxu0 %v11418_v57  ;;  %9570 = vmatprep.mubr.msk.bf16.mxu0 %vm10153_vm0, %v10152_v1 }
0x203c   : > { %9574 = vmatprep.subr.bf16.mxu0 %v10152_v1 }
0x2092   : > { %v7570_v2 = vpop.f32.mrb[148].mxu1 }
0x2093   : > { %v9566_v14 = vpop.f32.mrb[149].mxu1  ;;  %v7587_v20 = vsel %vm706_vm3, %v7570_v2, -inf }
0x2094   : > { %v7573_v48 = vpop.f32.mrb[150].mxu1 }
0x2095   : > { %v9567_v11 = vpop.f32.mrb[151].mxu1 }
0x20fd   : > { %v7450_v12 = vpop.f32.mrb[180].mxu0 }
0x20fe   : > { %v9548_v23 = vpop.f32.mrb[181].mxu0  ;;  %v7576_v49 = vsel %vm706_vm3, %v7450_v12, -inf }
0x20ff   : > { %7577 = vmax.xlane.f32.xlu0 %v7576_v49  ;;  %v7453_v47 = vpop.f32.mrb[182].mxu0 }
0x2100   : > { %v9549_v6 = vpop.f32.mrb[183].mxu0 }
0x2105   : > { %v7490_v38 = vpop.f32.mrb[184].mxu0 }
0x2106   : > { %v9554_v24 = vpop.f32.mrb[185].mxu0  ;;  %v7579_v57 = vsel %vm706_vm3, %v7490_v38, -inf }
0x2107   : > { %7580 = vmax.xlane.f32.xlu1 %v7579_v57  ;;  %v7493_v25 = vpop.f32.mrb[186].mxu0  ;;  %v10087_v24 = vld [vmem:[%s10302_s20] sm:$0xff]  ;;  %s8160_s20 = sshll.u32 %s431_s24, 4  ;;  %s11682_s20 = int_to_ptr.vmem [resolvable:$true] %s8160_s20 }
0x2108   : > { %v9555_v26 = vpop.f32.mrb[187].mxu0  ;;  %s10088_s1 = scalar_lea.vmem %s11682_s20, 128  ;;  %p10095_p0 = scmp.lt.s32.totalorder %s11682_s20, %s10093_s21 }
0x2109   : > { %p10089_p11 = scmp.ne.s32.totalorder %s11682_s20, %s10088_s1  ;;  %p10096_p1 = scmp.lt.s32.totalorder %s10094_s2, %s10088_s1 }
0x210b   : > { %p10090_p12 = pnand %p10089_p11, %p10274_p5  ;;  %p10097_p2 = por %p10096_p1, %p10095_p0 }
0x210d   : > { %v7530_v28 = vpop.f32.mrb[188].mxu0  ;;  %p10091_p13 = pneg %p10090_p12 }
0x210e   : > { %v9560_v17 = vpop.f32.mrb[189].mxu0  ;;  %v7583_v36 = vsel %vm706_vm3, %v7530_v28, -inf }
0x210f   : > { %7584 = vmax.xlane.f32.xlu1 %v7583_v36  ;;  %v7533_v33 = vpop.f32.mrb[190].mxu0  ;;  %p10098_p3 = pnand %p10097_p2, %p10091_p13 }
0x2110   : > { %v9561_v35 = vpop.f32.mrb[191].mxu0 }
0x2111   : > { %v9917_v35 = vld [vmem:[%s11730_s7] sm:$0xff]  }
0x2113   : > { %7588 = vmax.xlane.f32.xlu1 %v7587_v20 }
0x218c   : > { %v7578_v8 = vpop.xlane.xlu0 %7577 }
0x2194   : > { %v7581_v29 = vpop.xlane.xlu1 %7580 }
0x2195   : > { %v7582_v16 = vmax.f32 %v7578_v8, %v7581_v29 }
0x219c   : > { %v7585_v37 = vpop.xlane.xlu1 %7584 }
0x219d   : > { %v7586_v13 = vmax.f32 %v7582_v16, %v7585_v37  ;;  %v8386_v16 = vld [vmem:[%s11728_s5] ss:$0 sm:$0xff] }
0x21a0   : > { %v7589_v22 = vpop.xlane.xlu1 %7588 }
0x21a1   : > { %v7590_v27 = vmax.f32 %v7586_v13, %v7589_v22  ;;  %v8387_v22 = vld [vmem:[%s11729_s6] ss:$0 sm:$0xff] }
0x21a3   : > { %v7591_v44 = vsub.f32 %v7450_v12, %v7590_v27  ;;  %v7594_v32 = vsub.f32 %v7490_v38, %v7590_v27  ;;  %v7597_v55 = vsub.f32 %v7530_v28, %v7590_v27  ;;  %v7600_v54 = vsub.f32 %v7570_v2, %v7590_v27 }
0x21a5   : > { %v7592_v45 = vmul.f32 1.442695, %v7591_v44  ;;  %v7595_v43 = vmul.f32 1.442695, %v7594_v32  ;;  %v7598_v56 = vmul.f32 1.442695, %v7597_v55 }
0x21a6   : > { %v7601_v5 = vmul.f32 1.442695, %v7600_v54  ;;  %v9919_v32 = vld [vmem:[%s11732_s9] sm:$0xff]   ;;  %v9921_v55 = vld [vmem:[%s11732_s9 + $0x10] sm:$0xff]  }
0x21a7   : > { %10073 = vpow2.f32 %v7592_v45  ;;  %v8388_v54 = vld [vmem:[%s11731_s8] ss:$0 sm:$0xff] }
0x21a8   : > { %10075 = vpow2.f32 %v7595_v43  ;;  %v9920_v43 = vld [vmem:[%s11732_s9 + $0x8] sm:$0xff]  }
0x21a9   : > { %10077 = vpow2.f32 %v7598_v56  ;;  %v9922_v56 = vld [vmem:[%s11732_s9 + $0x18] sm:$0xff]  }
0x21aa   : > { %10079 = vpow2.f32 %v7601_v5 }
0x21b1   : > { %v10074_v34 = vpop.eup %10073 }
0x21b2   : > { %v10076_v7 = vpop.eup %10075  ;;  %v7603_v61 = vsel %vm706_vm3, %v10074_v34, 0.0  ;;  %v7618_v46 = vpack.c.bf16 %v10074_v34, %v10074_v34 }
0x21b3   : > { %7604 = vadd.xlane.f32.xlu1 %v7603_v61  ;;  %v7619_v62 = vpack.c.bf16 %v10076_v7, %v10076_v7  ;;  %v7606_v41 = vsel %vm706_vm3, %v10076_v7, 0.0  ;;  %v10078_v63 = vpop.eup %10077 }
0x21b4   : > { %v7610_v39 = vsel %vm706_vm3, %v10078_v63, 0.0  ;;  %v10080_v21 = vpop.eup %10079 }
0x21b5   : > { %9571 = vmatmul.mubr.msk.bf16.vlgmr.msra.gmra.mrb[192].mxu0 %vm753_vm5, %v7619_v62  ;;  %v7614_v52 = vsel %vm706_vm3, %v10080_v21, 0.0  ;;  %v7751_v51 = vpack.c.bf16 %v10080_v21, %v10080_v21 }
0x21b6   : > { %9575 = vmatpush3.bf16.msra.mxu0 %v11428_v3  ;;  %9576 = vmatprep.mubr.msk.bf16.mxu0 %vm10153_vm0, %v10152_v1  ;;  %v7706_v3 = vpack.c.bf16 %v10078_v63, %v10078_v63 }
0x21b7   : > { %7607 = vadd.xlane.f32.xlu1 %v7606_v41  ;;  %9580 = vmatprep.subr.bf16.mxu0 %v10152_v1 }
0x21bb   : > { %7611 = vadd.xlane.f32.xlu1 %v7610_v39 }
0x21bf   : > { %7615 = vadd.xlane.f32.xlu1 %v7614_v52 }
0x21c1   : > { %9577 = vmatmul.mubr.msk.bf16.vlgmr.msra.gmra.mrb[192].mxu0 %vm753_vm5, %v7618_v46 }
0x21c2   : > { %9581 = vmatpush3.bf16.msra.mxu0 %v11446_v42  ;;  %9582 = vmatprep.mubr.msk.bf16.mxu0 %vm10153_vm0, %v10152_v1 }
0x21c3   : > { %9586 = vmatprep.subr.bf16.mxu0 %v10152_v1 }
0x21cd   : > { %9583 = vmatmul.mubr.msk.bf16.vlgmr.msra.gmra.mrb[192].mxu0 %vm753_vm5, %v7706_v3 }
0x21ce   : > { %9587 = vmatpush3.bf16.msra.mxu0 %v11461_v18  ;;  %9588 = vmatprep.mubr.msk.bf16.mxu0 %vm10153_vm0, %v10152_v1 }
0x21cf   : > { %9592 = vmatprep.subr.bf16.mxu0 %v10152_v1 }
0x21d9   : > { %9589 = vmatmul.mubr.msk.bf16.vlgmr.msra.gmra.mrb[192].mxu0 %vm753_vm5, %v7751_v51 }
0x21da   : > { %9593 = vmatpush3.bf16.msra.mxu0 %v10676_v60  ;;  %9594 = vmatprep.mubr.msk.bf16.mxu0 %vm10153_vm0, %v10152_v1  ;;  %v7843_v60 = vadd.s32 6, %v10977_v30  ;;  %v8385_v30 = vld [vmem:[%s11727_s4] ss:$0 sm:$0xff] }
0x21dc   : > { %vm7844_vm11 = vcmp.eq.s32.totalorder %v10979_v31, %v7843_v60 }
0x21dd   : > { %v8382_v48 = vsel %vm7844_vm11, 1.0, %v10152_v1 }
0x2240   : > { %v7605_v42 = vpop.xlane.xlu1 %7604 }
0x2244   : > { %v7608_v53 = vpop.xlane.xlu1 %7607 }
0x2245   : > { %v7609_v19 = vadd.f32 %v7608_v53, %v7605_v42 }
0x2248   : > { %v7612_v58 = vpop.xlane.xlu1 %7611 }
0x2249   : > { %v7613_v10 = vadd.f32 %v7612_v58, %v7609_v19 }
0x224c   : > { %v7616_v50 = vpop.xlane.xlu1 %7615 }
0x224d   : > { %v7617_v18 = vadd.f32 %v7616_v50, %v7613_v10 }
0x224f   : > { %10081 = vrcp.f32 %v7617_v18 }
0x2259   : > { %v10082_v15 = vpop.eup %10081 }
0x22ac   : > { %v7789_v40 = vpop.f32.mrb[192].mxu0 }
0x22ad   : > { %v7797_v59 = vmul.f32 %v10082_v15, %v7789_v40  ;;  %v9590_v4 = vpop.f32.mrb[193].mxu0 }
0x22ae   : > { %v7792_v9 = vpop.f32.mrb[194].mxu0  ;;  %v8398_v4 = vld [vmem:[%s11734_s11] ss:$0 sm:$0xff] }
0x22af   : > { %v7798_v2 = vpack.c.bf16 %v7797_v59, %v7797_v59  ;;  %v9591_v14 = vpop.f32.mrb[195].mxu0 }
0x22b1   : > { %9595 = vmatmul.mubr.msk.bf16.vlgmr.msra.gmra.mrb[164].mxu0 %vm524_vm2, %v7798_v2  ;;  %v8399_v2 = vld [vmem:[%s11735_s12] ss:$0 sm:$0xff] }
0x2384   : > { %v7836_v11 = vpop.f32.mrb[164].mxu0 }
0x2385   : > { %v9596_v12 = vpop.f32.mrb[165].mxu0  ;;  %9599 = vmatpush3.msk.msra.mxu1 %vm4080_vm8, %v7836_v11 }
0x2386   : > { %v7839_v23 = vpop.f32.mrb[166].mxu0  ;;  %9601 = vmatmul.mubr.msk.f32.vlgmr.msra.gmra.mrb[152].mxu1 %vm753_vm5, %v8382_v48  ;;  %9603 = vmatprep.subr.bf16.mxu1 %v10152_v1 }
0x2387   : > { %v9597_v49 = vpop.f32.mrb[167].mxu0  ;;  %9607 = vmatprep.mubr.msk.bf16.mxu1 %vm10153_vm0, %v10152_v1  ;;  %9604 = vmatpush3.bf16.msra.mxu1 %v9917_v35 }
0x2388   : > { %9605 = vmatprep.subr.bf16.mxu1 %v10152_v1 }
0x2459   : > { %v7919_v47 = vpop.f32.mrb[152].mxu1 }
0x245a   : > { %v7923_v31 = vadd.f32 %v7919_v47, %v11378_v0  ;;  %v9602_v6 = vpop.f32.mrb[153].mxu1  ;;  %v9918_v0 = vld [vmem:[%s11730_s7 + $0x8] sm:$0xff]  }
0x245b   : > { %9606 = vmatpush3.bf16.msra.mxu1 %v9918_v0 }
0x245c   : > { %v7931_v38 = vadd.f32 %v8385_v30, %v7923_v31  ;;  %9611 = vmatprep.subr.bf16.mxu1 %v10152_v1 }
0x245e   : > { %v7932_v57 = vadd.f32 %v10087_v24, %v7931_v38 }
0x2460   : > { %v7933_v25 = vsel %vm462_vm1, %v7932_v57, 0.0 }
0x2461   : > { %7934 = vadd.xlane.f32.xlu1 %v7933_v25 }
0x24ee   : > { %v7935_v26 = vpop.xlane.xlu1 %7934 }
0x24ef   : > { %v7937_v28 = vmul.f32 0.03125, %v7935_v26 }
0x24f1   : > { %v7938_v17 = vsub.f32 %v7932_v57, %v7937_v28 }
0x24f3   : > { %v7939_v36 = vmul.f32 %v7938_v17, %v7938_v17 }
0x24f5   : > { %v7940_v33 = vsel %vm462_vm1, %v7939_v36, 0.0 }
0x24f6   : > { %7941 = vadd.xlane.f32.xlu0 %v7940_v33 }
0x2583   : > { %v7942_v20 = vpop.xlane.xlu0 %7941 }
0x2584   : > { %v7943_v29 = vmul.f32 0.03125, %v7942_v20 }
0x2586   : > { %v7944_v8 = vadd.f32 1e-05, %v7943_v29 }
0x2588   : > { %10083 = vrsqrt.f32 %v7944_v8 }
0x2592   : > { %v10084_v37 = vpop.eup %10083 }
0x2593   : > { %v7946_v13 = vmul.f32 %v10084_v37, %v7938_v17 }
0x2595   : > { %v7954_v27 = vmul.f32 %v8386_v16, %v7946_v13 }
0x2597   : > { %v7962_v44 = vadd.f32 %v8387_v22, %v7954_v27 }
0x2599   : > { %v7963_v45 = vpack.c.bf16 %v7962_v44, %v7962_v44 }
0x259b   : > { %9608 = vmatmul.mubr.msk.bf16.vlgmr.msra.gmra.mrb[156].mxu1 %vm462_vm1, %v7963_v45 }
0x259c   : > { %9612 = vmatpush3.bf16.msra.mxu1 %v9919_v32  ;;  %9619 = vmatprep.mubr.msk.bf16.mxu1 %vm10153_vm0, %v10152_v1 }
0x259d   : > { %9613 = vmatprep.subr.bf16.mxu1 %v10152_v1 }
0x25a0   : > { %9614 = vmatpush3.bf16.msra.mxu1 %v9920_v43 }
0x25a1   : > { %9615 = vmatprep.subr.bf16.mxu1 %v10152_v1 }
0x25a4   : > { %9616 = vmatpush3.bf16.msra.mxu1 %v9921_v55 }
0x25a5   : > { %9617 = vmatprep.subr.bf16.mxu1 %v10152_v1  ;;  %v8392_v1 = vld [vmem:[%s11733_s10] ss:$0 sm:$0xff] }
0x25a8   : > { %9618 = vmatpush3.bf16.msra.mxu1 %v9922_v56 }
0x266e   : > { %v8024_v5 = vpop.f32.mrb[156].mxu1 }
0x266f   : > { %v8025_v34 = vadd.f32 %v8388_v54, %v8024_v5  ;;  %v9609_v7 = vpop.f32.mrb[157].mxu1 }
0x2670   : > { %v8027_v61 = vpop.f32.mrb[158].mxu1 }
0x2671   : > { %v8030_v62 = vmax.f32 %v8025_v34, 0.0  ;;  %v9610_v41 = vpop.f32.mrb[159].mxu1 }
0x2673   : > { %v8031_v63 = vpack.c.bf16 %v8030_v62, %v8030_v62 }
0x2675   : > { %9620 = vmatmul.mubr.msk.bf16.vlgmr.msra.gmra.mrb[160].mxu1 %vm8071_vm12, %v8031_v63 }
0x2748   : > { %v8109_v39 = vpop.f32.mrb[160].mxu1 }
0x2749   : > { %v8110_v21 = vadd.f32 %v8392_v1, %v8109_v39  ;;  %v9621_v52 = vpop.f32.mrb[161].mxu1 }
0x274a   : > { %v8112_v46 = vpop.f32.mrb[162].mxu1 }
0x274b   : > { %v8115_v3 = vadd.f32 %v8110_v21, %v7962_v44  ;;  %v9622_v51 = vpop.f32.mrb[163].mxu1 }
0x274d   : > { %v8116_v42 = vsel %vm462_vm1, %v8115_v3, 0.0 }
0x274e   : > { %8117 = vadd.xlane.f32.xlu1 %v8116_v42 }
0x27db   : > { %v8118_v53 = vpop.xlane.xlu1 %8117 }
0x27dc   : > { %v8119_v58 = vmul.f32 0.03125, %v8118_v53 }
0x27de   : > { %v8120_v19 = vsub.f32 %v8115_v3, %v8119_v58 }
0x27e0   : > { %v8121_v50 = vmul.f32 %v8120_v19, %v8120_v19 }
0x27e2   : > { %v8122_v10 = vsel %vm462_vm1, %v8121_v50, 0.0 }
0x27e3   : > { %8123 = vadd.xlane.f32.xlu0 %v8122_v10 }
0x2870   : > { %v8124_v18 = vpop.xlane.xlu0 %8123 }
0x2871   : > { %v8125_v15 = vmul.f32 0.03125, %v8124_v18 }
0x2873   : > { %v8126_v40 = vadd.f32 1e-05, %v8125_v15 }
0x2875   : > { %10085 = vrsqrt.f32 %v8126_v40 }
0x287f   : > { %v10086_v59 = vpop.eup %10085 }
0x2880   : > { %v8128_v9 = vmul.f32 %v10086_v59, %v8120_v19 }
0x2882   : > { %v8136_v14 = vmul.f32 %v8398_v4, %v8128_v9 }
0x2884   : > { %v8144_v60 = vadd.f32 %v8399_v2, %v8136_v14 }
0x2886   : > { %8145 = vst.msk [vmem:[%s431_s24] sm:$0xff] %vm462_vm1, %v8144_v60 }
0x2887   : > { %10101 = shalt.err (!%p10098_p3)
}
0x2888   : > { %s10102_s30 = scalar_lea.hbm %s11680_s22, 128  ;;  %s10106_s24 = scalar_lea.hbm %s11736_s13, 256 }
0x2889   : > { %p10103_p4 = scmp.ne.s32.totalorder %s11680_s22, %s10102_s30  ;;  %p10107_p9 = scmp.lt.u32.totalorder %s11680_s22, %s11736_s13 }
0x288a   : > { %p10108_p10 = scmp.lt.u32.totalorder %s10106_s24, %s10102_s30  ;;  %p10110_p12 = scmp.lt.u32.totalorder %s10102_s30, %s11680_s22 }
0x288b   : > { %p10104_p7 = pnand %p10103_p4, %p10274_p5 }
0x288c   : > { %p10109_p11 = por %p10108_p10, %p10107_p9 }
0x288d   : > { %p10105_p8 = pneg %p10104_p7 }
0x288e   : > { %p10111_p13 = por %p10110_p12, %p10109_p11 }
0x2890   : > { %p10112_p0 = pnand %p10111_p13, %p10105_p8 }
0x2892   : > { %10115 = shalt.err (!%p10112_p0)
}
0x2893   : > { %9863 = dma.vmem_to_hbm [thread:$0]  (%p10274_p5), %s11682_s20, 128, %s11680_s22, %s8147_s0  }
0x2894 PF: > { %p9869_p1 = scmp.ge.s32.totalorder %s10150_s28, 2  ;;  %s8172_s1 = sand.u32 1, %s10138_s25  }
0x2895   : > { %s8173_s29 = scalar_lea.sflag [#allocation3], %s8172_s1 }
0x2896   : > { %p9866_p2 = pnand %p9869_p1, %p10278_p6 }
0x2898   : > { %10133 = dma.done.wait (!%p9866_p2), %s8173_s29, 128  }
0x2899   : > { %10135 = vsyncadd (!%p9866_p2), %s8173_s29, 4294967168  ;;  %p23_p3 = scmp.ge.s32.totalorder %s10261_s14, 4   ;;  %s11780_s25 = smov %s10142_s26 }
0x289a   : > { %s11781_s26 = smov %s10146_s27  ;;  %s11782_s27 = smov %s10272_s17 }
0x289b   : > { %s11783_s28 = smov %s10261_s14  ;;  %25 = sbr.rel (!%p23_p3) target bundleno = 8 (0x8), region = 107 }
0x28a2   :  { %8178 = vsyncpa [#allocation3], 1 }
0x28a3   :  { %8180 = vsyncpa [#allocation3 + $0x1], 1 }

</bundles_post_ra>
